<compile_context>
chip_gen: v7x
topology: tpu7x:2x2x1
jax: 0.10.0
libtpu: 0.0.40
codegen_flags: <defaults>
</compile_context>

<pallas_src>
import jax
import jax.numpy as jnp
from jax.experimental import pallas as pl
from jax.experimental.pallas import tpu as pltpu


def _bottleneck_kernel(x_ref, w1_ref, b1_ref, w2_ref, b2_ref, w3_ref, b3_ref,
                       o_ref, pad_ref):
    """One batch chunk of the fused bottleneck block.

    x_ref:   (Nb, H, W, Cin)    bf16
    w1_ref:  (Cin, P)           bf16  (BN scale folded in)
    w2_ref:  (9, P, P)          bf16  (taps in (dy, dx) row-major, scale folded)
    w3_ref:  (P, Cout)          bf16  (scale folded)
    b*_ref:  (1, C)             f32
    o_ref:   (Nb, H, W, Cout)   out dtype (bf16 by default)
    pad_ref: (Nb, H+2, W+2, P)  bf16 persistent zero-halo scratch for conv2
    """
    Nb, H, W, Cin = x_ref.shape
    P = w1_ref.shape[1]
    Cout = w3_ref.shape[1]
    M = Nb * H * W

    # ---- conv1 (1x1) + bias + relu: one channel matmul, bf16 in / f32 acc ----
    h1 = jnp.dot(x_ref[...].reshape(M, Cin), w1_ref[...],
                 preferred_element_type=jnp.float32)
    h1 = jnp.maximum(h1 + b1_ref[...], 0.0)                         # (M, P) f32

    # ---- conv2 (3x3, pad=1, stride=1) via the persistent zero-halo scratch --
    # Re-zero only the halo (2 rows + 2 cols) every step: negligible vs. the
    # interior store, and stays correct when the "parallel" grid axis is
    # sharded across TensorCores (a program_id==0 one-time init would only run
    # on one core).
    zrow = jnp.zeros((Nb, 1, W + 2, P), jnp.bfloat16)
    zcol = jnp.zeros((Nb, H + 2, 1, P), jnp.bfloat16)
    pad_ref[:, 0:1, :, :] = zrow
    pad_ref[:, H + 1:H + 2, :, :] = zrow
    pad_ref[:, :, 0:1, :] = zcol
    pad_ref[:, :, W + 1:W + 2, :] = zcol
    pad_ref[:, 1:H + 1, 1:W + 1, :] = h1.astype(jnp.bfloat16).reshape(Nb, H, W, P)

    # Nine accumulated (M,P)x(P,P) matmuls.  Each tap is a row/column-offset
    # view of the padded scratch (channels stay on the lane axis): no lane
    # movement, no 9x im2col operand buffer.
    # TODO(synk): when P % 128 == 0 a single lane-aligned K=9P matmul is a
    # valid alternative path.
    acc = None
    for t, (dy, dx) in enumerate([(dy, dx) for dy in range(3) for dx in range(3)]):
        tap = pad_ref[:, dy:dy + H, dx:dx + W, :].reshape(M, P)
        contrib = jnp.dot(tap, w2_ref[t], preferred_element_type=jnp.float32)
        acc = contrib if acc is None else acc + contrib
    h2 = jnp.maximum(acc + b2_ref[...], 0.0)                        # (M, P) f32

    # ---- conv3 (1x1) + bias ----
    h3 = jnp.dot(h2.astype(jnp.bfloat16), w3_ref[...],
                 preferred_element_type=jnp.float32)
    h3 = (h3 + b3_ref[...]).reshape(Nb, H, W, Cout)                 # f32

    # ---- residual add + relu: re-read the resident x block, f32 math -------
    o_ref[...] = jnp.maximum(h3 + x_ref[...].astype(jnp.float32),
                             0.0).astype(o_ref.dtype)


def _vmem_limit_bytes():
    """Generation-aware VMEM budget (leave headroom for compiler scratch)."""
    try:
        cap = int(pltpu.get_tpu_info().vmem_capacity_bytes)
    except Exception:
        cap = 64 * 1024 * 1024          # conservative: v7x per-TensorCore VMEM
    return (cap * 3) // 4               # ~96 MiB on v5e/v6e, ~48 MiB on v7x


def _pick_nb(N, H, W, Cin, P, Cout, x_bytes, out_bytes, vmem_limit):
    """Batch elements per grid step, from an accurate per-image VMEM estimate."""
    per_img = H * W * (2 * x_bytes * Cin       # x block (pipeline double-buffered)
                       + 2 * out_bytes * Cout  # out block (double-buffered)
                       + 14 * P                # h1(f32)+h1b+acc(f32)+tap+h2 temps
                       + 4 * Cout              # h3 (f32)
                       + 4 * Cin)              # residual upcast (f32)
    per_img += (H + 2) * (W + 2) * 2 * P       # padded bf16 VMEM scratch
    weight_bytes = 2 * (Cin * P + 9 * P * P + P * Cout) + 4 * (2 * P + Cout)
    budget = (vmem_limit * 3) // 5 - 2 * weight_bytes
    nb = max(1, min(N, budget // max(per_img, 1)))
    nb = min(nb, max(1, 4096 // max(H * W, 1)))    # keep matmul M in the 1-4K range
    if N >= 2:
        nb = min(nb, N // 2)   # >=2 "parallel" grid steps so v7x's 2 TCs share work
    while N % nb:
        nb -= 1
    return nb


def bottleneck_pallas_nhwc(x_nhwc, params, nb=None, out_dtype=jnp.bfloat16):
    """Core entry: x (N, H, W, Cin) -> (N, H, W, Cin) (bf16 HBM I/O by default)."""
    (w1, s1, b1, w2, s2, b2, w3, s3, b3) = params   # f32; w2 in HWIO (3,3,P,P)
    N, H, W, Cin = x_nhwc.shape
    P = w1.shape[1]
    Cout = w3.shape[1]
    assert Cin == Cout, "residual add requires inplanes == 4*planes"

    # Fold BN scale into the conv weights (f32 fold, then bf16 MXU operands).
    w1b = (w1 * s1).astype(jnp.bfloat16)                             # (Cin, P)
    w2b = (w2 * s2.reshape(1, 1, 1, P)).reshape(9, P, P).astype(jnp.bfloat16)
    w3b = (w3 * s3).astype(jnp.bfloat16)                             # (P, Cout)

    xb = x_nhwc.astype(jnp.bfloat16)        # bf16 HBM input halves DMA read volume

    vmem_limit = _vmem_limit_bytes()
    if nb is None:
        nb = _pick_nb(N, H, W, Cin, P, Cout, x_bytes=2,
                      out_bytes=jnp.dtype(out_dtype).itemsize,
                      vmem_limit=vmem_limit)
    assert N % nb == 0

    def const_spec(shape):
        nd = len(shape)
        # Constant operands: index_map never changes -> single-buffer them.
        return pl.BlockSpec(shape, lambda *_: (0,) * nd,
                            pipeline_mode=pl.Buffered(1))

    kernel = pl.pallas_call(
        _bottleneck_kernel,
        out_shape=jax.ShapeDtypeStruct((N, H, W, Cout), out_dtype),
        grid_spec=pltpu.PrefetchScalarGridSpec(
            num_scalar_prefetch=0,
            grid=(N // nb,),
            in_specs=[
                pl.BlockSpec((nb, H, W, Cin), lambda n: (n, 0, 0, 0)),  # x
                const_spec((Cin, P)),                                   # w1 (folded)
                const_spec((1, P)),                                     # b1
                const_spec((9, P, P)),                                  # w2 (folded)
                const_spec((1, P)),                                     # b2
                const_spec((P, Cout)),                                  # w3 (folded)
                const_spec((1, Cout)),                                  # b3
            ],
            out_specs=pl.BlockSpec((nb, H, W, Cout), lambda n: (n, 0, 0, 0)),
            scratch_shapes=[pltpu.VMEM((nb, H + 2, W + 2, P), jnp.bfloat16)],
        ),
        compiler_params=pltpu.CompilerParams(
            dimension_semantics=("parallel",),
            vmem_limit_bytes=int(vmem_limit)),
    )
    # TODO(synk): add a second parallel grid axis over H row-bands (1-row halo)
    # for large-spatial stages / explicit 2-TC sharding on v7x.
    return kernel(xb, w1b, b1, w2b, b2, w3b, b3)


def bottleneck_pallas(x_nchw, params, nb=None):
    """NCHW wrapper matching the PyTorch module interface (glue transposes only)."""
    x = jnp.transpose(x_nchw, (0, 2, 3, 1))
    y = bottleneck_pallas_nhwc(x, params, nb)
    return jnp.transpose(y, (0, 3, 1, 2)).astype(x_nchw.dtype)


def _fold_bn(gamma, beta, mean, var, eps=1e-5):
    scale = gamma / jnp.sqrt(var + eps)
    bias = beta - mean * scale
    return scale[None, :], bias[None, :]


def make_params(key, inplanes, planes):
    """Deterministic synthetic parameters (shapes from Bottleneck.__init__)."""
    ks = jax.random.split(key, 6)
    cout = planes * 4
    # PyTorch conv weights: (out, in, kh, kw) -> kernel-friendly layouts.
    w1_t = jax.random.normal(ks[0], (planes, inplanes, 1, 1), jnp.float32) * 0.1
    w2_t = jax.random.normal(ks[1], (planes, planes, 3, 3), jnp.float32) * 0.1
    w3_t = jax.random.normal(ks[2], (cout, planes, 1, 1), jnp.float32) * 0.1
    w1 = jnp.transpose(w1_t[:, :, 0, 0], (1, 0))              # (Cin, P)
    w2 = jnp.transpose(w2_t, (2, 3, 1, 0))                    # (3, 3, P, P) HWIO
    w3 = jnp.transpose(w3_t[:, :, 0, 0], (1, 0))              # (P, Cout)

    def bn(k, c):
        k1, k2, k3, k4 = jax.random.split(k, 4)
        gamma = 1.0 + 0.1 * jax.random.normal(k1, (c,), jnp.float32)
        beta = 0.1 * jax.random.normal(k2, (c,), jnp.float32)
        mean = 0.1 * jax.random.normal(k3, (c,), jnp.float32)
        var = jnp.abs(jax.random.normal(k4, (c,), jnp.float32)) + 0.5
        return _fold_bn(gamma, beta, mean, var)

    s1, b1 = bn(ks[3], planes)
    s2, b2 = bn(ks[4], planes)
    s3, b3 = bn(ks[5], cout)
    return (w1, s1, b1, w2, s2, b2, w3, s3, b3)


def bottleneck_reference(x_nchw, params):
    """Pure-JAX reference with matching bf16-operand / f32-accumulate semantics."""
    (w1, s1, b1, w2, s2, b2, w3, s3, b3) = params
    x = jnp.transpose(x_nchw, (0, 2, 3, 1)).astype(jnp.bfloat16)
    dn = ("NHWC", "HWIO", "NHWC")

    def conv(inp, w, pad):
        return jax.lax.conv_general_dilated(
            inp.astype(jnp.bfloat16), w.astype(jnp.bfloat16), (1, 1), pad,
            dimension_numbers=dn, preferred_element_type=jnp.float32)

    h = conv(x, w1[None, None], "VALID")
    h = jnp.maximum(h * s1[0] + b1[0], 0.0)
    h = conv(h, w2, "SAME")
    h = jnp.maximum(h * s2[0] + b2[0], 0.0)
    h = conv(h, w3[None, None], "VALID")
    h = h * s3[0] + b3[0]
    y = jnp.maximum(h + x.astype(jnp.float32), 0.0)
    return jnp.transpose(y, (0, 3, 1, 2))


if __name__ == "__main__":
    key = jax.random.PRNGKey(0)
    k_x, k_p = jax.random.split(key)

    # Small shapes consistent with the module: planes=8 -> inplanes=32 (=4*planes),
    # batch=2, spatial 16x16, stride=1, downsample=None.
    # (NOTE: production tuning should happen at lane-dense widths, Cout % 128 == 0.)
    N, planes, H, W = 2, 8, 16, 16
    inplanes = planes * 4

    x = jax.random.normal(k_x, (N, inplanes, H, W), jnp.float32)
    params = make_params(k_p, inplanes, planes)

    y = bottleneck_pallas(x, params)
    y = jax.block_until_ready(y)

    y_ref = bottleneck_reference(x, params)
    assert y.shape == (N, inplanes, H, W)
    err = float(jnp.max(jnp.abs(y.astype(jnp.float32) - y_ref)))
    assert jnp.allclose(y.astype(jnp.float32), y_ref, atol=3e-2, rtol=3e-2), err

    print("KERNEL_OK")
</pallas_src>

<mosaic_0001>
module attributes {stable_mosaic.version = 11 : i64} {
  func.func @_bottleneck_kernel(%arg0: i32, %arg1: memref<1x16x16x32xbf16, #tpu.memory_space<vmem>>, %arg2: memref<32x8xbf16, #tpu.memory_space<vmem>>, %arg3: memref<1x8xf32, #tpu.memory_space<vmem>>, %arg4: memref<9x8x8xbf16, #tpu.memory_space<vmem>>, %arg5: memref<1x8xf32, #tpu.memory_space<vmem>>, %arg6: memref<8x32xbf16, #tpu.memory_space<vmem>>, %arg7: memref<1x32xf32, #tpu.memory_space<vmem>>, %arg8: memref<1x16x16x32xbf16, #tpu.memory_space<vmem>>, %arg9: memref<1x18x18x8xbf16, #tpu.memory_space<vmem>>) attributes {dimension_semantics = [#tpu.dimension_semantics<parallel>], iteration_bounds = array<i64: 2>, scalar_prefetch = 0 : i64, scratch_operands = 1 : i64, tpu.core_type = #tpu.core_type<tc>, window_params = [{transform_indices = @transform_0, window_bounds = array<i64: 1, 16, 16, 32>}, {pipeline_mode = #tpu.pipeline_mode<synchronous>, transform_indices = @transform_1, window_bounds = array<i64: 32, 8>}, {pipeline_mode = #tpu.pipeline_mode<synchronous>, transform_indices = @transform_2, window_bounds = array<i64: 1, 8>}, {pipeline_mode = #tpu.pipeline_mode<synchronous>, transform_indices = @transform_3, window_bounds = array<i64: 9, 8, 8>}, {pipeline_mode = #tpu.pipeline_mode<synchronous>, transform_indices = @transform_4, window_bounds = array<i64: 1, 8>}, {pipeline_mode = #tpu.pipeline_mode<synchronous>, transform_indices = @transform_5, window_bounds = array<i64: 8, 32>}, {pipeline_mode = #tpu.pipeline_mode<synchronous>, transform_indices = @transform_6, window_bounds = array<i64: 1, 32>}, {transform_indices = @transform_7, window_bounds = array<i64: 1, 16, 16, 32>}]} {
    %c0 = arith.constant 0 : index
    %c0_0 = arith.constant 0 : index
    %c0_1 = arith.constant 0 : index
    %c0_2 = arith.constant 0 : index
    %0 = vector.load %arg1[%c0, %c0_0, %c0_1, %c0_2] : memref<1x16x16x32xbf16, #tpu.memory_space<vmem>>, vector<1x16x16x32xbf16>
    %1 = vector.shape_cast %0 : vector<1x16x16x32xbf16> to vector<256x32xbf16>
    %c0_3 = arith.constant 0 : index
    %c0_4 = arith.constant 0 : index
    %2 = vector.load %arg2[%c0_3, %c0_4] : memref<32x8xbf16, #tpu.memory_space<vmem>>, vector<32x8xbf16>
    %cst = arith.constant dense<0.000000e+00> : vector<256x8xf32>
    %3 = tpu.matmul %1, %2, %cst {dimension_numbers = #tpu.dot_dimension_numbers<[1], [0], [0], [1], [0, 0, 1, 1], [], []>} : vector<256x32xbf16>, vector<32x8xbf16>, vector<256x8xf32> -> vector<256x8xf32>
    %c0_5 = arith.constant 0 : index
    %c0_6 = arith.constant 0 : index
    %4 = vector.load %arg3[%c0_5, %c0_6] : memref<1x8xf32, #tpu.memory_space<vmem>>, vector<1x8xf32>
    %5 = vector.broadcast %4 : vector<1x8xf32> to vector<256x8xf32>
    %6 = arith.addf %3, %5 : vector<256x8xf32>
    %cst_7 = arith.constant 0.000000e+00 : f32
    %7 = vector.broadcast %cst_7 : f32 to vector<256x8xf32>
    %8 = arith.maximumf %6, %7 : vector<256x8xf32>
    %cst_8 = arith.constant 0.000000e+00 : bf16
    %9 = vector.broadcast %cst_8 : bf16 to vector<1x1x18x8xbf16>
    %cst_9 = arith.constant 0.000000e+00 : bf16
    %10 = vector.broadcast %cst_9 : bf16 to vector<1x18x1x8xbf16>
    %c0_10 = arith.constant 0 : index
    %c0_11 = arith.constant 0 : index
    %c0_12 = arith.constant 0 : index
    %c0_13 = arith.constant 0 : index
    %11 = vector.load %arg9[%c0_10, %c0_11, %c0_12, %c0_13] : memref<1x18x18x8xbf16, #tpu.memory_space<vmem>>, vector<1x1x18x8xbf16>
    tpu.vector_store %arg9[%c0_10, %c0_11, %c0_12, %c0_13], %9 {strides = array<i32>} : memref<1x18x18x8xbf16, #tpu.memory_space<vmem>>, vector<1x1x18x8xbf16>,
    %c0_14 = arith.constant 0 : index
    %c17 = arith.constant 17 : index
    %c0_15 = arith.constant 0 : index
    %c0_16 = arith.constant 0 : index
    %12 = vector.load %arg9[%c0_14, %c17, %c0_15, %c0_16] : memref<1x18x18x8xbf16, #tpu.memory_space<vmem>>, vector<1x1x18x8xbf16>
    tpu.vector_store %arg9[%c0_14, %c17, %c0_15, %c0_16], %9 {strides = array<i32>} : memref<1x18x18x8xbf16, #tpu.memory_space<vmem>>, vector<1x1x18x8xbf16>,
    %c0_17 = arith.constant 0 : index
    %c0_18 = arith.constant 0 : index
    %c0_19 = arith.constant 0 : index
    %c0_20 = arith.constant 0 : index
    %13 = vector.load %arg9[%c0_17, %c0_18, %c0_19, %c0_20] : memref<1x18x18x8xbf16, #tpu.memory_space<vmem>>, vector<1x18x1x8xbf16>
    tpu.vector_store %arg9[%c0_17, %c0_18, %c0_19, %c0_20], %10 {strides = array<i32>} : memref<1x18x18x8xbf16, #tpu.memory_space<vmem>>, vector<1x18x1x8xbf16>,
    %c0_21 = arith.constant 0 : index
    %c0_22 = arith.constant 0 : index
    %c17_23 = arith.constant 17 : index
    %c0_24 = arith.constant 0 : index
    %14 = vector.load %arg9[%c0_21, %c0_22, %c17_23, %c0_24] : memref<1x18x18x8xbf16, #tpu.memory_space<vmem>>, vector<1x18x1x8xbf16>
    tpu.vector_store %arg9[%c0_21, %c0_22, %c17_23, %c0_24], %10 {strides = array<i32>} : memref<1x18x18x8xbf16, #tpu.memory_space<vmem>>, vector<1x18x1x8xbf16>,
    %15 = arith.truncf %8 : vector<256x8xf32> to vector<256x8xbf16>
    %16 = vector.shape_cast %15 : vector<256x8xbf16> to vector<1x16x16x8xbf16>
    %c0_25 = arith.constant 0 : index
    %c1 = arith.constant 1 : index
    %c1_26 = arith.constant 1 : index
    %c0_27 = arith.constant 0 : index
    %17 = vector.load %arg9[%c0_25, %c1, %c1_26, %c0_27] : memref<1x18x18x8xbf16, #tpu.memory_space<vmem>>, vector<1x16x16x8xbf16>
    tpu.vector_store %arg9[%c0_25, %c1, %c1_26, %c0_27], %16 {strides = array<i32>} : memref<1x18x18x8xbf16, #tpu.memory_space<vmem>>, vector<1x16x16x8xbf16>,
    %c0_28 = arith.constant 0 : index
    %c0_29 = arith.constant 0 : index
    %c0_30 = arith.constant 0 : index
    %c0_31 = arith.constant 0 : index
    %18 = vector.load %arg9[%c0_28, %c0_29, %c0_30, %c0_31] : memref<1x18x18x8xbf16, #tpu.memory_space<vmem>>, vector<1x16x16x8xbf16>
    %19 = vector.shape_cast %18 : vector<1x16x16x8xbf16> to vector<256x8xbf16>
    %c0_32 = arith.constant 0 : index
    %c0_33 = arith.constant 0 : index
    %c0_34 = arith.constant 0 : index
    %20 = vector.load %arg4[%c0_32, %c0_33, %c0_34] : memref<9x8x8xbf16, #tpu.memory_space<vmem>>, vector<1x8x8xbf16>
    %21 = vector.shape_cast %20 : vector<1x8x8xbf16> to vector<8x8xbf16>
    %cst_35 = arith.constant dense<0.000000e+00> : vector<256x8xf32>
    %22 = tpu.matmul %19, %21, %cst_35 {dimension_numbers = #tpu.dot_dimension_numbers<[1], [0], [0], [1], [0, 0, 1, 1], [], []>} : vector<256x8xbf16>, vector<8x8xbf16>, vector<256x8xf32> -> vector<256x8xf32>
    %c0_36 = arith.constant 0 : index
    %c0_37 = arith.constant 0 : index
    %c1_38 = arith.constant 1 : index
    %c0_39 = arith.constant 0 : index
    %23 = vector.load %arg9[%c0_36, %c0_37, %c1_38, %c0_39] : memref<1x18x18x8xbf16, #tpu.memory_space<vmem>>, vector<1x16x16x8xbf16>
    %24 = vector.shape_cast %23 : vector<1x16x16x8xbf16> to vector<256x8xbf16>
    %c1_40 = arith.constant 1 : index
    %c0_41 = arith.constant 0 : index
    %c0_42 = arith.constant 0 : index
    %25 = vector.load %arg4[%c1_40, %c0_41, %c0_42] : memref<9x8x8xbf16, #tpu.memory_space<vmem>>, vector<1x8x8xbf16>
    %26 = vector.shape_cast %25 : vector<1x8x8xbf16> to vector<8x8xbf16>
    %cst_43 = arith.constant dense<0.000000e+00> : vector<256x8xf32>
    %27 = tpu.matmul %24, %26, %cst_43 {dimension_numbers = #tpu.dot_dimension_numbers<[1], [0], [0], [1], [0, 0, 1, 1], [], []>} : vector<256x8xbf16>, vector<8x8xbf16>, vector<256x8xf32> -> vector<256x8xf32>
    %28 = arith.addf %22, %27 : vector<256x8xf32>
    %c0_44 = arith.constant 0 : index
    %c0_45 = arith.constant 0 : index
    %c2 = arith.constant 2 : index
    %c0_46 = arith.constant 0 : index
    %29 = vector.load %arg9[%c0_44, %c0_45, %c2, %c0_46] : memref<1x18x18x8xbf16, #tpu.memory_space<vmem>>, vector<1x16x16x8xbf16>
    %30 = vector.shape_cast %29 : vector<1x16x16x8xbf16> to vector<256x8xbf16>
    %c2_47 = arith.constant 2 : index
    %c0_48 = arith.constant 0 : index
    %c0_49 = arith.constant 0 : index
    %31 = vector.load %arg4[%c2_47, %c0_48, %c0_49] : memref<9x8x8xbf16, #tpu.memory_space<vmem>>, vector<1x8x8xbf16>
    %32 = vector.shape_cast %31 : vector<1x8x8xbf16> to vector<8x8xbf16>
    %cst_50 = arith.constant dense<0.000000e+00> : vector<256x8xf32>
    %33 = tpu.matmul %30, %32, %cst_50 {dimension_numbers = #tpu.dot_dimension_numbers<[1], [0], [0], [1], [0, 0, 1, 1], [], []>} : vector<256x8xbf16>, vector<8x8xbf16>, vector<256x8xf32> -> vector<256x8xf32>
    %34 = arith.addf %28, %33 : vector<256x8xf32>
    %c0_51 = arith.constant 0 : index
    %c1_52 = arith.constant 1 : index
    %c0_53 = arith.constant 0 : index
    %c0_54 = arith.constant 0 : index
    %35 = vector.load %arg9[%c0_51, %c1_52, %c0_53, %c0_54] : memref<1x18x18x8xbf16, #tpu.memory_space<vmem>>, vector<1x16x16x8xbf16>
    %36 = vector.shape_cast %35 : vector<1x16x16x8xbf16> to vector<256x8xbf16>
    %c3 = arith.constant 3 : index
    %c0_55 = arith.constant 0 : index
    %c0_56 = arith.constant 0 : index
    %37 = vector.load %arg4[%c3, %c0_55, %c0_56] : memref<9x8x8xbf16, #tpu.memory_space<vmem>>, vector<1x8x8xbf16>
    %38 = vector.shape_cast %37 : vector<1x8x8xbf16> to vector<8x8xbf16>
    %cst_57 = arith.constant dense<0.000000e+00> : vector<256x8xf32>
    %39 = tpu.matmul %36, %38, %cst_57 {dimension_numbers = #tpu.dot_dimension_numbers<[1], [0], [0], [1], [0, 0, 1, 1], [], []>} : vector<256x8xbf16>, vector<8x8xbf16>, vector<256x8xf32> -> vector<256x8xf32>
    %40 = arith.addf %34, %39 : vector<256x8xf32>
    %c0_58 = arith.constant 0 : index
    %c1_59 = arith.constant 1 : index
    %c1_60 = arith.constant 1 : index
    %c0_61 = arith.constant 0 : index
    %41 = vector.load %arg9[%c0_58, %c1_59, %c1_60, %c0_61] : memref<1x18x18x8xbf16, #tpu.memory_space<vmem>>, vector<1x16x16x8xbf16>
    %42 = vector.shape_cast %41 : vector<1x16x16x8xbf16> to vector<256x8xbf16>
    %c4 = arith.constant 4 : index
    %c0_62 = arith.constant 0 : index
    %c0_63 = arith.constant 0 : index
    %43 = vector.load %arg4[%c4, %c0_62, %c0_63] : memref<9x8x8xbf16, #tpu.memory_space<vmem>>, vector<1x8x8xbf16>
    %44 = vector.shape_cast %43 : vector<1x8x8xbf16> to vector<8x8xbf16>
    %cst_64 = arith.constant dense<0.000000e+00> : vector<256x8xf32>
    %45 = tpu.matmul %42, %44, %cst_64 {dimension_numbers = #tpu.dot_dimension_numbers<[1], [0], [0], [1], [0, 0, 1, 1], [], []>} : vector<256x8xbf16>, vector<8x8xbf16>, vector<256x8xf32> -> vector<256x8xf32>
    %46 = arith.addf %40, %45 : vector<256x8xf32>
    %c0_65 = arith.constant 0 : index
    %c1_66 = arith.constant 1 : index
    %c2_67 = arith.constant 2 : index
    %c0_68 = arith.constant 0 : index
    %47 = vector.load %arg9[%c0_65, %c1_66, %c2_67, %c0_68] : memref<1x18x18x8xbf16, #tpu.memory_space<vmem>>, vector<1x16x16x8xbf16>
    %48 = vector.shape_cast %47 : vector<1x16x16x8xbf16> to vector<256x8xbf16>
    %c5 = arith.constant 5 : index
    %c0_69 = arith.constant 0 : index
    %c0_70 = arith.constant 0 : index
    %49 = vector.load %arg4[%c5, %c0_69, %c0_70] : memref<9x8x8xbf16, #tpu.memory_space<vmem>>, vector<1x8x8xbf16>
    %50 = vector.shape_cast %49 : vector<1x8x8xbf16> to vector<8x8xbf16>
    %cst_71 = arith.constant dense<0.000000e+00> : vector<256x8xf32>
    %51 = tpu.matmul %48, %50, %cst_71 {dimension_numbers = #tpu.dot_dimension_numbers<[1], [0], [0], [1], [0, 0, 1, 1], [], []>} : vector<256x8xbf16>, vector<8x8xbf16>, vector<256x8xf32> -> vector<256x8xf32>
    %52 = arith.addf %46, %51 : vector<256x8xf32>
    %c0_72 = arith.constant 0 : index
    %c2_73 = arith.constant 2 : index
    %c0_74 = arith.constant 0 : index
    %c0_75 = arith.constant 0 : index
    %53 = vector.load %arg9[%c0_72, %c2_73, %c0_74, %c0_75] : memref<1x18x18x8xbf16, #tpu.memory_space<vmem>>, vector<1x16x16x8xbf16>
    %54 = vector.shape_cast %53 : vector<1x16x16x8xbf16> to vector<256x8xbf16>
    %c6 = arith.constant 6 : index
    %c0_76 = arith.constant 0 : index
    %c0_77 = arith.constant 0 : index
    %55 = vector.load %arg4[%c6, %c0_76, %c0_77] : memref<9x8x8xbf16, #tpu.memory_space<vmem>>, vector<1x8x8xbf16>
    %56 = vector.shape_cast %55 : vector<1x8x8xbf16> to vector<8x8xbf16>
    %cst_78 = arith.constant dense<0.000000e+00> : vector<256x8xf32>
    %57 = tpu.matmul %54, %56, %cst_78 {dimension_numbers = #tpu.dot_dimension_numbers<[1], [0], [0], [1], [0, 0, 1, 1], [], []>} : vector<256x8xbf16>, vector<8x8xbf16>, vector<256x8xf32> -> vector<256x8xf32>
    %58 = arith.addf %52, %57 : vector<256x8xf32>
    %c0_79 = arith.constant 0 : index
    %c2_80 = arith.constant 2 : index
    %c1_81 = arith.constant 1 : index
    %c0_82 = arith.constant 0 : index
    %59 = vector.load %arg9[%c0_79, %c2_80, %c1_81, %c0_82] : memref<1x18x18x8xbf16, #tpu.memory_space<vmem>>, vector<1x16x16x8xbf16>
    %60 = vector.shape_cast %59 : vector<1x16x16x8xbf16> to vector<256x8xbf16>
    %c7 = arith.constant 7 : index
    %c0_83 = arith.constant 0 : index
    %c0_84 = arith.constant 0 : index
    %61 = vector.load %arg4[%c7, %c0_83, %c0_84] : memref<9x8x8xbf16, #tpu.memory_space<vmem>>, vector<1x8x8xbf16>
    %62 = vector.shape_cast %61 : vector<1x8x8xbf16> to vector<8x8xbf16>
    %cst_85 = arith.constant dense<0.000000e+00> : vector<256x8xf32>
    %63 = tpu.matmul %60, %62, %cst_85 {dimension_numbers = #tpu.dot_dimension_numbers<[1], [0], [0], [1], [0, 0, 1, 1], [], []>} : vector<256x8xbf16>, vector<8x8xbf16>, vector<256x8xf32> -> vector<256x8xf32>
    %64 = arith.addf %58, %63 : vector<256x8xf32>
    %c0_86 = arith.constant 0 : index
    %c2_87 = arith.constant 2 : index
    %c2_88 = arith.constant 2 : index
    %c0_89 = arith.constant 0 : index
    %65 = vector.load %arg9[%c0_86, %c2_87, %c2_88, %c0_89] : memref<1x18x18x8xbf16, #tpu.memory_space<vmem>>, vector<1x16x16x8xbf16>
    %66 = vector.shape_cast %65 : vector<1x16x16x8xbf16> to vector<256x8xbf16>
    %c8 = arith.constant 8 : index
    %c0_90 = arith.constant 0 : index
    %c0_91 = arith.constant 0 : index
    %67 = vector.load %arg4[%c8, %c0_90, %c0_91] : memref<9x8x8xbf16, #tpu.memory_space<vmem>>, vector<1x8x8xbf16>
    %68 = vector.shape_cast %67 : vector<1x8x8xbf16> to vector<8x8xbf16>
    %cst_92 = arith.constant dense<0.000000e+00> : vector<256x8xf32>
    %69 = tpu.matmul %66, %68, %cst_92 {dimension_numbers = #tpu.dot_dimension_numbers<[1], [0], [0], [1], [0, 0, 1, 1], [], []>} : vector<256x8xbf16>, vector<8x8xbf16>, vector<256x8xf32> -> vector<256x8xf32>
    %70 = arith.addf %64, %69 : vector<256x8xf32>
    %c0_93 = arith.constant 0 : index
    %c0_94 = arith.constant 0 : index
    %71 = vector.load %arg5[%c0_93, %c0_94] : memref<1x8xf32, #tpu.memory_space<vmem>>, vector<1x8xf32>
    %72 = vector.broadcast %71 : vector<1x8xf32> to vector<256x8xf32>
    %73 = arith.addf %70, %72 : vector<256x8xf32>
    %cst_95 = arith.constant 0.000000e+00 : f32
    %74 = vector.broadcast %cst_95 : f32 to vector<256x8xf32>
    %75 = arith.maximumf %73, %74 : vector<256x8xf32>
    %76 = arith.truncf %75 : vector<256x8xf32> to vector<256x8xbf16>
    %c0_96 = arith.constant 0 : index
    %c0_97 = arith.constant 0 : index
    %77 = vector.load %arg6[%c0_96, %c0_97] : memref<8x32xbf16, #tpu.memory_space<vmem>>, vector<8x32xbf16>
    %cst_98 = arith.constant dense<0.000000e+00> : vector<256x32xf32>
    %78 = tpu.matmul %76, %77, %cst_98 {dimension_numbers = #tpu.dot_dimension_numbers<[1], [0], [0], [1], [0, 0, 1, 1], [], []>} : vector<256x8xbf16>, vector<8x32xbf16>, vector<256x32xf32> -> vector<256x32xf32>
    %c0_99 = arith.constant 0 : index
    %c0_100 = arith.constant 0 : index
    %79 = vector.load %arg7[%c0_99, %c0_100] : memref<1x32xf32, #tpu.memory_space<vmem>>, vector<1x32xf32>
    %80 = vector.broadcast %79 : vector<1x32xf32> to vector<256x32xf32>
    %81 = arith.addf %78, %80 : vector<256x32xf32>
    %82 = vector.shape_cast %81 : vector<256x32xf32> to vector<1x16x16x32xf32>
    %c0_101 = arith.constant 0 : index
    %c0_102 = arith.constant 0 : index
    %c0_103 = arith.constant 0 : index
    %c0_104 = arith.constant 0 : index
    %83 = vector.load %arg1[%c0_101, %c0_102, %c0_103, %c0_104] : memref<1x16x16x32xbf16, #tpu.memory_space<vmem>>, vector<1x16x16x32xbf16>
    %84 = arith.extf %83 : vector<1x16x16x32xbf16> to vector<1x16x16x32xf32>
    %85 = arith.addf %82, %84 : vector<1x16x16x32xf32>
    %cst_105 = arith.constant 0.000000e+00 : f32
    %86 = vector.broadcast %cst_105 : f32 to vector<1x16x16x32xf32>
    %87 = arith.maximumf %85, %86 : vector<1x16x16x32xf32>
    %88 = arith.truncf %87 : vector<1x16x16x32xf32> to vector<1x16x16x32xbf16>
    %c0_106 = arith.constant 0 : index
    %c0_107 = arith.constant 0 : index
    %c0_108 = arith.constant 0 : index
    %c0_109 = arith.constant 0 : index
    %89 = vector.load %arg8[%c0_106, %c0_107, %c0_108, %c0_109] : memref<1x16x16x32xbf16, #tpu.memory_space<vmem>>, vector<1x16x16x32xbf16>
    tpu.vector_store %arg8[%c0_106, %c0_107, %c0_108, %c0_109], %88 {strides = array<i32>} : memref<1x16x16x32xbf16, #tpu.memory_space<vmem>>, vector<1x16x16x32xbf16>,
    return
  }
  func.func @transform_0(%arg0: i32) -> (i32, i32, i32, i32) {
    %c0_i32 = arith.constant 0 : i32
    %c0_i32_0 = arith.constant 0 : i32
    %c0_i32_1 = arith.constant 0 : i32
    %c0_i32_2 = arith.constant 0 : i32
    return %arg0, %c0_i32, %c0_i32_0, %c0_i32_1 : i32, i32, i32, i32
  }
  func.func @transform_1(%arg0: i32) -> (i32, i32) {
    %c0_i32 = arith.constant 0 : i32
    %c0_i32_0 = arith.constant 0 : i32
    %c0_i32_1 = arith.constant 0 : i32
    return %c0_i32, %c0_i32_0 : i32, i32
  }
  func.func @transform_2(%arg0: i32) -> (i32, i32) {
    %c0_i32 = arith.constant 0 : i32
    %c0_i32_0 = arith.constant 0 : i32
    %c0_i32_1 = arith.constant 0 : i32
    return %c0_i32, %c0_i32_0 : i32, i32
  }
  func.func @transform_3(%arg0: i32) -> (i32, i32, i32) {
    %c0_i32 = arith.constant 0 : i32
    %c0_i32_0 = arith.constant 0 : i32
    %c0_i32_1 = arith.constant 0 : i32
    %c0_i32_2 = arith.constant 0 : i32
    return %c0_i32, %c0_i32_0, %c0_i32_1 : i32, i32, i32
  }
  func.func @transform_4(%arg0: i32) -> (i32, i32) {
    %c0_i32 = arith.constant 0 : i32
    %c0_i32_0 = arith.constant 0 : i32
    %c0_i32_1 = arith.constant 0 : i32
    return %c0_i32, %c0_i32_0 : i32, i32
  }
  func.func @transform_5(%arg0: i32) -> (i32, i32) {
    %c0_i32 = arith.constant 0 : i32
    %c0_i32_0 = arith.constant 0 : i32
    %c0_i32_1 = arith.constant 0 : i32
    return %c0_i32, %c0_i32_0 : i32, i32
  }
  func.func @transform_6(%arg0: i32) -> (i32, i32) {
    %c0_i32 = arith.constant 0 : i32
    %c0_i32_0 = arith.constant 0 : i32
    %c0_i32_1 = arith.constant 0 : i32
    return %c0_i32, %c0_i32_0 : i32, i32
  }
  func.func @transform_7(%arg0: i32) -> (i32, i32, i32, i32) {
    %c0_i32 = arith.constant 0 : i32
    %c0_i32_0 = arith.constant 0 : i32
    %c0_i32_1 = arith.constant 0 : i32
    %c0_i32_2 = arith.constant 0 : i32
    return %arg0, %c0_i32, %c0_i32_0, %c0_i32_1 : i32, i32, i32, i32
  }
}

</mosaic_0001>

<bundles_post_ra>
// kernel: tpu_custom_call.1
= control target key start
LH: loop header
LB: loop body
LE: loop exit
PB: predicated region body
PF: predicated region fallthrough
CT: control target
= control target key end

     0   :  { %12 = vsyncpa [#allocation4], 0  ;;  %s10402_s0 = inlined_call_operand.hbm [shape: bf16[2,16,16,32], index: 0, kind: input, shape index: {}]   ;;  %s10403_s1 = inlined_call_operand.vmem [shape: bf16[32,8], index: 1, kind: input, shape index: {}]   ;;  %s10404_s2 = inlined_call_operand.vmem [shape: f32[1,8], index: 2, kind: input, shape index: {}]   ;;  %s10405_s3 = inlined_call_operand.vmem [shape: bf16[9,8,8], index: 3, kind: input, shape index: {}]   ;;  %s10406_s4 = inlined_call_operand.vmem [shape: f32[1,8], index: 4, kind: input, shape index: {}]   ;;  %s10407_s5 = inlined_call_operand.vmem [shape: bf16[8,32], index: 5, kind: input, shape index: {}]   ;;  %s10408_s6 = inlined_call_operand.vmem [shape: f32[1,32], index: 6, kind: input, shape index: {}]   ;;  %s10409_s7 = inlined_call_operand.hbm [shape: bf16[2,16,16,32], index: 7, kind: output, shape index: {}]  }
   0x1   :  { %14 = vsyncpa [#allocation4 + $0x1], 0 }
   0x2   :  { %15 = vsyncpa [#allocation5], 0 }
   0x3   :  { %17 = vsyncpa [#allocation5 + $0x1], 0  ;;  %s8321_s24 = smov 0   ;;  %s8323_s25 = smov 0  }
   0x4   :  { %s8325_s26 = smov 0   ;;  %s8327_s27 = smov 0  }
   0x5 LB: > { %s8342_s28 = sadd.s32 4294967295, %s8272_s27   ;;  %s6571_s29 = sadd.s32 4294967294, %s8272_s27   ;;  %s8272_s27 = sphi %s8327_s27, %s10530_s27   ;;  %s8268_s26 = sphi %s8325_s26, %s10529_s26   ;;  %s8264_s25 = sphi %s8323_s25, %s10528_s25   ;;  %s8260_s24 = sphi %s8321_s24, %s10527_s24  }
   0x6   : > { %s8346_s30 = sadd.s32 1, %s8272_s27   ;;  %s30_s8 = sadd.s32 1, %s8268_s26 }
   0x7   : > { %s27_s9 = ssub.s32 %s8272_s27, %s8346_s30  ;;  %p37_p0 = scmp.ne.s32.totalorder %s8268_s26, %s8264_s25 }
   0x8   : > { %p28_p1 = scmp.eq.s32.totalorder %s27_s9, 0  ;;  %p38_p2 = scmp.eq.s32.totalorder %s8272_s27, 0 }
   0x9   : > { %p43_p3 = scmp.ne.s32.totalorder %s8264_s25, %s8260_s24  ;;  %p44_p4 = scmp.eq.s32.totalorder %s8342_s28, 0 }
   0xa   : > { %s8358_s10 = scalar_select %p28_p1, %s8268_s26, %s30_s8  }
   0xb   : > { %p8360_p5 = por %p38_p2, %p37_p0  ;;  %p8364_p6 = por %p44_p4, %p43_p3 }
   0xc   : > { %p193_p7 = scmp.eq.s32.totalorder %s8342_s28, 1  ;;  %p199_p8 = scmp.eq.s32.totalorder %s6571_s29, 1 }
   0xd   : > { %p8036_p10 = scmp.lt.s32.totalorder %s8272_s27, 2  ;;  %s237_s15 = sand.u32 1, %s8268_s26  }
   0xe   : > { %p8371_p11 = por %p193_p7, %p37_p0  ;;  %p8375_p12 = por %p199_p8, %p43_p3 }
   0xf   : > { %s7046_s16 = sshll.u32 %s8272_s27, 11  ;;  %s6574_s17 = sshll.u32 %s237_s15, 7 }
  0x10   : > { %s10437_s13 = scalar_select %p8371_p11, 1, 0 }
  0x11   : > { %s10438_s14 = scalar_select %p8375_p12, 1, 0 }
  0x12   : > { %s8384_s20 = scalar_lea.hbm %s10402_s0, %s7046_s16  ;;  %s241_s21 = scalar_lea.vmem [#allocation3], %s6574_s17 }
  0x13   : > { %s248_s22 = sshll.u32 %s241_s21, 4  ;;  %p8388_p13 = pnand %p8036_p10, %p8360_p5  ;;  %s8392_s22 = int_to_ptr.vmem [resolvable:$true] %s248_s22 }
  0x14   : > { %s8394_s29 = scalar_lea.sflag [#allocation4], %s237_s15  ;;  %s8176_s8 = scalar_lea.hbm %s8384_s20, 2048 }
  0x15   : > { %p8177_p0 = scmp.ne.s32.totalorder %s8384_s20, %s8176_s8  ;;  %p8178_p1 = pneg %p8388_p13 }
  0x16   : > { %s8181_s16 = scalar_lea.hbm %s10402_s0, 4096  ;;  %p8182_p4 = scmp.lt.u32.totalorder %s8384_s20, %s10402_s0 }
  0x17   : > { %p8179_p2 = pnand %p8178_p1, %p8177_p0  ;;  %p8183_p5 = scmp.lt.u32.totalorder %s8181_s16, %s8176_s8 }
  0x18   : > { %p8185_p8 = scmp.lt.u32.totalorder %s8176_s8, %s8384_s20 }
  0x19   : > { %p8180_p3 = pneg %p8179_p2  ;;  %p8184_p7 = por %p8183_p5, %p8182_p4 }
  0x1b   : > { %p8186_p10 = por %p8185_p8, %p8184_p7 }
  0x1d   : > { %p8187_p9 = pnand %p8186_p10, %p8180_p3 }
  0x1f   : > { %8190 = shalt.err (!%p8187_p9)
}
  0x20   : > { %s8191_s15 = scalar_lea.vmem %s8392_s22, 2048  ;;  %s8274_s19 = smov [#allocation3]  }
  0x21   : > { %p8192_p0 = scmp.ne.s32.totalorder %s8392_s22, %s8191_s15  ;;  %s8196_s21 = sshll.u32 %s8274_s19, 4  ;;  %s8197_s21 = int_to_ptr.vmem [resolvable:$false] %s8196_s21 }
  0x22   : > { %s8198_s9 = scalar_lea.vmem %s8197_s21, 4096  ;;  %p8199_p11 = scmp.lt.s32.totalorder %s8392_s22, %s8197_s21 }
  0x23   : > { %p8194_p2 = pnand %p8192_p0, %p8178_p1  ;;  %p8200_p4 = scmp.lt.s32.totalorder %s8198_s9, %s8191_s15 }
  0x25   : > { %p8195_p12 = pneg %p8194_p2  ;;  %p8201_p5 = por %p8200_p4, %p8199_p11 }
  0x27   : > { %p8202_p7 = pnand %p8201_p5, %p8195_p12 }
  0x29   : > { %8205 = shalt.err (!%p8202_p7)
}
  0x2a   : > { %s8275_s8 = smov 64   ;;  %s8276_s11 = smov 4  }
  0x2b   : > { %8031 = dma.hbm_to_vmem [thread:$0]  (!%p8388_p13), %s8384_s20, 2048, %s8392_s22, %s8394_s29, %s8275_s8, %s8275_s8, %s8276_s11  }
  0x2c   : > { %p6577_p9 = scmp.ge.s32.totalorder %s8272_s27, 1  ;;  %p256_p1 = scmp.lt.s32.totalorder %s8272_s27, 3 }
  0x2e   : > { %p257_p3 = pnand %p6577_p9, %p256_p1 }
  0x30   : > { %260 = sbr.rel (%p257_p3) target bundleno = 1221 (0x4c5), region = 48 }
  0x37   : > { %s8425_s16 = sand.u32 1, %s8264_s25  }
  0x38   : > { %s6578_s17 = sshll.u32 %s8425_s16, 7  ;;  %s263_s18 = scalar_lea.sflag [#allocation4], %s8425_s16 }
  0x39   : > { %s8431_s15 = scalar_lea.vmem [#allocation3], %s6578_s17 }
  0x3a   : > { %8251 = dma.done.wait (%p8364_p6), %s263_s18, 2048  }
  0x3b   : > { %8253 = vsyncadd (%p8364_p6), %s263_s18, 4294965248  ;;  %v8075_v0 = vld [vmem:[%s10403_s1] sm:$0xff]   ;;  %v8076_v1 = vld [vmem:[%s10403_s1 + $0x8] sm:$0xff]   ;;  %vm433_vm0 = vcmask 261120   ;;  %vm678_vm1 = vcmask 57344   ;;  %v10440_v18 = vmov 0 }
  0x3c   : > { %7379 = vmatprep.subr.bf16.mxu0 %v8075_v0  ;;  %v8077_v2 = vld [vmem:[%s8431_s15] sm:$0xff]   ;;  %v8078_v3 = vld [vmem:[%s8431_s15 + $0x8] sm:$0xff]   ;;  %v8079_v4 = vld [vmem:[%s8431_s15 + $0x10] sm:$0xff]   ;;  %vm685_vm2 = vsmask.f32 256  ;;  %v10443_v23 = vmov 0 }
  0x3d   : > { %7380 = vmatpush3.bf16.msra.mxu0 %v8075_v0  ;;  %7383 = vmatprep.mubr.msk.bf16.mxu0 %vm433_vm0, %v8077_v2  ;;  %v8080_v5 = vld [vmem:[%s8431_s15 + $0x18] sm:$0xff]   ;;  %v8081_v6 = vld [vmem:[%s8431_s15 + $0x20] sm:$0xff]   ;;  %v8082_v7 = vld [vmem:[%s8431_s15 + $0x28] sm:$0xff]   ;;  %vm741_vm4 = vsmask.f32 7938  ;;  %vm675_vm6 = vcmask 60416  }
  0x3e   : > { %7381 = vmatprep.subr.bf16.mxu0 %v8076_v1  ;;  %v8083_v8 = vld [vmem:[%s8431_s15 + $0x30] sm:$0xff]   ;;  %v8084_v9 = vld [vmem:[%s8431_s15 + $0x38] sm:$0xff]   ;;  %v8085_v10 = vld [vmem:[%s8431_s15 + $0x40] sm:$0xff]   ;;  %v8277_v32 = vmov 0   ;;  %vm1865_vm7 = vcmask 1043456   ;;  %vm1816_vm11 = vcmask 64512  }
  0x3f   : > { %v8086_v11 = vld [vmem:[%s8431_s15 + $0x48] sm:$0xff]   ;;  %v8087_v12 = vld [vmem:[%s8431_s15 + $0x50] sm:$0xff]   ;;  %v8088_v13 = vld [vmem:[%s8431_s15 + $0x58] sm:$0xff]   ;;  %676 = vst.msk [vmem:[#allocation2] sm:$0xf] %vm675_vm6, %v8277_v32  ;;  %vm2370_vm15 = vcmask 1042432  }
  0x40   : > { %v8089_v14 = vld [vmem:[%s8431_s15 + $0x60] sm:$0xff]   ;;  %v8090_v15 = vld [vmem:[%s8431_s15 + $0x68] sm:$0xff]   ;;  %v8091_v16 = vld [vmem:[%s8431_s15 + $0x70] sm:$0xff]   ;;  %677 = vst.msk [vmem:[#allocation2 + $0x4] sm:$0xf] %vm675_vm6, %v8277_v32  ;;  %s10245_s19 = scalar_lea.vmem [#allocation6], %s6578_s17 }
  0x41   : > { %7382 = vmatpush3.bf16.msra.mxu0 %v8076_v1  ;;  %v8092_v17 = vld [vmem:[%s8431_s15 + $0x78] sm:$0xff]   ;;  %vm8477_vm3 = vmand %vm678_vm1, %vm685_vm2  ;;  %v693_v19 = vld [vmem:[#allocation2 + $0x18] sm:$0x1]  ;;  %679 = vst.msk [vmem:[#allocation2 + $0x8] sm:$0x1] %vm678_vm1, %v8277_v32  ;;  %s7111_s17 = sshll.u32 %s8342_s28, 11 }
  0x42   : > { %v10441_v18 = vsel %vm8477_vm3, 4294967295, %v10440_v18  ;;  %v694_v20 = vsel %vm8477_vm3, 0, %v693_v19  ;;  %v690_v21 = vld [vmem:[#allocation2 + $0xc] sm:$0x1]  ;;  %vm8487_vm5 = vmand %vm678_vm1, %vm741_vm4  ;;  %v749_v24 = vld [vmem:[#allocation2 + $0x20] sm:$0x1]  ;;  %s10350_s8 = scalar_lea.hbm %s10409_s7, %s7111_s17 }
  0x43   : > { %10442 = vst [vmem:[#allocation9_spill] sm:$0xff] %v10441_v18  ;;  %695 = vst [vmem:[#allocation2 + $0x18] sm:$0x1] %v694_v20  ;;  %v691_v22 = vsel %vm8477_vm3, 0, %v690_v21  ;;  %v10444_v23 = vsel %vm8487_vm5, 4294967295, %v10443_v23  ;;  %v750_v25 = vsel %vm8487_vm5, 0, %v749_v24 }
  0x44   : > { %7384 = vmatmul.mubr.msk.bf16.vlgmr.msra.gmra.mrb[0].mxu0 %vm433_vm0, %v8078_v3  ;;  %10445 = vst [vmem:[#allocation10_spill] sm:$0xff] %v10444_v23  ;;  %692 = vst [vmem:[#allocation2 + $0xc] sm:$0x1] %v691_v22  ;;  %v746_v26 = vld [vmem:[#allocation2 + $0x14] sm:$0x1]  ;;  %s6485_s28 = scalar_lea.sflag [#allocation5], %s8425_s16 }
  0x45   : > { %7387 = vmatprep.mubr.msk.bf16.mxu0 %vm433_vm0, %v8079_v4  ;;  %751 = vst [vmem:[#allocation2 + $0x20] sm:$0x1] %v750_v25  ;;  %v747_v27 = vsel %vm8487_vm5, 0, %v746_v26  ;;  %v699_v28 = vld [vmem:[#allocation2 + $0x30] sm:$0x1]  ;;  %vm8602_vm13 = vmand %vm675_vm6, %vm741_vm4  ;;  %p10524_p11 = scmp.ne.s32.totalorder %s10437_s13, 0 }
  0x46   : > { %748 = vst [vmem:[#allocation2 + $0x14] sm:$0x1] %v747_v27  ;;  %v700_v29 = vsel %vm8477_vm3, 0, %v699_v28  ;;  %v696_v30 = vld [vmem:[#allocation2 + $0x24] sm:$0x1]  ;;  %s8278_s18 = smov [#allocation6]  }
  0x47   : > { %701 = vst [vmem:[#allocation2 + $0x30] sm:$0x1] %v700_v29  ;;  %v697_v31 = vsel %vm8477_vm3, 0, %v696_v30  ;;  %681 = vst.msk [vmem:[#allocation2 + $0xcc] sm:$0xf] %vm675_vm6, %v8277_v32  ;;  %s8210_s20 = sshll.u32 %s8278_s18, 4  ;;  %s8211_s20 = int_to_ptr.vmem [resolvable:$false] %s8210_s20 }
  0x48   : > { %698 = vst [vmem:[#allocation2 + $0x24] sm:$0x1] %v697_v31  ;;  %682 = vst.msk [vmem:[#allocation2 + $0xd0] sm:$0xf] %vm675_vm6, %v8277_v32  ;;  %v755_v33 = vld [vmem:[#allocation2 + $0x38] sm:$0x1] }
  0x49   : > { %683 = vst.msk [vmem:[#allocation2 + $0xd4] sm:$0x1] %vm678_vm1, %v8277_v32  ;;  %v756_v34 = vsel %vm8487_vm5, 0, %v755_v33  ;;  %v752_v35 = vld [vmem:[#allocation2 + $0x2c] sm:$0x1]  ;;  %s8212_s22 = scalar_lea.vmem %s8211_s20, 4096 }
  0x4a   : > { %757 = vst [vmem:[#allocation2 + $0x38] sm:$0x1] %v756_v34  ;;  %v753_v36 = vsel %vm8487_vm5, 0, %v752_v35  ;;  %v705_v37 = vld [vmem:[#allocation2 + $0x48] sm:$0x1] }
  0x4b   : > { %754 = vst [vmem:[#allocation2 + $0x2c] sm:$0x1] %v753_v36  ;;  %v687_v38 = vld [vmem:[#allocation2] sm:$0x1]  ;;  %v706_v39 = vsel %vm8477_vm3, 0, %v705_v37 }
  0x4c   : > { %7388 = vmatmul.mubr.msk.bf16.gmra.mrb[4].mxu0 %vm433_vm0, %v8080_v5  ;;  %v702_v40 = vld [vmem:[#allocation2 + $0x3c] sm:$0x1]  ;;  %v688_v41 = vsel %vm8477_vm3, 0, %v687_v38  ;;  %707 = vst [vmem:[#allocation2 + $0x48] sm:$0x1] %v706_v39 }
  0x4d   : > { %7391 = vmatprep.mubr.msk.bf16.mxu0 %vm433_vm0, %v8081_v6  ;;  %v703_v42 = vsel %vm8477_vm3, 0, %v702_v40  ;;  %v761_v43 = vld [vmem:[#allocation2 + $0x50] sm:$0x1]  ;;  %689 = vst [vmem:[#allocation2] sm:$0x1] %v688_v41 }
  0x4e   : > { %704 = vst [vmem:[#allocation2 + $0x3c] sm:$0x1] %v703_v42  ;;  %v762_v44 = vsel %vm8487_vm5, 0, %v761_v43  ;;  %v758_v45 = vld [vmem:[#allocation2 + $0x44] sm:$0x1] }
  0x4f   : > { %763 = vst [vmem:[#allocation2 + $0x50] sm:$0x1] %v762_v44  ;;  %v743_v46 = vld [vmem:[#allocation2 + $0x8] sm:$0x1]  ;;  %v759_v47 = vsel %vm8487_vm5, 0, %v758_v45 }
  0x50   : > { %v744_v48 = vsel %vm8487_vm5, 0, %v743_v46  ;;  %760 = vst [vmem:[#allocation2 + $0x44] sm:$0x1] %v759_v47  ;;  %v711_v49 = vld [vmem:[#allocation2 + $0x60] sm:$0x1] }
  0x51   : > { %745 = vst [vmem:[#allocation2 + $0x8] sm:$0x1] %v744_v48  ;;  %v712_v51 = vsel %vm8477_vm3, 0, %v711_v49  ;;  %v708_v52 = vld [vmem:[#allocation2 + $0x54] sm:$0x1] }
  0x52   : > { %713 = vst [vmem:[#allocation2 + $0x60] sm:$0x1] %v712_v51  ;;  %v709_v54 = vsel %vm8477_vm3, 0, %v708_v52  ;;  %v767_v55 = vld [vmem:[#allocation2 + $0x68] sm:$0x1] }
  0x53   : > { %710 = vst [vmem:[#allocation2 + $0x54] sm:$0x1] %v709_v54  ;;  %v768_v57 = vsel %vm8487_vm5, 0, %v767_v55  ;;  %v764_v58 = vld [vmem:[#allocation2 + $0x5c] sm:$0x1] }
  0x54   : > { %7392 = vmatmul.mubr.msk.bf16.gmra.mrb[8].mxu0 %vm433_vm0, %v8082_v7  ;;  %v1330_v50 = vld [vmem:[#allocation2] sm:$0xf]  ;;  %v1331_v59 = vld [vmem:[#allocation2 + $0x4] sm:$0xf]  ;;  %769 = vst [vmem:[#allocation2 + $0x68] sm:$0x1] %v768_v57 }
  0x55   : > { %7395 = vmatprep.mubr.msk.bf16.mxu0 %vm433_vm0, %v8083_v8  ;;  %v1383_v53 = vshrl.u32 %v1330_v50, 16  ;;  %v1386_v56 = vshll.u32 %v1330_v50, 16  ;;  %v765_v61 = vsel %vm8487_vm5, 0, %v764_v58  ;;  %v6647_v62 = vld [vmem:[%s10405_s3 + $0x4] sm:$0xf]  ;;  %v1392_v2 = vshll.u32 %v1331_v59, 16 }
  0x56   : > { %766 = vst [vmem:[#allocation2 + $0x5c] sm:$0x1] %v765_v61  ;;  %8013 = vmatprep.subr.msk.bf16.mxu0 %vm1865_vm7, %v6647_v62  ;;  %v1867_v63 = vsel %vm1865_vm7, %v6647_v62, 0  ;;  %v1396_v3 = vshrl.u32 %v1331_v59, 16  ;;  %vm1379_vm8 = vsmask.f32 3328 }
  0x57   : > { %v1385_v60 = vrot.slane %v1383_v53, 4  ;;  %v1388_v1 = vrot.slane %v1386_v56, 5  ;;  %7416 = vmatpush3.bf16.msra.mxu0 %v1867_v63  ;;  %v717_v6 = vld [vmem:[#allocation2 + $0x78] sm:$0x1]  ;;  %vm1380_vm9 = vsmask.f32 7440 }
  0x58   : > { %v1363_v0 = vld [vmem:[#allocation2 + $0x8] sm:$0x1]  ;;  %v1394_v7 = vrot.slane %v1392_v2, 5  ;;  %v1398_v8 = vrot.slane %v1396_v3, 4  ;;  %vm8538_vm10 = vmor %vm1379_vm8, %vm1380_vm9  ;;  %v773_v19 = vld [vmem:[#allocation2 + $0x80] sm:$0x1] }
  0x59   : > { %v1402_v4 = vshll.u32 %v1363_v0, 16  ;;  %v1389_v5 = vor.u32 %v1388_v1, %v1385_v60  ;;  %v774_v20 = vsel %vm8487_vm5, 0, %v773_v19  ;;  %v770_v22 = vld [vmem:[#allocation2 + $0x74] sm:$0x1]  ;;  %v723_v26 = vld [vmem:[#allocation2 + $0x90] sm:$0x1] }
  0x5a   : > { %775 = vst [vmem:[#allocation2 + $0x80] sm:$0x1] %v774_v20  ;;  %v771_v25 = vsel %vm8487_vm5, 0, %v770_v22  ;;  %v724_v27 = vsel %vm8477_vm3, 0, %v723_v26  ;;  %v720_v28 = vld [vmem:[#allocation2 + $0x84] sm:$0x1] }
  0x5b   : > { %772 = vst [vmem:[#allocation2 + $0x74] sm:$0x1] %v771_v25  ;;  %725 = vst [vmem:[#allocation2 + $0x90] sm:$0x1] %v724_v27  ;;  %v779_v29 = vld [vmem:[#allocation2 + $0x98] sm:$0x1] }
  0x5c   : > { %7396 = vmatmul.mubr.msk.bf16.gmra.mrb[12].mxu0 %vm433_vm0, %v8084_v9  ;;  %v718_v9 = vsel %vm8477_vm3, 0, %v717_v6  ;;  %v721_v30 = vsel %vm8477_vm3, 0, %v720_v28  ;;  %v780_v31 = vsel %vm8487_vm5, 0, %v779_v29  ;;  %v776_v32 = vld [vmem:[#allocation2 + $0x8c] sm:$0x1] }
  0x5d   : > { %7399 = vmatprep.mubr.msk.bf16.mxu0 %vm433_vm0, %v8085_v10  ;;  %v714_v10 = vld [vmem:[#allocation2 + $0x6c] sm:$0x1]  ;;  %719 = vst [vmem:[#allocation2 + $0x78] sm:$0x1] %v718_v9  ;;  %722 = vst [vmem:[#allocation2 + $0x84] sm:$0x1] %v721_v30 }
  0x5e   : > { %781 = vst [vmem:[#allocation2 + $0x98] sm:$0x1] %v780_v31  ;;  %v777_v33 = vsel %vm8487_vm5, 0, %v776_v32  ;;  %v6761_v34 = vld [vmem:[%s10405_s3 + $0xc] sm:$0xf] }
  0x5f   : > { %778 = vst [vmem:[#allocation2 + $0x8c] sm:$0x1] %v777_v33  ;;  %v729_v35 = vld [vmem:[#allocation2 + $0xa8] sm:$0x1]  ;;  %8017 = vmatprep.subr.msk.bf16.mxu1 %vm1865_vm7, %v6761_v34  ;;  %v8566_v37 = vsel %vm1865_vm7, %v6761_v34, 0 }
  0x60   : > { %v730_v36 = vsel %vm8477_vm3, 0, %v729_v35  ;;  %10448 = vst [vmem:[#allocation11_spill] sm:$0xff] %v8566_v37  ;;  %v726_v38 = vld [vmem:[#allocation2 + $0x9c] sm:$0x1]  ;;  %v785_v39 = vld [vmem:[#allocation2 + $0xb0] sm:$0x1]  ;;  %7756 = vmatpush3.bf16.msra.mxu1 %v8566_v37 }
  0x61   : > { %731 = vst [vmem:[#allocation2 + $0xa8] sm:$0x1] %v730_v36  ;;  %v727_v40 = vsel %vm8477_vm3, 0, %v726_v38  ;;  %v786_v41 = vsel %vm8487_vm5, 0, %v785_v39  ;;  %v782_v42 = vld [vmem:[#allocation2 + $0xa4] sm:$0x1] }
  0x62   : > { %728 = vst [vmem:[#allocation2 + $0x9c] sm:$0x1] %v727_v40  ;;  %787 = vst [vmem:[#allocation2 + $0xb0] sm:$0x1] %v786_v41  ;;  %v8576_v43 = vld [vmem:[%s10405_s3 + $0x10] sm:$0xf] }
  0x63   : > { %v783_v44 = vsel %vm8487_vm5, 0, %v782_v42  ;;  %8018 = vmatprep.subr.msk.bf16.mxu1 %vm1865_vm7, %v8576_v43  ;;  %v735_v45 = vld [vmem:[#allocation2 + $0xc0] sm:$0x1]  ;;  %v732_v47 = vld [vmem:[#allocation2 + $0xb4] sm:$0x1] }
  0x64   : > { %7400 = vmatmul.mubr.msk.bf16.gmra.mrb[16].mxu0 %vm433_vm0, %v8086_v11  ;;  %v1390_v11 = vrot.slane %v1389_v5, 4  ;;  %784 = vst [vmem:[#allocation2 + $0xa4] sm:$0x1] %v783_v44  ;;  %v736_v46 = vsel %vm8477_vm3, 0, %v735_v45  ;;  %v733_v48 = vsel %vm8477_vm3, 0, %v732_v47 }
  0x65   : > { %7403 = vmatprep.mubr.msk.bf16.mxu0 %vm433_vm0, %v8087_v12  ;;  %v715_v12 = vsel %vm8477_vm3, 0, %v714_v10  ;;  %737 = vst [vmem:[#allocation2 + $0xc0] sm:$0x1] %v736_v46  ;;  %v791_v49 = vld [vmem:[#allocation2 + $0xc8] sm:$0x1] }
  0x66   : > { %716 = vst [vmem:[#allocation2 + $0x6c] sm:$0x1] %v715_v12  ;;  %734 = vst [vmem:[#allocation2 + $0xb4] sm:$0x1] %v733_v48  ;;  %v792_v50 = vsel %vm8487_vm5, 0, %v791_v49 }
  0x67   : > { %793 = vst [vmem:[#allocation2 + $0xc8] sm:$0x1] %v792_v50  ;;  %v788_v51 = vld [vmem:[#allocation2 + $0xbc] sm:$0x1]  ;;  %v8593_v53 = vld [vmem:[%s10404_s2] ss:$0 sm:$0xff] }
  0x68   : > { %v789_v52 = vsel %vm8487_vm5, 0, %v788_v51  ;;  %vm893_vm12 = vsmask.f32 4368  ;;  %v1225_v19 = vld [vmem:[#allocation2 + $0x18] sm:$0xf] }
  0x69   : > { %790 = vst [vmem:[#allocation2 + $0xbc] sm:$0x1] %v789_v52  ;;  %v1218_v28 = vld [vmem:[#allocation2 + $0xc] sm:$0xf]  ;;  %vm8609_vm14 = vmor %vm685_vm2, %vm893_vm12  ;;  %v1229_v35 = vld [vmem:[#allocation2 + $0x20] sm:$0x1] }
  0x6a   : > { %v1222_v42 = vld [vmem:[#allocation2 + $0x14] sm:$0x1]  ;;  %vm6451_vm2 = vcmask 257024  }
  0x6c   : > { %7404 = vmatmul.mubr.msk.bf16.gmra.mrb[20].mxu0 %vm433_vm0, %v8088_v13  ;;  %v1399_v13 = vor.u32 %v1398_v8, %v1394_v7 }
  0x6d   : > { %7407 = vmatprep.mubr.msk.bf16.mxu0 %vm433_vm0, %v8089_v14  ;;  %v1404_v14 = vrot.slane %v1402_v4, 5 }
  0x74   : > { %7408 = vmatmul.mubr.msk.bf16.gmra.mrb[24].mxu0 %vm433_vm0, %v8090_v15 }
  0x75   : > { %7411 = vmatprep.mubr.msk.bf16.mxu0 %vm433_vm0, %v8091_v16  ;;  %v1395_v16 = vsel %vm8538_vm10, %v1390_v11, %v1394_v7 }
  0x7c   : > { %7412 = vmatmul.mubr.msk.bf16.gmra.mrb[28].mxu0 %vm433_vm0, %v8092_v17  ;;  %v1400_v17 = vrot.slane %v1399_v13, 4  ;;  %vm2371_vm0 = vcmask 1046532  }
  0x7d   : > { %vm9245_vm1 = vmor %vm2370_vm15, %vm2371_vm0 }
  0x7e   : > { %v1405_v21 = vsel %vm8538_vm10, %v1400_v17, %v1404_v14 }
  0x7f   : > { %v6648_v24 = vcombine.low %v1395_v16, %v1405_v21 }
  0x81   : > { %7417 = vmatprep.mubr.msk.bf16.mxu0 %vm1816_vm11, %v6648_v24 }
 0x117   : > { %v7385_v54 = vpop.f32.mrb[0].mxu0 }
 0x118   : > { %v525_v55 = vadd.f32 %v7385_v54, %v8593_v53  ;;  %v516_v56 = vpop.f32.mrb[1].mxu0 }
 0x119   : > { %v517_v57 = vadd.f32 %v8593_v53, %v516_v56  ;;  %v7386_v58 = vpop.f32.mrb[2].mxu0 }
 0x11a   : > { %v645_v59 = vmax.f32 %v525_v55, 0.0  ;;  %v528_v60 = vadd.f32 %v7386_v58, %v8593_v53  ;;  %v519_v61 = vpop.f32.mrb[3].mxu0 }
 0x11b   : > { %v643_v62 = vmax.f32 %v517_v57, 0.0  ;;  %v520_v63 = vadd.f32 %v8593_v53, %v519_v61 }
 0x11c   : > { %v7049_v0 = vpack.c.bf16 %v645_v59, %v645_v59  ;;  %v646_v1 = vmax.f32 %v528_v60, 0.0 }
 0x11d   : > { %v7047_v2 = vpack.c.bf16 %v643_v62, %v643_v62  ;;  %v644_v3 = vmax.f32 %v520_v63, 0.0  ;;  %v1239_v63 = vld [vmem:[#allocation2 + $0x30] sm:$0xf] }
 0x11e   : > { %v913_v4 = vshrl.u32 %v7049_v0, 16  ;;  %v7050_v5 = vpack.c.bf16 %v646_v1, %v646_v1  ;;  %v916_v6 = vshll.u32 %v7049_v0, 16 }
 0x11f   : > { %v896_v7 = vshrl.u32 %v7047_v2, 16  ;;  %v899_v8 = vshll.u32 %v7047_v2, 16  ;;  %v7048_v9 = vpack.c.bf16 %v644_v3, %v644_v3  ;;  %v7389_v10 = vpop.f32.mrb[4].mxu0 }
 0x120   : > { %v915_v11 = vrot.slane %v913_v4, 7  ;;  %v921_v12 = vshrl.u32 %v7050_v5, 16  ;;  %v924_v13 = vshll.u32 %v7050_v5, 16  ;;  %v541_v14 = vadd.f32 %v7389_v10, %v8593_v53  ;;  %v532_v16 = vpop.f32.mrb[5].mxu0 }
 0x121   : > { %v898_v20 = vrot.slane %v896_v7, 7  ;;  %v904_v21 = vshrl.u32 %v7048_v9, 16  ;;  %v907_v22 = vshll.u32 %v7048_v9, 16  ;;  %v533_v24 = vadd.f32 %v8593_v53, %v532_v16  ;;  %v7390_v25 = vpop.f32.mrb[6].mxu0  ;;  %v1232_v7 = vld [vmem:[#allocation2 + $0x24] sm:$0xf] }
 0x122   : > { %v918_v26 = vor.u32 %v916_v6, %v915_v11  ;;  %v919_v27 = vrot.slane %v915_v11, 4  ;;  %v923_v29 = vrot.slane %v921_v12, 7  ;;  %v649_v30 = vmax.f32 %v541_v14, 0.0  ;;  %v535_v31 = vpop.f32.mrb[7].mxu0 }
 0x123   : > { %v901_v32 = vor.u32 %v899_v8, %v898_v20  ;;  %v902_v33 = vrot.slane %v898_v20, 4  ;;  %v906_v36 = vrot.slane %v904_v21, 7  ;;  %v647_v38 = vmax.f32 %v533_v24, 0.0 }
 0x124   : > { %v1226_v39 = vsel %vm8602_vm13, %v918_v26, %v1225_v19  ;;  %v926_v40 = vor.u32 %v924_v13, %v923_v29  ;;  %v928_v41 = vrot.slane %v923_v29, 4  ;;  %v7053_v44 = vpack.c.bf16 %v649_v30, %v649_v30  ;;  %v1243_v30 = vld [vmem:[#allocation2 + $0x38] sm:$0x1] }
 0x125   : > { %1227 = vst [vmem:[#allocation2 + $0x18] sm:$0xf] %v1226_v39  ;;  %v1219_v45 = vsel %vm8602_vm13, %v901_v32, %v1218_v28  ;;  %v909_v46 = vor.u32 %v907_v22, %v906_v36  ;;  %v911_v47 = vrot.slane %v906_v36, 4  ;;  %v7051_v48 = vpack.c.bf16 %v647_v38, %v647_v38 }
 0x126   : > { %1220 = vst [vmem:[#allocation2 + $0xc] sm:$0xf] %v1219_v45  ;;  %v927_v49 = vsel %vm8609_vm14, %v919_v27, %v926_v40  ;;  %v1230_v50 = vsel %vm8477_vm3, %v928_v41, %v1229_v35  ;;  %v947_v51 = vshrl.u32 %v7053_v44, 16  ;;  %v950_v55 = vshll.u32 %v7053_v44, 16 }
 0x127   : > { %1228 = vst.msk [vmem:[#allocation2 + $0x1c] sm:$0xf] %vm675_vm6, %v927_v49  ;;  %1231 = vst [vmem:[#allocation2 + $0x20] sm:$0x1] %v1230_v50  ;;  %v910_v52 = vsel %vm8609_vm14, %v902_v33, %v909_v46  ;;  %v1223_v54 = vsel %vm8477_vm3, %v911_v47, %v1222_v42  ;;  %v930_v56 = vshrl.u32 %v7051_v48, 16  ;;  %v7393_v57 = vpop.f32.mrb[8].mxu0  ;;  %v544_v59 = vadd.f32 %v7390_v25, %v8593_v53 }
 0x128   : > { %1221 = vst.msk [vmem:[#allocation2 + $0x10] sm:$0xf] %vm675_vm6, %v910_v52  ;;  %1224 = vst [vmem:[#allocation2 + $0x14] sm:$0x1] %v1223_v54  ;;  %v8627_v58 = vrot.slane %v947_v51, 7  ;;  %v536_v60 = vadd.f32 %v8593_v53, %v535_v31  ;;  %v557_v61 = vadd.f32 %v7393_v57, %v8593_v53  ;;  %v548_v62 = vpop.f32.mrb[9].mxu0 }
 0x129   : > { %v932_v0 = vrot.slane %v930_v56, 7  ;;  %v933_v1 = vshll.u32 %v7051_v48, 16  ;;  %v549_v2 = vadd.f32 %v8593_v53, %v548_v62  ;;  %v7394_v3 = vpop.f32.mrb[10].mxu0  ;;  %v8635_v4 = vsel %vm1865_vm7, %v8576_v43, 0  ;;  %v1236_v31 = vld [vmem:[#allocation2 + $0x2c] sm:$0x1] }
 0x12a   : > { %v952_v5 = vor.u32 %v950_v55, %v8627_v58  ;;  %v953_v6 = vrot.slane %v8627_v58, 4  ;;  %v650_v8 = vmax.f32 %v544_v59, 0.0  ;;  %v648_v9 = vmax.f32 %v536_v60, 0.0  ;;  %v551_v10 = vpop.f32.mrb[11].mxu0  ;;  %v1253_v46 = vld [vmem:[#allocation2 + $0x48] sm:$0xf] }
 0x12b   : > { %v935_v11 = vor.u32 %v933_v1, %v932_v0  ;;  %v936_v12 = vrot.slane %v932_v0, 4  ;;  %v653_v13 = vmax.f32 %v557_v61, 0.0  ;;  %v651_v14 = vmax.f32 %v549_v2, 0.0  ;;  %v1246_v56 = vld [vmem:[#allocation2 + $0x3c] sm:$0xf] }
 0x12c   : > { %v1240_v16 = vsel %vm8602_vm13, %v952_v5, %v1239_v63  ;;  %v7054_v19 = vpack.c.bf16 %v650_v8, %v650_v8  ;;  %v7052_v20 = vpack.c.bf16 %v648_v9, %v648_v9  ;;  %v560_v43 = vadd.f32 %v7394_v3, %v8593_v53 }
 0x12d   : > { %1241 = vst [vmem:[#allocation2 + $0x30] sm:$0xf] %v1240_v16  ;;  %v1233_v21 = vsel %vm8602_vm13, %v935_v11, %v1232_v7  ;;  %v7057_v22 = vpack.c.bf16 %v653_v13, %v653_v13  ;;  %v7055_v24 = vpack.c.bf16 %v651_v14, %v651_v14  ;;  %v552_v25 = vadd.f32 %v8593_v53, %v551_v10 }
 0x12e   : > { %1234 = vst [vmem:[#allocation2 + $0x24] sm:$0xf] %v1233_v21  ;;  %v955_v26 = vshrl.u32 %v7054_v19, 16  ;;  %v958_v27 = vshll.u32 %v7054_v19, 16  ;;  %v938_v28 = vshrl.u32 %v7052_v20, 16  ;;  %v941_v29 = vshll.u32 %v7052_v20, 16 }
 0x12f   : > { %v981_v32 = vshrl.u32 %v7057_v22, 16  ;;  %v984_v33 = vshll.u32 %v7057_v22, 16  ;;  %v964_v35 = vshrl.u32 %v7055_v24, 16  ;;  %v967_v36 = vshll.u32 %v7055_v24, 16  ;;  %v7397_v38 = vpop.f32.mrb[12].mxu0 }
 0x130   : > { %v957_v39 = vrot.slane %v955_v26, 7  ;;  %v940_v40 = vrot.slane %v938_v28, 7  ;;  %v654_v41 = vmax.f32 %v560_v43, 0.0  ;;  %v652_v42 = vmax.f32 %v552_v25, 0.0  ;;  %v564_v44 = vpop.f32.mrb[13].mxu0 }
 0x131   : > { %v8645_v45 = vrot.slane %v981_v32, 7  ;;  %v8647_v47 = vrot.slane %v964_v35, 7  ;;  %v573_v48 = vadd.f32 %v7397_v38, %v8593_v53  ;;  %v565_v49 = vadd.f32 %v8593_v53, %v564_v44  ;;  %v7398_v50 = vpop.f32.mrb[14].mxu0  ;;  %v1257_v19 = vld [vmem:[#allocation2 + $0x50] sm:$0x1] }
 0x132   : > { %v960_v51 = vor.u32 %v958_v27, %v957_v39  ;;  %v962_v52 = vrot.slane %v957_v39, 4  ;;  %v943_v54 = vor.u32 %v941_v29, %v940_v40  ;;  %v945_v55 = vrot.slane %v940_v40, 4  ;;  %v567_v57 = vpop.f32.mrb[15].mxu0  ;;  %v1250_v20 = vld [vmem:[#allocation2 + $0x44] sm:$0x1] }
 0x133   : > { %v986_v58 = vor.u32 %v984_v33, %v8645_v45  ;;  %v987_v59 = vrot.slane %v8645_v45, 4  ;;  %v969_v60 = vor.u32 %v967_v36, %v8647_v47  ;;  %v970_v61 = vrot.slane %v8647_v47, 4 }
 0x134   : > { %v961_v62 = vsel %vm8609_vm14, %v953_v6, %v960_v51  ;;  %v1244_v63 = vsel %vm8477_vm3, %v962_v52, %v1243_v30  ;;  %v944_v0 = vsel %vm8609_vm14, %v936_v12, %v943_v54  ;;  %v1237_v1 = vsel %vm8477_vm3, %v945_v55, %v1236_v31  ;;  %v1267_v52 = vld [vmem:[#allocation2 + $0x60] sm:$0xf]  ;;  %v1260_v54 = vld [vmem:[#allocation2 + $0x54] sm:$0xf] }
 0x135   : > { %1242 = vst.msk [vmem:[#allocation2 + $0x34] sm:$0xf] %vm675_vm6, %v961_v62  ;;  %1245 = vst [vmem:[#allocation2 + $0x38] sm:$0x1] %v1244_v63  ;;  %v1254_v2 = vsel %vm8602_vm13, %v986_v58, %v1253_v46  ;;  %v1247_v3 = vsel %vm8602_vm13, %v969_v60, %v1246_v56  ;;  %v7058_v5 = vpack.c.bf16 %v654_v41, %v654_v41  ;;  %v657_v7 = vmax.f32 %v573_v48, 0.0 }
 0x136   : > { %1235 = vst.msk [vmem:[#allocation2 + $0x28] sm:$0xf] %vm675_vm6, %v944_v0  ;;  %1238 = vst [vmem:[#allocation2 + $0x2c] sm:$0x1] %v1237_v1  ;;  %v7056_v6 = vpack.c.bf16 %v652_v42, %v652_v42  ;;  %v655_v8 = vmax.f32 %v565_v49, 0.0  ;;  %v576_v9 = vadd.f32 %v7398_v50, %v8593_v53  ;;  %v568_v10 = vadd.f32 %v8593_v53, %v567_v57 }
 0x137   : > { %1255 = vst [vmem:[#allocation2 + $0x48] sm:$0xf] %v1254_v2  ;;  %1248 = vst [vmem:[#allocation2 + $0x3c] sm:$0xf] %v1247_v3  ;;  %v989_v11 = vshrl.u32 %v7058_v5, 16  ;;  %v992_v12 = vshll.u32 %v7058_v5, 16  ;;  %v7061_v43 = vpack.c.bf16 %v657_v7, %v657_v7 }
 0x138   : > { %v972_v13 = vshrl.u32 %v7056_v6, 16  ;;  %v975_v14 = vshll.u32 %v7056_v6, 16  ;;  %v7401_v16 = vpop.f32.mrb[16].mxu0  ;;  %v7059_v21 = vpack.c.bf16 %v655_v8, %v655_v8  ;;  %v658_v22 = vmax.f32 %v576_v9, 0.0  ;;  %v1362_v42 = vld [vmem:[%s10405_s3] sm:$0xf] }
 0x139   : > { %v656_v24 = vmax.f32 %v568_v10, 0.0  ;;  %v580_v25 = vpop.f32.mrb[17].mxu0  ;;  %v991_v26 = vrot.slane %v989_v11, 7  ;;  %v589_v28 = vadd.f32 %v7401_v16, %v8593_v53  ;;  %v1015_v31 = vshrl.u32 %v7061_v43, 16  ;;  %8014 = vmatprep.subr.msk.bf16.mxu0 %vm1865_vm7, %v1362_v42  ;;  %v1271_v8 = vld [vmem:[#allocation2 + $0x68] sm:$0x1] }
 0x13a   : > { %v974_v27 = vrot.slane %v972_v13, 7  ;;  %v581_v29 = vadd.f32 %v8593_v53, %v580_v25  ;;  %v7402_v30 = vpop.f32.mrb[18].mxu0  ;;  %v1018_v32 = vshll.u32 %v7061_v43, 16  ;;  %v998_v33 = vshrl.u32 %v7059_v21, 16  ;;  %v1264_v13 = vld [vmem:[#allocation2 + $0x5c] sm:$0x1] }
 0x13b   : > { %v1001_v35 = vshll.u32 %v7059_v21, 16  ;;  %v583_v36 = vpop.f32.mrb[19].mxu0  ;;  %v994_v38 = vor.u32 %v992_v12, %v991_v26  ;;  %v996_v39 = vrot.slane %v991_v26, 4  ;;  %v1017_v44 = vrot.slane %v1015_v31, 7  ;;  %v1333_v26 = vld [vmem:[#allocation2 + $0x10] sm:$0xf] }
 0x13c   : > { %v977_v40 = vor.u32 %v975_v14, %v974_v27  ;;  %v979_v41 = vrot.slane %v974_v27, 4  ;;  %v1000_v45 = vrot.slane %v998_v33, 7  ;;  %v7062_v46 = vpack.c.bf16 %v658_v22, %v658_v22 }
 0x13d   : > { %v7060_v47 = vpack.c.bf16 %v656_v24, %v656_v24  ;;  %v995_v48 = vsel %vm8609_vm14, %v987_v59, %v994_v38  ;;  %v1258_v49 = vsel %vm8477_vm3, %v996_v39, %v1257_v19  ;;  %v1020_v55 = vor.u32 %v1018_v32, %v1017_v44  ;;  %v1332_v59 = vld [vmem:[#allocation2 + $0xc] sm:$0xf] }
 0x13e   : > { %v978_v50 = vsel %vm8609_vm14, %v970_v61, %v977_v40  ;;  %v1251_v51 = vsel %vm8477_vm3, %v979_v41, %v1250_v20  ;;  %1256 = vst.msk [vmem:[#allocation2 + $0x4c] sm:$0xf] %vm675_vm6, %v995_v48  ;;  %1259 = vst [vmem:[#allocation2 + $0x50] sm:$0x1] %v1258_v49  ;;  %v1021_v56 = vrot.slane %v1017_v44, 4  ;;  %v1003_v57 = vor.u32 %v1001_v35, %v1000_v45 }
 0x13f   : > { %1249 = vst.msk [vmem:[#allocation2 + $0x40] sm:$0xf] %vm675_vm6, %v978_v50  ;;  %1252 = vst [vmem:[#allocation2 + $0x44] sm:$0x1] %v1251_v51  ;;  %v1004_v58 = vrot.slane %v1000_v45, 4  ;;  %v1023_v60 = vshrl.u32 %v7062_v46, 16  ;;  %v1268_v1 = vsel %vm8602_vm13, %v1020_v55, %v1267_v52  ;;  %v592_v10 = vadd.f32 %v7402_v30, %v8593_v53 }
 0x140   : > { %v1026_v62 = vshll.u32 %v7062_v46, 16  ;;  %v1006_v63 = vshrl.u32 %v7060_v47, 16  ;;  %v1009_v61 = vshll.u32 %v7060_v47, 16  ;;  %v8687_v0 = vpop.f32.mrb[20].mxu0  ;;  %v1261_v2 = vsel %vm8602_vm13, %v1003_v57, %v1260_v54  ;;  %1269 = vst [vmem:[#allocation2 + $0x60] sm:$0xf] %v1268_v1 }
 0x141   : > { %v661_v3 = vmax.f32 %v589_v28, 0.0  ;;  %v659_v5 = vmax.f32 %v581_v29, 0.0  ;;  %v8693_v6 = vpop.f32.mrb[21].mxu0  ;;  %1262 = vst [vmem:[#allocation2 + $0x54] sm:$0xf] %v1261_v2  ;;  %v1025_v7 = vrot.slane %v1023_v60, 7  ;;  %v584_v11 = vadd.f32 %v8593_v53, %v583_v36 }
 0x142   : > { %v1008_v9 = vrot.slane %v1006_v63, 7  ;;  %v8697_v12 = vpop.f32.mrb[22].mxu0  ;;  %v1407_v19 = vshrl.u32 %v1332_v59, 16  ;;  %v1410_v20 = vshll.u32 %v1332_v59, 16  ;;  %v1281_v36 = vld [vmem:[#allocation2 + $0x78] sm:$0xf] }
 0x143   : > { %v7065_v14 = vpack.c.bf16 %v661_v3, %v661_v3  ;;  %v7063_v16 = vpack.c.bf16 %v659_v5, %v659_v5  ;;  %v8699_v43 = vpop.f32.mrb[23].mxu0  ;;  %v1028_v21 = vor.u32 %v1026_v62, %v1025_v7  ;;  %v1030_v22 = vrot.slane %v1025_v7, 4  ;;  %v1274_v38 = vld [vmem:[#allocation2 + $0x6c] sm:$0xf]  ;;  %v1364_v44 = vld [vmem:[#allocation2 + $0x14] sm:$0x1] }
 0x144   : > { %v1011_v24 = vor.u32 %v1009_v61, %v1008_v9  ;;  %v1013_v25 = vrot.slane %v1008_v9, 4  ;;  %v662_v41 = vmax.f32 %v592_v10, 0.0  ;;  %v660_v42 = vmax.f32 %v584_v11, 0.0  ;;  %v1334_v60 = vld [vmem:[#allocation2 + $0x18] sm:$0xf] }
 0x145   : > { %v1049_v27 = vshrl.u32 %v7065_v14, 16  ;;  %v1052_v28 = vshll.u32 %v7065_v14, 16  ;;  %v1032_v29 = vshrl.u32 %v7063_v16, 16  ;;  %v1035_v30 = vshll.u32 %v7063_v16, 16  ;;  %v1335_v3 = vld [vmem:[#allocation2 + $0x1c] sm:$0xf] }
 0x146   : > { %v1029_v31 = vsel %vm8609_vm14, %v1021_v56, %v1028_v21  ;;  %v1272_v32 = vsel %vm8477_vm3, %v1030_v22, %v1271_v8  ;;  %v1012_v33 = vsel %vm8609_vm14, %v1004_v58, %v1011_v24  ;;  %v1265_v35 = vsel %vm8477_vm3, %v1013_v25, %v1264_v13  ;;  %v1285_v11 = vld [vmem:[#allocation2 + $0x80] sm:$0x1]  ;;  %v1278_v13 = vld [vmem:[#allocation2 + $0x74] sm:$0x1]  ;;  %v9069_v23 = vld [vmem:[#allocation2 + $0x4c] sm:$0xf] }
 0x147   : > { %1270 = vst.msk [vmem:[#allocation2 + $0x64] sm:$0xf] %vm675_vm6, %v1029_v31  ;;  %1273 = vst [vmem:[#allocation2 + $0x68] sm:$0x1] %v1272_v32  ;;  %v8711_v39 = vrot.slane %v1049_v27, 7  ;;  %v8713_v40 = vrot.slane %v1032_v29, 7  ;;  %v7066_v56 = vpack.c.bf16 %v662_v41, %v662_v41  ;;  %v7064_v57 = vpack.c.bf16 %v660_v42, %v660_v42 }
 0x148   : > { %1263 = vst.msk [vmem:[#allocation2 + $0x58] sm:$0xf] %vm675_vm6, %v1012_v33  ;;  %1266 = vst [vmem:[#allocation2 + $0x5c] sm:$0x1] %v1265_v35  ;;  %v1409_v45 = vrot.slane %v1407_v19, 4  ;;  %v1412_v46 = vrot.slane %v1410_v20, 5 }
 0x149   : > { %v1416_v47 = vshll.u32 %v1333_v26, 16  ;;  %v1420_v48 = vshrl.u32 %v1333_v26, 16  ;;  %v8715_v49 = vpop.f32.mrb[24].mxu0  ;;  %v1054_v50 = vor.u32 %v1052_v28, %v8711_v39  ;;  %v1055_v51 = vrot.slane %v8711_v39, 4 }
 0x14a   : > { %v1037_v52 = vor.u32 %v1035_v30, %v8713_v40  ;;  %v1038_v54 = vrot.slane %v8713_v40, 4  ;;  %v8721_v55 = vpop.f32.mrb[25].mxu0  ;;  %v1413_v58 = vor.u32 %v1412_v46, %v1409_v45  ;;  %v1426_v2 = vshll.u32 %v1364_v44, 16  ;;  %v6843_v46 = vld [vmem:[%s10405_s3 + $0x14] sm:$0xf] }
 0x14b   : > { %v1418_v59 = vrot.slane %v1416_v47, 5  ;;  %v8723_v62 = vpop.f32.mrb[26].mxu0  ;;  %v1282_v63 = vsel %vm8602_vm13, %v1054_v50, %v1281_v36  ;;  %v1422_v1 = vrot.slane %v1420_v48, 4  ;;  %v1057_v7 = vshrl.u32 %v7066_v56, 16  ;;  %v1365_v36 = vld [vmem:[#allocation2 + $0x20] sm:$0x1] }
 0x14c   : > { %v1275_v61 = vsel %vm8602_vm13, %v1037_v52, %v1274_v38  ;;  %v8729_v5 = vpop.f32.mrb[27].mxu0  ;;  %1283 = vst [vmem:[#allocation2 + $0x78] sm:$0xf] %v1282_v63  ;;  %v1060_v8 = vshll.u32 %v7066_v56, 16  ;;  %v1040_v9 = vshrl.u32 %v7064_v57, 16  ;;  %v1043_v10 = vshll.u32 %v7064_v57, 16 }
 0x14d   : > { %1276 = vst [vmem:[#allocation2 + $0x6c] sm:$0xf] %v1275_v61  ;;  %v1414_v14 = vrot.slane %v1413_v58, 4  ;;  %v1423_v16 = vor.u32 %v1422_v1, %v1418_v59  ;;  %v1428_v19 = vrot.slane %v1426_v2, 5  ;;  %v1431_v20 = vshrl.u32 %v1334_v60, 16 }
 0x14e   : > { %v1059_v21 = vrot.slane %v1057_v7, 7  ;;  %v1042_v22 = vrot.slane %v1040_v9, 7  ;;  %v1434_v24 = vshll.u32 %v1334_v60, 16  ;;  %v1440_v25 = vshll.u32 %v1335_v3, 16  ;;  %v8094_v38 = vld [vmem:[#allocation2 + $0x60] sm:$0xff]  }
 0x14f   : > { %v1419_v26 = vsel %vm8538_vm10, %v1414_v14, %v1418_v59  ;;  %v1424_v27 = vrot.slane %v1423_v16, 4  ;;  %v1433_v28 = vrot.slane %v1431_v20, 4  ;;  %v1444_v29 = vshrl.u32 %v1335_v3, 16  ;;  %v8093_v30 = vld [vmem:[#allocation2 + $0x54] sm:$0xff]   ;;  %v8733_v39 = vpop.f32.mrb[28].mxu0 }
 0x150   : > { %v1062_v31 = vor.u32 %v1060_v8, %v1059_v21  ;;  %v1064_v32 = vrot.slane %v1059_v21, 4  ;;  %v1045_v33 = vor.u32 %v1043_v10, %v1042_v22  ;;  %v1047_v35 = vrot.slane %v1042_v22, 4  ;;  %7531 = vmatprep.mubr.msk.bf16.mxu1 %vm1816_vm11, %v8093_v30  ;;  %v8738_v45 = vpop.f32.mrb[29].mxu0  ;;  %v1336_v56 = vld [vmem:[#allocation2 + $0x24] sm:$0xf] }
 0x151   : > { %v1429_v40 = vsel %vm8538_vm10, %v1424_v27, %v1428_v19  ;;  %v1436_v41 = vrot.slane %v1434_v24, 5  ;;  %v1442_v42 = vrot.slane %v1440_v25, 5  ;;  %v1446_v44 = vrot.slane %v1444_v29, 4  ;;  %7532 = vmatmul.mubr.msk.bf16.vlgmr.msra.gmra.mrb[0].mxu1 %vm1816_vm11, %v8094_v38  ;;  %v8752_v57 = vpop.f32.mrb[30].mxu0  ;;  %v1366_v24 = vld [vmem:[#allocation2 + $0x2c] sm:$0x1] }
 0x152   : > { %v1063_v47 = vsel %vm8609_vm14, %v1055_v51, %v1062_v31  ;;  %v1286_v48 = vsel %vm8477_vm3, %v1064_v32, %v1285_v11  ;;  %v1046_v50 = vsel %vm8609_vm14, %v1038_v54, %v1045_v33  ;;  %v1279_v52 = vsel %vm8477_vm3, %v1047_v35, %v1278_v13  ;;  %7552 = vmatpush3.bf16.msra.mxu1 %v8635_v4  ;;  %v8757_v54 = vpop.f32.mrb[31].mxu0  ;;  %v1337_v13 = vld [vmem:[#allocation2 + $0x28] sm:$0xf]  ;;  %v1295_v32 = vld [vmem:[#allocation2 + $0x90] sm:$0xf] }
 0x153   : > { %1284 = vst.msk [vmem:[#allocation2 + $0x7c] sm:$0xf] %vm675_vm6, %v1063_v47  ;;  %1287 = vst [vmem:[#allocation2 + $0x80] sm:$0x1] %v1286_v48  ;;  %v6649_v51 = vcombine.low %v1419_v26, %v1429_v40  ;;  %v1437_v58 = vor.u32 %v1436_v41, %v1433_v28  ;;  %v1447_v59 = vor.u32 %v1446_v44, %v1442_v42  ;;  %v1450_v60 = vshll.u32 %v1365_v36, 16 }
 0x154   : > { %1277 = vst.msk [vmem:[#allocation2 + $0x70] sm:$0xf] %vm675_vm6, %v1046_v50  ;;  %1280 = vst [vmem:[#allocation2 + $0x74] sm:$0x1] %v1279_v52  ;;  %v605_v63 = vadd.f32 %v8687_v0, %v8593_v53  ;;  %v597_v61 = vadd.f32 %v8593_v53, %v8693_v6  ;;  %v608_v1 = vadd.f32 %v8697_v12, %v8593_v53  ;;  %8019 = vmatprep.subr.msk.bf16.mxu1 %vm1865_vm7, %v6843_v46  ;;  %v1288_v48 = vld [vmem:[#allocation2 + $0x84] sm:$0xf] }
 0x155   : > { %v600_v2 = vadd.f32 %v8593_v53, %v8699_v43  ;;  %7418 = vmatmul.mubr.msk.bf16.vlgmr.msra.gmra.mrb[32].mxu0 %vm1816_vm11, %v6649_v51  ;;  %v1438_v3 = vrot.slane %v1437_v58, 4  ;;  %v1448_v4 = vrot.slane %v1447_v59, 4  ;;  %v1452_v7 = vrot.slane %v1450_v60, 5 }
 0x156   : > { %v1455_v8 = vshrl.u32 %v1336_v56, 16  ;;  %v665_v9 = vmax.f32 %v605_v63, 0.0  ;;  %v663_v10 = vmax.f32 %v597_v61, 0.0  ;;  %v666_v0 = vmax.f32 %v608_v1, 0.0  ;;  %v1299_v61 = vld [vmem:[#allocation2 + $0x98] sm:$0x1] }
 0x157   : > { %v664_v11 = vmax.f32 %v600_v2, 0.0  ;;  %v1443_v6 = vsel %vm8538_vm10, %v1438_v3, %v1442_v42  ;;  %v1453_v12 = vsel %vm8538_vm10, %v1448_v4, %v1452_v7  ;;  %v1458_v14 = vshll.u32 %v1336_v56, 16  ;;  %v1292_v1 = vld [vmem:[#allocation2 + $0x8c] sm:$0x1] }
 0x158   : > { %v1457_v43 = vrot.slane %v1455_v8, 4  ;;  %v6650_v16 = vcombine.low %v1443_v6, %v1453_v12  ;;  %v7069_v19 = vpack.c.bf16 %v665_v9, %v665_v9  ;;  %v7067_v20 = vpack.c.bf16 %v663_v10, %v663_v10  ;;  %v1338_v8 = vld [vmem:[#allocation2 + $0x30] sm:$0xf]  ;;  %v1367_v6 = vld [vmem:[#allocation2 + $0x38] sm:$0x1] }
 0x159   : > { %v7070_v21 = vpack.c.bf16 %v666_v0, %v666_v0  ;;  %v7068_v22 = vpack.c.bf16 %v664_v11, %v664_v11  ;;  %v1460_v25 = vrot.slane %v1458_v14, 5  ;;  %v1464_v26 = vshll.u32 %v1337_v13, 16 }
 0x15a   : > { %v1468_v27 = vshrl.u32 %v1337_v13, 16  ;;  %7421 = vmatprep.mubr.msk.bf16.mxu0 %vm1816_vm11, %v6650_v16  ;;  %v1083_v28 = vshrl.u32 %v7069_v19, 16  ;;  %v1086_v29 = vshll.u32 %v7069_v19, 16  ;;  %v1066_v30 = vshrl.u32 %v7067_v20, 16  ;;  %v8096_v47 = vld [vmem:[#allocation2 + $0x78] sm:$0xff]  }
 0x15b   : > { %v1069_v31 = vshll.u32 %v7067_v20, 16  ;;  %v1091_v33 = vshrl.u32 %v7070_v21, 16  ;;  %v1094_v35 = vshll.u32 %v7070_v21, 16  ;;  %v1074_v36 = vshrl.u32 %v7068_v22, 16  ;;  %v8095_v40 = vld [vmem:[#allocation2 + $0x6c] sm:$0xff]  }
 0x15c   : > { %v1077_v38 = vshll.u32 %v7068_v22, 16  ;;  %v1085_v41 = vrot.slane %v1083_v28, 7  ;;  %v1068_v42 = vrot.slane %v1066_v30, 7  ;;  %v1461_v44 = vor.u32 %v1460_v25, %v1457_v43  ;;  %7535 = vmatprep.mubr.msk.bf16.mxu1 %vm1816_vm11, %v8095_v40  ;;  %v1339_v13 = vld [vmem:[#allocation2 + $0x34] sm:$0xf] }
 0x15d   : > { %v1466_v46 = vrot.slane %v1464_v26, 5  ;;  %v1093_v50 = vrot.slane %v1091_v33, 7  ;;  %v1076_v52 = vrot.slane %v1074_v36, 7  ;;  %v1470_v56 = vrot.slane %v1468_v27, 4  ;;  %7536 = vmatmul.mubr.msk.bf16.gmra.mrb[4].mxu1 %vm1816_vm11, %v8096_v47 }
 0x15e   : > { %v1474_v51 = vshll.u32 %v1366_v24, 16  ;;  %v1088_v58 = vor.u32 %v1086_v29, %v1085_v41  ;;  %v1089_v59 = vrot.slane %v1085_v41, 4  ;;  %v1071_v60 = vor.u32 %v1069_v31, %v1068_v42  ;;  %v1340_v24 = vld [vmem:[#allocation2 + $0x3c] sm:$0xf] }
 0x15f   : > { %v1072_v63 = vrot.slane %v1068_v42, 4  ;;  %v1096_v2 = vor.u32 %v1094_v35, %v1093_v50  ;;  %v1098_v3 = vrot.slane %v1093_v50, 4  ;;  %v1079_v4 = vor.u32 %v1077_v38, %v1076_v52 }
 0x160   : > { %v1081_v7 = vrot.slane %v1076_v52, 4  ;;  %v1296_v9 = vsel %vm8602_vm13, %v1088_v58, %v1295_v32  ;;  %v1289_v10 = vsel %vm8602_vm13, %v1071_v60, %v1288_v48  ;;  %v1462_v0 = vrot.slane %v1461_v44, 4 }
 0x161   : > { %v1471_v11 = vor.u32 %v1470_v56, %v1466_v46  ;;  %1297 = vst [vmem:[#allocation2 + $0x90] sm:$0xf] %v1296_v9  ;;  %1290 = vst [vmem:[#allocation2 + $0x84] sm:$0xf] %v1289_v10  ;;  %v1097_v12 = vsel %vm8609_vm14, %v1089_v59, %v1096_v2  ;;  %v1300_v43 = vsel %vm8477_vm3, %v1098_v3, %v1299_v61  ;;  %v1476_v21 = vrot.slane %v1474_v51, 5 }
 0x162   : > { %v1080_v14 = vsel %vm8609_vm14, %v1072_v63, %v1079_v4  ;;  %v1293_v16 = vsel %vm8477_vm3, %v1081_v7, %v1292_v1  ;;  %1298 = vst.msk [vmem:[#allocation2 + $0x94] sm:$0xf] %vm675_vm6, %v1097_v12  ;;  %1301 = vst [vmem:[#allocation2 + $0x98] sm:$0x1] %v1300_v43  ;;  %v1467_v19 = vsel %vm8538_vm10, %v1462_v0, %v1466_v46  ;;  %v1479_v22 = vshrl.u32 %v1338_v8, 16 }
 0x163   : > { %1291 = vst.msk [vmem:[#allocation2 + $0x88] sm:$0xf] %vm675_vm6, %v1080_v14  ;;  %1294 = vst [vmem:[#allocation2 + $0x8c] sm:$0x1] %v1293_v16  ;;  %v1472_v20 = vrot.slane %v1471_v11, 4  ;;  %v1482_v25 = vshll.u32 %v1338_v8, 16  ;;  %v621_v31 = vadd.f32 %v8715_v49, %v8593_v53  ;;  %v613_v32 = vadd.f32 %v8593_v53, %v8721_v55 }
 0x164   : > { %v1488_v26 = vshll.u32 %v1339_v13, 16  ;;  %v1492_v27 = vshrl.u32 %v1339_v13, 16  ;;  %v1498_v28 = vshll.u32 %v1367_v6, 16  ;;  %v1481_v30 = vrot.slane %v1479_v22, 4  ;;  %v1302_v4 = vld [vmem:[#allocation2 + $0x9c] sm:$0xf] }
 0x165   : > { %v1477_v29 = vsel %vm8538_vm10, %v1472_v20, %v1476_v21  ;;  %v1484_v35 = vrot.slane %v1482_v25, 5  ;;  %v669_v41 = vmax.f32 %v621_v31, 0.0  ;;  %v667_v42 = vmax.f32 %v613_v32, 0.0  ;;  %v8807_v13 = vld [vmem:[#allocation2 + $0x40] sm:$0xf] }
 0x166   : > { %v6651_v33 = vcombine.low %v1467_v19, %v1477_v29  ;;  %v1490_v36 = vrot.slane %v1488_v26, 5  ;;  %v1494_v38 = vrot.slane %v1492_v27, 4  ;;  %v1500_v40 = vrot.slane %v1498_v28, 5  ;;  %v1368_v19 = vld [vmem:[#allocation2 + $0x44] sm:$0x1] }
 0x167   : > { %v624_v44 = vadd.f32 %v8723_v62, %v8593_v53  ;;  %v1485_v46 = vor.u32 %v1484_v35, %v1481_v30  ;;  %v616_v49 = vadd.f32 %v8593_v53, %v8729_v5  ;;  %v1503_v48 = vshrl.u32 %v1340_v24, 16  ;;  %v1309_v5 = vld [vmem:[#allocation2 + $0xa8] sm:$0xf]  ;;  %v1313_v31 = vld [vmem:[#allocation2 + $0xb0] sm:$0x1] }
 0x168   : > { %7422 = vmatmul.mubr.msk.bf16.gmra.mrb[36].mxu0 %vm1816_vm11, %v6651_v33  ;;  %v1495_v47 = vor.u32 %v1494_v38, %v1490_v36  ;;  %v7073_v50 = vpack.c.bf16 %v669_v41, %v669_v41  ;;  %v7071_v55 = vpack.c.bf16 %v667_v42, %v667_v42  ;;  %v1506_v56 = vshll.u32 %v1340_v24, 16  ;;  %v1306_v32 = vld [vmem:[#allocation2 + $0xa4] sm:$0x1]  ;;  %v8818_v42 = vld [vmem:[#allocation2 + $0x48] sm:$0xf] }
 0x169   : > { %v670_v52 = vmax.f32 %v624_v44, 0.0  ;;  %v1486_v51 = vrot.slane %v1485_v46, 4  ;;  %v668_v59 = vmax.f32 %v616_v49, 0.0  ;;  %v1505_v60 = vrot.slane %v1503_v48, 4  ;;  %v8098_v9 = vld [vmem:[#allocation2 + $0x90] sm:$0xff]  }
 0x16a   : > { %v1496_v58 = vrot.slane %v1495_v47, 4  ;;  %v1117_v63 = vshrl.u32 %v7073_v50, 16  ;;  %v1120_v61 = vshll.u32 %v7073_v50, 16  ;;  %v1100_v1 = vshrl.u32 %v7071_v55, 16  ;;  %v8097_v2 = vld [vmem:[#allocation2 + $0x84] sm:$0xff]  }
 0x16b   : > { %v1103_v62 = vshll.u32 %v7071_v55, 16  ;;  %v1491_v3 = vsel %vm8538_vm10, %v1486_v51, %v1490_v36  ;;  %v7074_v7 = vpack.c.bf16 %v670_v52, %v670_v52  ;;  %v7072_v8 = vpack.c.bf16 %v668_v59, %v668_v59  ;;  %7539 = vmatprep.mubr.msk.bf16.mxu1 %vm1816_vm11, %v8097_v2  ;;  %v8820_v44 = vld [vmem:[#allocation2 + $0x4c] sm:$0xf]  ;;  %v1369_v50 = vld [vmem:[#allocation2 + $0x50] sm:$0x1] }
 0x16c   : > { %v1501_v53 = vsel %vm8538_vm10, %v1496_v58, %v1500_v40  ;;  %v1119_v0 = vrot.slane %v1117_v63, 7  ;;  %v1102_v11 = vrot.slane %v1100_v1, 7  ;;  %v1508_v6 = vrot.slane %v1506_v56, 5  ;;  %7540 = vmatmul.mubr.msk.bf16.gmra.mrb[8].mxu1 %vm1816_vm11, %v8098_v9  ;;  %v8134_v2 = vld [vmem:[%s10404_s2] ss:$0 sm:$0xff] }
 0x16d   : > { %v6652_v10 = vcombine.low %v1491_v3, %v1501_v53  ;;  %v1125_v12 = vshrl.u32 %v7074_v7, 16  ;;  %v1128_v43 = vshll.u32 %v7074_v7, 16  ;;  %v1108_v14 = vshrl.u32 %v7072_v8, 16 }
 0x16e   : > { %v1111_v16 = vshll.u32 %v7072_v8, 16  ;;  %v1122_v20 = vor.u32 %v1120_v61, %v1119_v0  ;;  %v1123_v21 = vrot.slane %v1119_v0, 4  ;;  %v1105_v22 = vor.u32 %v1103_v62, %v1102_v11  ;;  %v8843_v8 = vld [vmem:[#allocation2 + $0x54] sm:$0xf] }
 0x16f   : > { %7425 = vmatprep.mubr.msk.bf16.mxu0 %vm1816_vm11, %v6652_v10  ;;  %v1106_v24 = vrot.slane %v1102_v11, 4  ;;  %v1127_v25 = vrot.slane %v1125_v12, 7  ;;  %v1110_v26 = vrot.slane %v1108_v14, 7  ;;  %v1509_v27 = vor.u32 %v1508_v6, %v1505_v60 }
 0x170   : > { %v1512_v28 = vshll.u32 %v8807_v13, 16  ;;  %v1310_v29 = vsel %vm8602_vm13, %v1122_v20, %v1309_v5  ;;  %v1303_v30 = vsel %vm8602_vm13, %v1105_v22, %v1302_v4  ;;  %v1516_v33 = vshrl.u32 %v8807_v13, 16 }
 0x171   : > { %v1522_v35 = vshll.u32 %v1368_v19, 16  ;;  %1311 = vst [vmem:[#allocation2 + $0xa8] sm:$0xf] %v1310_v29  ;;  %1304 = vst [vmem:[#allocation2 + $0x9c] sm:$0xf] %v1303_v30  ;;  %v1130_v36 = vor.u32 %v1128_v43, %v1127_v25  ;;  %v1132_v38 = vrot.slane %v1127_v25, 4  ;;  %v1113_v40 = vor.u32 %v1111_v16, %v1110_v26 }
 0x172   : > { %v1115_v41 = vrot.slane %v1110_v26, 4  ;;  %v1510_v46 = vrot.slane %v1509_v27, 4  ;;  %v1514_v47 = vrot.slane %v1512_v28, 5  ;;  %v1518_v49 = vrot.slane %v1516_v33, 4 }
 0x173   : > { %v1524_v48 = vrot.slane %v1522_v35, 5  ;;  %v1131_v55 = vsel %vm8609_vm14, %v1123_v21, %v1130_v36  ;;  %v1314_v52 = vsel %vm8477_vm3, %v1132_v38, %v1313_v31  ;;  %v1114_v56 = vsel %vm8609_vm14, %v1106_v24, %v1113_v40  ;;  %v1323_v35 = vld [vmem:[#allocation2 + $0xc0] sm:$0xf] }
 0x174   : > { %v1307_v51 = vsel %vm8477_vm3, %v1115_v41, %v1306_v32  ;;  %1312 = vst.msk [vmem:[#allocation2 + $0xac] sm:$0xf] %vm675_vm6, %v1131_v55  ;;  %1315 = vst [vmem:[#allocation2 + $0xb0] sm:$0x1] %v1314_v52  ;;  %v1515_v58 = vsel %vm8538_vm10, %v1510_v46, %v1514_v47  ;;  %v1519_v59 = vor.u32 %v1518_v49, %v1514_v47  ;;  %v1527_v60 = vshrl.u32 %v8818_v42, 16 }
 0x175   : > { %1305 = vst.msk [vmem:[#allocation2 + $0xa0] sm:$0xf] %vm675_vm6, %v1114_v56  ;;  %1308 = vst [vmem:[#allocation2 + $0xa4] sm:$0x1] %v1307_v51  ;;  %v1530_v63 = vshll.u32 %v8818_v42, 16  ;;  %v1536_v61 = vshll.u32 %v8820_v44, 16  ;;  %v637_v3 = vadd.f32 %v8134_v2, %v8733_v39  ;;  %v629_v7 = vadd.f32 %v8134_v2, %v8738_v45 }
 0x176   : > { %v1540_v1 = vshrl.u32 %v8820_v44, 16  ;;  %v1546_v62 = vshll.u32 %v1369_v50, 16  ;;  %v1520_v53 = vrot.slane %v1519_v59, 4  ;;  %v1529_v5 = vrot.slane %v1527_v60, 4  ;;  %v1316_v52 = vld [vmem:[#allocation2 + $0xb4] sm:$0xf] }
 0x177   : > { %v1532_v4 = vrot.slane %v1530_v63, 5  ;;  %v1538_v9 = vrot.slane %v1536_v61, 5  ;;  %v673_v11 = vmax.f32 %v637_v3, 0.0  ;;  %v671_v43 = vmax.f32 %v629_v7, 0.0  ;;  %v1327_v63 = vld [vmem:[#allocation2 + $0xc8] sm:$0x1] }
 0x178   : > { %v1542_v10 = vrot.slane %v1540_v1, 4  ;;  %v1548_v0 = vrot.slane %v1546_v62, 5  ;;  %v1525_v6 = vsel %vm8538_vm10, %v1520_v53, %v1524_v48  ;;  %v640_v14 = vadd.f32 %v8134_v2, %v8752_v57  ;;  %v8855_v48 = vld [vmem:[#allocation2 + $0x58] sm:$0xf] }
 0x179   : > { %v1533_v12 = vor.u32 %v1532_v4, %v1529_v5  ;;  %v6653_v16 = vcombine.low %v1515_v58, %v1525_v6  ;;  %v7077_v19 = vpack.c.bf16 %v673_v11, %v673_v11  ;;  %v632_v20 = vadd.f32 %v8134_v2, %v8757_v54  ;;  %v1370_v2 = vld [vmem:[#allocation2 + $0x5c] sm:$0x1] }
 0x17a   : > { %v1543_v39 = vor.u32 %v1542_v10, %v1538_v9  ;;  %v7075_v45 = vpack.c.bf16 %v671_v43, %v671_v43  ;;  %v674_v22 = vmax.f32 %v640_v14, 0.0  ;;  %v1551_v24 = vshrl.u32 %v8843_v8, 16  ;;  %v8869_v14 = vld [vmem:[#allocation2 + $0x64] sm:$0xf] }
 0x17b   : > { %v1534_v21 = vrot.slane %v1533_v12, 4  ;;  %7426 = vmatmul.mubr.msk.bf16.gmra.mrb[40].mxu0 %vm1816_vm11, %v6653_v16  ;;  %v1151_v26 = vshrl.u32 %v7077_v19, 16  ;;  %v1154_v27 = vshll.u32 %v7077_v19, 16  ;;  %v672_v28 = vmax.f32 %v632_v20, 0.0  ;;  %v8100_v40 = vld [vmem:[#allocation2 + $0xa8] sm:$0xff]  }
 0x17c   : > { %v1544_v25 = vrot.slane %v1543_v39, 4  ;;  %v1134_v57 = vshrl.u32 %v7075_v45, 16  ;;  %v1137_v30 = vshll.u32 %v7075_v45, 16  ;;  %v7078_v31 = vpack.c.bf16 %v674_v22, %v674_v22  ;;  %v8099_v32 = vld [vmem:[#allocation2 + $0x9c] sm:$0xff]   ;;  %v1371_v20 = vld [vmem:[#allocation2 + $0x68] sm:$0x1] }
 0x17d   : > { %v1539_v29 = vsel %vm8538_vm10, %v1534_v21, %v1538_v9  ;;  %v1153_v33 = vrot.slane %v1151_v26, 7  ;;  %v7076_v36 = vpack.c.bf16 %v672_v28, %v672_v28  ;;  %v1553_v38 = vrot.slane %v1551_v24, 4  ;;  %7543 = vmatprep.mubr.msk.bf16.mxu1 %vm1816_vm11, %v8099_v32  ;;  %v1320_v9 = vld [vmem:[#allocation2 + $0xbc] sm:$0x1]  ;;  %v8887_v32 = vld [vmem:[#allocation2 + $0x70] sm:$0xf] }
 0x17e   : > { %v1549_v54 = vsel %vm8538_vm10, %v1544_v25, %v1548_v0  ;;  %v1136_v46 = vrot.slane %v1134_v57, 7  ;;  %v1159_v47 = vshrl.u32 %v7078_v31, 16  ;;  %v1162_v49 = vshll.u32 %v7078_v31, 16  ;;  %7544 = vmatmul.mubr.msk.bf16.gmra.mrb[12].mxu1 %vm1816_vm11, %v8100_v40  ;;  %v8867_v0 = vld [vmem:[#allocation2 + $0x60] sm:$0xf] }
 0x17f   : > { %v6654_v41 = vcombine.low %v1539_v29, %v1549_v54  ;;  %v1156_v50 = vor.u32 %v1154_v27, %v1153_v33  ;;  %v1157_v55 = vrot.slane %v1153_v33, 4  ;;  %v1142_v56 = vshrl.u32 %v7076_v36, 16  ;;  %v8881_v25 = vld [vmem:[#allocation2 + $0x6c] sm:$0xf]  ;;  %v8889_v54 = vld [vmem:[#allocation2 + $0x78] sm:$0xf] }
 0x180   : > { %v1145_v51 = vshll.u32 %v7076_v36, 16  ;;  %v1139_v58 = vor.u32 %v1137_v30, %v1136_v46  ;;  %v1140_v59 = vrot.slane %v1136_v46, 4  ;;  %v1161_v60 = vrot.slane %v1159_v47, 7 }
 0x181   : > { %7429 = vmatprep.mubr.msk.bf16.mxu0 %vm1816_vm11, %v6654_v41  ;;  %v1554_v61 = vshll.u32 %v8843_v8, 16  ;;  %v1324_v1 = vsel %vm8602_vm13, %v1156_v50, %v1323_v35  ;;  %v1144_v62 = vrot.slane %v1142_v56, 7  ;;  %v1560_v3 = vshll.u32 %v8855_v48, 16 }
 0x182   : > { %v1564_v53 = vshrl.u32 %v8855_v48, 16  ;;  %1325 = vst [vmem:[#allocation2 + $0xc0] sm:$0xf] %v1324_v1  ;;  %v1317_v5 = vsel %vm8602_vm13, %v1139_v58, %v1316_v52  ;;  %v1164_v4 = vor.u32 %v1162_v49, %v1161_v60  ;;  %v1166_v7 = vrot.slane %v1161_v60, 4 }
 0x183   : > { %v1556_v10 = vrot.slane %v1554_v61, 5  ;;  %1318 = vst [vmem:[#allocation2 + $0xb4] sm:$0xf] %v1317_v5  ;;  %v1147_v11 = vor.u32 %v1145_v51, %v1144_v62  ;;  %v1149_v6 = vrot.slane %v1144_v62, 4  ;;  %v1562_v12 = vrot.slane %v1560_v3, 5 }
 0x184   : > { %v1566_v43 = vrot.slane %v1564_v53, 4  ;;  %v1165_v16 = vsel %vm8609_vm14, %v1157_v55, %v1164_v4  ;;  %v1328_v17 = vsel %vm8477_vm3, %v1166_v7, %v1327_v63  ;;  %v1570_v19 = vshll.u32 %v1370_v2, 16  ;;  %v8898_v51 = vld [vmem:[#allocation2 + $0x7c] sm:$0xf]  ;;  %v1373_v61 = vld [vmem:[#allocation2 + $0x80] sm:$0x1] }
 0x185   : > { %v1557_v39 = vor.u32 %v1556_v10, %v1553_v38  ;;  %1326 = vst.msk [vmem:[#allocation2 + $0xc4] sm:$0xf] %vm675_vm6, %v1165_v16  ;;  %1329 = vst [vmem:[#allocation2 + $0xc8] sm:$0x1] %v1328_v17  ;;  %v1148_v21 = vsel %vm8609_vm14, %v1140_v59, %v1147_v11  ;;  %v1321_v45 = vsel %vm8477_vm3, %v1149_v6, %v1320_v9  ;;  %v1575_v24 = vshrl.u32 %v8867_v0, 16 }
 0x186   : > { %v1567_v22 = vor.u32 %v1566_v43, %v1562_v12  ;;  %1319 = vst.msk [vmem:[#allocation2 + $0xb8] sm:$0xf] %vm675_vm6, %v1148_v21  ;;  %1322 = vst [vmem:[#allocation2 + $0xbc] sm:$0x1] %v1321_v45  ;;  %v1572_v27 = vrot.slane %v1570_v19, 5  ;;  %v1578_v28 = vshll.u32 %v8867_v0, 16 }
 0x187   : > { %v1558_v26 = vrot.slane %v1557_v39, 4  ;;  %v1584_v29 = vshll.u32 %v8869_v14, 16  ;;  %v1577_v34 = vrot.slane %v1575_v24, 4  ;;  %v1588_v30 = vshrl.u32 %v8869_v14, 16  ;;  %v1372_v38 = vld [vmem:[#allocation2 + $0x74] sm:$0x1] }
 0x188   : > { %v1568_v57 = vrot.slane %v1567_v22, 4  ;;  %v1594_v31 = vshll.u32 %v1371_v20, 16  ;;  %v1580_v35 = vrot.slane %v1578_v28, 5  ;;  %v1599_v40 = vshrl.u32 %v8881_v25, 16  ;;  %v8907_v43 = vld [vmem:[#allocation2 + $0x84] sm:$0xf] }
 0x189   : > { %v1563_v33 = vsel %vm8538_vm10, %v1558_v26, %v1562_v12  ;;  %v1586_v36 = vrot.slane %v1584_v29, 5  ;;  %v1590_v46 = vrot.slane %v1588_v30, 4  ;;  %v1602_v49 = vshll.u32 %v8881_v25, 16  ;;  %v8912_v21 = vld [vmem:[#allocation2 + $0x88] sm:$0xf] }
 0x18a   : > { %v1573_v41 = vsel %vm8538_vm10, %v1568_v57, %v1572_v27  ;;  %v1596_v47 = vrot.slane %v1594_v31, 5  ;;  %v1581_v55 = vor.u32 %v1580_v35, %v1577_v34  ;;  %v1601_v52 = vrot.slane %v1599_v40, 4  ;;  %v1374_v57 = vld [vmem:[#allocation2 + $0x8c] sm:$0x1] }
 0x18b   : > { %v6655_v50 = vcombine.low %v1563_v33, %v1573_v41  ;;  %v1608_v56 = vshll.u32 %v8887_v32, 16  ;;  %v1591_v58 = vor.u32 %v1590_v46, %v1586_v36  ;;  %v1604_v59 = vrot.slane %v1602_v49, 5 }
 0x18c   : > { %v1612_v60 = vshrl.u32 %v8887_v32, 16  ;;  %v1618_v63 = vshll.u32 %v1372_v38, 16  ;;  %v1582_v1 = vrot.slane %v1581_v55, 4  ;;  %v1623_v2 = vshrl.u32 %v8889_v54, 16  ;;  %v8102_v16 = vld [vmem:[#allocation2 + $0xc0] sm:$0xff]  }
 0x18d   : > { %7430 = vmatmul.mubr.msk.bf16.gmra.mrb[44].mxu0 %vm1816_vm11, %v6655_v50  ;;  %v1610_v62 = vrot.slane %v1608_v56, 5  ;;  %v1626_v3 = vshll.u32 %v8889_v54, 16  ;;  %v1592_v53 = vrot.slane %v1591_v58, 4  ;;  %v1605_v5 = vor.u32 %v1604_v59, %v1601_v52  ;;  %v8101_v9 = vld [vmem:[#allocation2 + $0xb4] sm:$0xff]  }
 0x18e   : > { %v1614_v4 = vrot.slane %v1612_v60, 4  ;;  %v1620_v7 = vrot.slane %v1618_v63, 5  ;;  %v1587_v10 = vsel %vm8538_vm10, %v1582_v1, %v1586_v36  ;;  %v1625_v11 = vrot.slane %v1623_v2, 4  ;;  %7547 = vmatprep.mubr.msk.bf16.mxu1 %vm1816_vm11, %v8101_v9  ;;  %v8922_v36 = vld [vmem:[#allocation2 + $0x90] sm:$0xf] }
 0x18f   : > { %v1628_v6 = vrot.slane %v1626_v3, 5  ;;  %v1632_v12 = vshll.u32 %v8898_v51, 16  ;;  %v1597_v17 = vsel %vm8538_vm10, %v1592_v53, %v1596_v47  ;;  %v1606_v39 = vrot.slane %v1605_v5, 4  ;;  %7548 = vmatmul.mubr.msk.bf16.gmra.mrb[16].mxu1 %vm1816_vm11, %v8102_v16  ;;  %v8927_v47 = vld [vmem:[#allocation2 + $0x94] sm:$0xf] }
 0x190   : > { %v1615_v19 = vor.u32 %v1614_v4, %v1610_v62  ;;  %v1636_v20 = vshrl.u32 %v8898_v51, 16  ;;  %v6656_v45 = vcombine.low %v1587_v10, %v1597_v17  ;;  %v1642_v26 = vshll.u32 %v1373_v61, 16  ;;  %v1375_v60 = vld [vmem:[#allocation2 + $0x98] sm:$0x1]  ;;  %v8936_v3 = vld [vmem:[#allocation2 + $0x9c] sm:$0xf] }
 0x191   : > { %v1629_v22 = vor.u32 %v1628_v6, %v1625_v11  ;;  %v1634_v24 = vrot.slane %v1632_v12, 5  ;;  %v1611_v27 = vsel %vm8538_vm10, %v1606_v39, %v1610_v62  ;;  %v1647_v34 = vshrl.u32 %v8907_v43, 16  ;;  %v8940_v9 = vld [vmem:[#allocation2 + $0xa0] sm:$0xf]  ;;  %v8942_v16 = vld [vmem:[#allocation2 + $0xa8] sm:$0xf] }
 0x192   : > { %v1616_v28 = vrot.slane %v1615_v19, 4  ;;  %v1638_v29 = vrot.slane %v1636_v20, 4  ;;  %7433 = vmatprep.mubr.msk.bf16.mxu0 %vm1816_vm11, %v6656_v45  ;;  %v1644_v31 = vrot.slane %v1642_v26, 5  ;;  %v1650_v33 = vshll.u32 %v8907_v43, 16 }
 0x193   : > { %v1630_v30 = vrot.slane %v1629_v22, 4  ;;  %v1656_v35 = vshll.u32 %v8912_v21, 16  ;;  %v1649_v41 = vrot.slane %v1647_v34, 4  ;;  %v1660_v46 = vshrl.u32 %v8912_v21, 16 }
 0x194   : > { %v1621_v38 = vsel %vm8538_vm10, %v1616_v28, %v1620_v7  ;;  %v1639_v40 = vor.u32 %v1638_v29, %v1634_v24  ;;  %v1652_v55 = vrot.slane %v1650_v33, 5  ;;  %v1666_v59 = vshll.u32 %v1374_v57, 16 }
 0x195   : > { %v6657_v49 = vcombine.low %v1611_v27, %v1621_v38  ;;  %v1635_v50 = vsel %vm8538_vm10, %v1630_v30, %v1634_v24  ;;  %v1658_v52 = vrot.slane %v1656_v35, 5  ;;  %v1662_v58 = vrot.slane %v1660_v46, 4  ;;  %v1376_v24 = vld [vmem:[#allocation2 + $0xa4] sm:$0x1]  ;;  %v8952_v30 = vld [vmem:[#allocation2 + $0xac] sm:$0xf] }
 0x196   : > { %v1640_v56 = vrot.slane %v1639_v40, 4  ;;  %v1671_v63 = vshrl.u32 %v8922_v36, 16  ;;  %v1653_v61 = vor.u32 %v1652_v55, %v1649_v41  ;;  %v1674_v1 = vshll.u32 %v8922_v36, 16  ;;  %v3137_v40 = vld [vmem:[#allocation2 + $0xc] sm:$0xf] }
 0x197   : > { %7434 = vmatmul.mubr.msk.bf16.gmra.mrb[48].mxu0 %vm1816_vm11, %v6657_v49  ;;  %v1680_v62 = vshll.u32 %v8927_v47, 16  ;;  %v1684_v2 = vshrl.u32 %v8927_v47, 16  ;;  %v1663_v5 = vor.u32 %v1662_v58, %v1658_v52  ;;  %v1668_v4 = vrot.slane %v1666_v59, 5 }
 0x198   : > { %v1645_v53 = vsel %vm8538_vm10, %v1640_v56, %v1644_v31  ;;  %v1673_v7 = vrot.slane %v1671_v63, 4  ;;  %v1654_v11 = vrot.slane %v1653_v61, 4  ;;  %v1676_v6 = vrot.slane %v1674_v1, 5  ;;  %v1377_v56 = vld [vmem:[#allocation2 + $0xb0] sm:$0x1] }
 0x199   : > { %v6658_v10 = vcombine.low %v1635_v50, %v1645_v53  ;;  %v1682_v12 = vrot.slane %v1680_v62, 5  ;;  %v1664_v17 = vrot.slane %v1663_v5, 4  ;;  %v1686_v39 = vrot.slane %v1684_v2, 4  ;;  %v8963_v62 = vld [vmem:[#allocation2 + $0x10] sm:$0xf] }
 0x19a   : > { %v1690_v19 = vshll.u32 %v1375_v60, 16  ;;  %v1695_v20 = vshrl.u32 %v8936_v3, 16  ;;  %v1659_v45 = vsel %vm8538_vm10, %v1654_v11, %v1658_v52  ;;  %v1677_v22 = vor.u32 %v1676_v6, %v1673_v7  ;;  %v8965_v7 = vld [vmem:[#allocation2 + $0x14] sm:$0x1] }
 0x19b   : > { %7437 = vmatprep.mubr.msk.bf16.mxu0 %vm1816_vm11, %v6658_v10  ;;  %v1698_v26 = vshll.u32 %v8936_v3, 16  ;;  %v1704_v27 = vshll.u32 %v8940_v9, 16  ;;  %v1669_v28 = vsel %vm8538_vm10, %v1664_v17, %v1668_v4  ;;  %v1687_v29 = vor.u32 %v1686_v39, %v1682_v12 }
 0x19c   : > { %v1692_v57 = vrot.slane %v1690_v19, 5  ;;  %v1697_v34 = vrot.slane %v1695_v20, 4  ;;  %v6659_v31 = vcombine.low %v1659_v45, %v1669_v28  ;;  %v1678_v33 = vrot.slane %v1677_v22, 4  ;;  %v8972_v45 = vld [vmem:[#allocation2 + $0xb4] sm:$0xf] }
 0x19d   : > { %v1700_v35 = vrot.slane %v1698_v26, 5  ;;  %v1706_v38 = vrot.slane %v1704_v27, 5  ;;  %v1688_v41 = vrot.slane %v1687_v29, 4  ;;  %v1708_v46 = vshrl.u32 %v8940_v9, 16  ;;  %v8974_v28 = vld [vmem:[#allocation2 + $0xb8] sm:$0xf] }
 0x19e   : > { %v1714_v49 = vshll.u32 %v1376_v24, 16  ;;  %v1719_v50 = vshrl.u32 %v8942_v16, 16  ;;  %v1683_v55 = vsel %vm8538_vm10, %v1678_v33, %v1682_v12  ;;  %v1722_v58 = vshll.u32 %v8942_v16, 16  ;;  %v1378_v33 = vld [vmem:[#allocation2 + $0xbc] sm:$0x1] }
 0x19f   : > { %7438 = vmatmul.mubr.msk.bf16.gmra.mrb[52].mxu0 %vm1816_vm11, %v6659_v31  ;;  %v1701_v52 = vor.u32 %v1700_v35, %v1697_v34  ;;  %v1728_v59 = vshll.u32 %v8952_v30, 16  ;;  %v1693_v60 = vsel %vm8538_vm10, %v1688_v41, %v1692_v57  ;;  %v1710_v63 = vrot.slane %v1708_v46, 4  ;;  %v3140_v35 = vld [vmem:[#allocation2 + $0x18] sm:$0xf] }
 0x1a0   : > { %v1716_v61 = vrot.slane %v1714_v49, 5  ;;  %v1721_v1 = vrot.slane %v1719_v50, 4  ;;  %v6660_v2 = vcombine.low %v1683_v55, %v1693_v60  ;;  %v1724_v5 = vrot.slane %v1722_v58, 5 }
 0x1a1   : > { %v1702_v53 = vrot.slane %v1701_v52, 4  ;;  %v1730_v4 = vrot.slane %v1728_v59, 5  ;;  %v1711_v10 = vor.u32 %v1710_v63, %v1706_v38  ;;  %v1732_v11 = vshrl.u32 %v8952_v30, 16  ;;  %v8984_v63 = vld [vmem:[#allocation2 + $0x1c] sm:$0xf] }
 0x1a2   : > { %v1738_v6 = vshll.u32 %v1377_v56, 16  ;;  %v3186_v12 = vshrl.u32 %v3137_v40, 16  ;;  %7441 = vmatprep.mubr.msk.bf16.mxu0 %vm1816_vm11, %v6660_v2  ;;  %v1725_v39 = vor.u32 %v1724_v5, %v1721_v1  ;;  %v3189_v19 = vshll.u32 %v3137_v40, 16  ;;  %v8989_v5 = vld [vmem:[#allocation2 + $0x20] sm:$0x1] }
 0x1a3   : > { %v1707_v17 = vsel %vm8538_vm10, %v1702_v53, %v1706_v38  ;;  %v3195_v20 = vshll.u32 %v8963_v62, 16  ;;  %v1712_v22 = vrot.slane %v1711_v10, 4  ;;  %v1734_v24 = vrot.slane %v1732_v11, 4 }
 0x1a4   : > { %v1740_v26 = vrot.slane %v1738_v6, 5  ;;  %v3188_v27 = vrot.slane %v3186_v12, 4  ;;  %v1726_v29 = vrot.slane %v1725_v39, 4  ;;  %v3191_v57 = vrot.slane %v3189_v19, 5 }
 0x1a5   : > { %v3197_v34 = vrot.slane %v3195_v20, 5  ;;  %v3199_v31 = vshrl.u32 %v8963_v62, 16  ;;  %v1717_v38 = vsel %vm8538_vm10, %v1712_v22, %v1716_v61  ;;  %v1735_v40 = vor.u32 %v1734_v24, %v1730_v4  ;;  %v3143_v20 = vld [vmem:[#allocation2 + $0x24] sm:$0xf] }
 0x1a6   : > { %v3205_v41 = vshll.u32 %v8965_v7, 16  ;;  %v1743_v46 = vshrl.u32 %v8972_v45, 16  ;;  %v6661_v49 = vcombine.low %v1707_v17, %v1717_v38  ;;  %v1731_v50 = vsel %vm8538_vm10, %v1726_v29, %v1730_v4 }
 0x1a7   : > { %v3192_v55 = vor.u32 %v3191_v57, %v3188_v27  ;;  %v3201_v52 = vrot.slane %v3199_v31, 4  ;;  %v1736_v56 = vrot.slane %v1735_v40, 4  ;;  %v1746_v60 = vshll.u32 %v8972_v45, 16  ;;  %v8995_v57 = vld [vmem:[#allocation2 + $0x28] sm:$0xf] }
 0x1a8   : > { %v3207_v58 = vrot.slane %v3205_v41, 5  ;;  %v1745_v59 = vrot.slane %v1743_v46, 4  ;;  %7442 = vmatmul.mubr.msk.bf16.gmra.mrb[56].mxu0 %vm1816_vm11, %v6661_v49  ;;  %v1752_v2 = vshll.u32 %v8974_v28, 16  ;;  %v1756_v53 = vshrl.u32 %v8974_v28, 16  ;;  %v9003_v49 = vld [vmem:[#allocation2 + $0x2c] sm:$0x1] }
 0x1a9   : > { %v3193_v61 = vrot.slane %v3192_v55, 4  ;;  %v3202_v1 = vor.u32 %v3201_v52, %v3197_v34  ;;  %v1741_v4 = vsel %vm8538_vm10, %v1736_v56, %v1740_v26  ;;  %v1748_v10 = vrot.slane %v1746_v60, 5  ;;  %v8135_v56 = vld [vmem:[%s10405_s3 + $0x14] sm:$0xf] }
 0x1aa   : > { %v1762_v11 = vshll.u32 %v1378_v33, 16  ;;  %v3210_v6 = vshrl.u32 %v3140_v35, 16  ;;  %v6662_v12 = vcombine.low %v1731_v50, %v1741_v4  ;;  %v1754_v19 = vrot.slane %v1752_v2, 5 }
 0x1ab   : > { %v3198_v17 = vsel %vm8538_vm10, %v3193_v61, %v3197_v34  ;;  %v3203_v39 = vrot.slane %v3202_v1, 4  ;;  %v1749_v22 = vor.u32 %v1748_v10, %v1745_v59  ;;  %v1758_v24 = vrot.slane %v1756_v53, 4  ;;  %v3146_v10 = vld [vmem:[#allocation2 + $0x30] sm:$0xf] }
 0x1ac   : > { %v1764_v27 = vrot.slane %v1762_v11, 5  ;;  %v3212_v29 = vrot.slane %v3210_v6, 4  ;;  %7445 = vmatprep.mubr.msk.bf16.mxu0 %vm1816_vm11, %v6662_v12  ;;  %v3213_v31 = vshll.u32 %v3140_v35, 16  ;;  %v3219_v33 = vshll.u32 %v8984_v63, 16 }
 0x1ad   : > { %v3208_v26 = vsel %vm8538_vm10, %v3203_v39, %v3207_v58  ;;  %v3223_v38 = vshrl.u32 %v8984_v63, 16  ;;  %v1750_v40 = vrot.slane %v1749_v22, 4  ;;  %v1759_v41 = vor.u32 %v1758_v24, %v1754_v19  ;;  %v9017_v39 = vld [vmem:[#allocation2 + $0x34] sm:$0xf] }
 0x1ae   : > { %v6795_v34 = vcombine.low %v3198_v17, %v3208_v26  ;;  %v3229_v46 = vshll.u32 %v8989_v5, 16  ;;  %v3215_v50 = vrot.slane %v3213_v31, 5  ;;  %v3221_v55 = vrot.slane %v3219_v33, 5  ;;  %v8136_v33 = vld [vmem:[%s10405_s3] sm:$0xf] }
 0x1af   : > { %v3225_v52 = vrot.slane %v3223_v38, 4  ;;  %v4138_v35 = vsel %vm1865_vm7, %v8135_v56, 0  ;;  %v1755_v58 = vsel %vm8538_vm10, %v1750_v40, %v1754_v19  ;;  %v1760_v59 = vrot.slane %v1759_v41, 4  ;;  %v9026_v38 = vld [vmem:[%s10405_s3 + $0x8] sm:$0xf] }
 0x1b0   : > { %7553 = vmatprep.mubr.msk.bf16.mxu1 %vm1816_vm11, %v6795_v34  ;;  %v3231_v60 = vrot.slane %v3229_v46, 5  ;;  %v3234_v61 = vshrl.u32 %v3143_v20, 16  ;;  %v3216_v1 = vor.u32 %v3215_v50, %v3212_v29  ;;  %v3237_v53 = vshll.u32 %v3143_v20, 16  ;;  %v8137_v46 = vld [vmem:[#allocation2] sm:$0xf] }
 0x1b1   : > { %v3226_v2 = vor.u32 %v3225_v52, %v3221_v55  ;;  %v3243_v4 = vshll.u32 %v8995_v57, 16  ;;  %v1765_v11 = vsel %vm8538_vm10, %v1760_v59, %v1764_v27  ;;  %v3247_v12 = vshrl.u32 %v8995_v57, 16  ;;  %v9033_v50 = vld [vmem:[#allocation2 + $0x4] sm:$0xf]  ;;  %v9036_v56 = vld [vmem:[#allocation2 + $0x38] sm:$0x1] }
 0x1b2   : > { %v3236_v6 = vrot.slane %v3234_v61, 4  ;;  %v3253_v17 = vshll.u32 %v9003_v49, 16  ;;  %v6663_v19 = vcombine.low %v1755_v58, %v1765_v11  ;;  %v3217_v22 = vrot.slane %v3216_v1, 4  ;;  %v8139_v61 = vld [vmem:[#allocation2 + $0xc] sm:$0xf] }
 0x1b3   : > { %v3227_v24 = vrot.slane %v3226_v2, 4  ;;  %v3239_v26 = vrot.slane %v3237_v53, 5  ;;  %v3245_v29 = vrot.slane %v3243_v4, 5  ;;  %v3249_v31 = vrot.slane %v3247_v12, 4  ;;  %v9038_v1 = vld [vmem:[#allocation2 + $0x10] sm:$0xf] }
 0x1b4   : > { %v3255_v20 = vrot.slane %v3253_v17, 5  ;;  %v2159_v27 = vsel %vm1865_vm7, %v8136_v33, 0  ;;  %7446 = vmatmul.mubr.msk.bf16.gmra.mrb[60].mxu0 %vm1816_vm11, %v6663_v19  ;;  %v3222_v34 = vsel %vm8538_vm10, %v3217_v22, %v3221_v55  ;;  %v6680_v52 = vcombine.low %v8137_v46, %v9033_v50  ;;  %v3149_v53 = vld [vmem:[#allocation2 + $0x3c] sm:$0xf]  ;;  %v9047_v12 = vld [vmem:[%s10405_s3 + $0x18] sm:$0xf] }
 0x1b5   : > { %v3232_v40 = vsel %vm8538_vm10, %v3227_v24, %v3231_v60  ;;  %v3240_v41 = vor.u32 %v3239_v26, %v3236_v6  ;;  %v3250_v59 = vor.u32 %v3249_v31, %v3245_v29  ;;  %7450 = vmatpush3.bf16.msra.mxu0 %v2159_v27  ;;  %v6681_v2 = vcombine.low %v8139_v61, %v9038_v1  ;;  %v8141_v24 = vld [vmem:[#allocation2 + $0x18] sm:$0xf]  ;;  %v9056_v31 = vld [vmem:[#allocation2 + $0x40] sm:$0xf] }
 0x1b6   : > { %v6796_v58 = vcombine.low %v3222_v34, %v3232_v40  ;;  %v3258_v55 = vshrl.u32 %v3146_v10, 16  ;;  %7451 = vmatprep.mubr.msk.bf16.mxu0 %vm1816_vm11, %v6680_v52  ;;  %v3261_v60 = vshll.u32 %v3146_v10, 16  ;;  %v3267_v11 = vshll.u32 %v9017_v39, 16  ;;  %8015 = vmatprep.subr.msk.bf16.mxu0 %vm1865_vm7, %v9026_v38  ;;  %v9053_v10 = vld [vmem:[#allocation2 + $0x1c] sm:$0xf] }
 0x1b7   : > { %v3241_v4 = vrot.slane %v3240_v41, 4  ;;  %v3271_v6 = vshrl.u32 %v9017_v39, 16  ;;  %v3251_v17 = vrot.slane %v3250_v59, 4  ;;  %v3277_v22 = vshll.u32 %v9036_v56, 16  ;;  %v9060_v41 = vld [vmem:[#allocation2 + $0x44] sm:$0x1] }
 0x1b8   : > { %7554 = vmatmul.mubr.msk.bf16.vlgmr.msra.gmra.mrb[20].mxu1 %vm1816_vm11, %v6796_v58  ;;  %v3260_v19 = vrot.slane %v3258_v55, 4  ;;  %v6682_v26 = vcombine.low %v8141_v24, %v9053_v10  ;;  %v3263_v27 = vrot.slane %v3261_v60, 5  ;;  %v3269_v34 = vrot.slane %v3267_v11, 5  ;;  %10453 = vst [vmem:[#allocation12_spill] sm:$0xff] %v9060_v41 }
 0x1b9   : > { %7586 = vmatpush3.bf16.msra.mxu1 %v4138_v35  ;;  %v3246_v33 = vsel %vm8538_vm10, %v3241_v4, %v3245_v29  ;;  %v3273_v40 = vrot.slane %v3271_v6, 4  ;;  %v3256_v46 = vsel %vm8538_vm10, %v3251_v17, %v3255_v20  ;;  %v3279_v52 = vrot.slane %v3277_v22, 5  ;;  %v3152_v29 = vld [vmem:[#allocation2 + $0x48] sm:$0xf] }
 0x1ba   : > { %v3282_v58 = vshrl.u32 %v3149_v53, 16  ;;  %v3285_v59 = vshll.u32 %v3149_v53, 16  ;;  %8020 = vmatprep.subr.msk.bf16.mxu1 %vm1865_vm7, %v9047_v12  ;;  %v6797_v61 = vcombine.low %v3246_v33, %v3256_v46  ;;  %v3264_v55 = vor.u32 %v3263_v27, %v3260_v19  ;;  %v8143_v19 = vld [vmem:[#allocation2 + $0x24] sm:$0xf]  ;;  %v9073_v22 = vld [vmem:[#allocation2 + $0x28] sm:$0xf] }
 0x1bb   : > { %v3274_v35 = vor.u32 %v3273_v40, %v3269_v34  ;;  %v3291_v24 = vshll.u32 %v9056_v31, 16  ;;  %v3295_v11 = vshrl.u32 %v9056_v31, 16  ;;  %v3301_v6 = vshll.u32 %v9060_v41, 16  ;;  %v9086_v41 = vld [vmem:[#allocation2 + $0x58] sm:$0xf] }
 0x1bc   : > { %v3284_v4 = vrot.slane %v3282_v58, 4  ;;  %v3287_v60 = vrot.slane %v3285_v59, 5  ;;  %7557 = vmatprep.mubr.msk.bf16.mxu1 %vm1816_vm11, %v6797_v61  ;;  %7452 = vmatmul.mubr.msk.bf16.vlgmr.msra.gmra.mrb[32].mxu0 %vm1816_vm11, %v6681_v2  ;;  %v3265_v20 = vrot.slane %v3264_v55, 4  ;;  %v6683_v33 = vcombine.low %v8143_v19, %v9073_v22  ;;  %v9077_v58 = vld [vmem:[#allocation2 + $0x50] sm:$0x1]  ;;  %10455 = vst [vmem:[#allocation14_spill] sm:$0xff] %v9086_v41 }
 0x1bd   : > { %v3275_v53 = vrot.slane %v3274_v35, 4  ;;  %v3293_v17 = vrot.slane %v3291_v24, 5  ;;  %7455 = vmatprep.mubr.msk.bf16.mxu0 %vm1816_vm11, %v6682_v26  ;;  %v3297_v40 = vrot.slane %v3295_v11, 4  ;;  %v3303_v46 = vrot.slane %v3301_v6, 5  ;;  %10454 = vst [vmem:[#allocation13_spill] sm:$0xff] %v9077_v58 }
 0x1be   : > { %v3288_v27 = vor.u32 %v3287_v60, %v3284_v4  ;;  %v3306_v59 = vshrl.u32 %v3152_v29, 16  ;;  %v3270_v61 = vsel %vm8538_vm10, %v3265_v20, %v3269_v34  ;;  %v3309_v55 = vshll.u32 %v3152_v29, 16  ;;  %v3155_v24 = vld [vmem:[#allocation2 + $0x54] sm:$0xf]  ;;  %v8145_v29 = vld [vmem:[#allocation2 + $0x30] sm:$0xf] }
 0x1bf   : > { %v3280_v2 = vsel %vm8538_vm10, %v3275_v53, %v3279_v52  ;;  %v3315_v35 = vshll.u32 %v9069_v23, 16  ;;  %v3298_v37 = vor.u32 %v3297_v40, %v3293_v17  ;;  %v3319_v11 = vshrl.u32 %v9069_v23, 16  ;;  %v9091_v20 = vld [vmem:[#allocation2 + $0x34] sm:$0xf] }
 0x1c0   : > { %v6798_v18 = vcombine.low %v3270_v61, %v3280_v2  ;;  %v3289_v19 = vrot.slane %v3288_v27, 4  ;;  %v3308_v26 = vrot.slane %v3306_v59, 4  ;;  %v3311_v4 = vrot.slane %v3309_v55, 5  ;;  %10456 = vst [vmem:[#allocation15_spill] sm:$0xff] %v9091_v20  ;;  %v9094_v2 = vld [vmem:[#allocation2 + $0x5c] sm:$0x1] }
 0x1c1   : > { %v3317_v60 = vrot.slane %v3315_v35, 5  ;;  %v3325_v6 = vshll.u32 %v9077_v58, 16  ;;  %v3299_v52 = vrot.slane %v3298_v37, 4  ;;  %v6684_v53 = vcombine.low %v8145_v29, %v9091_v20  ;;  %10457 = vst [vmem:[#allocation16_spill] sm:$0xff] %v9094_v2 }
 0x1c2   : > { %7558 = vmatmul.mubr.msk.bf16.gmra.mrb[24].mxu1 %vm1816_vm11, %v6798_v18  ;;  %v3294_v34 = vsel %vm8538_vm10, %v3289_v19, %v3293_v17  ;;  %v3330_v27 = vshrl.u32 %v3155_v24, 16  ;;  %v3312_v40 = vor.u32 %v3311_v4, %v3308_v26  ;;  %v3321_v59 = vrot.slane %v3319_v11, 4  ;;  %v3158_v17 = vld [vmem:[#allocation2 + $0x60] sm:$0xf]  ;;  %v9101_v4 = vld [vmem:[#allocation2 + $0x64] sm:$0xf] }
 0x1c3   : > { %v3327_v61 = vrot.slane %v3325_v6, 5  ;;  %v3333_v55 = vshll.u32 %v3155_v24, 16  ;;  %v3304_v35 = vsel %vm8538_vm10, %v3299_v52, %v3303_v46  ;;  %v3339_v58 = vshll.u32 %v9086_v41, 16  ;;  %v8147_v6 = vld [vmem:[#allocation2 + $0x3c] sm:$0xf] }
 0x1c4   : > { %v3332_v18 = vrot.slane %v3330_v27, 4  ;;  %v3343_v37 = vshrl.u32 %v9086_v41, 16  ;;  %v6799_v19 = vcombine.low %v3294_v34, %v3304_v35  ;;  %7456 = vmatmul.mubr.msk.bf16.gmra.mrb[36].mxu0 %vm1816_vm11, %v6683_v33  ;;  %v3313_v29 = vrot.slane %v3312_v40, 4  ;;  %v9109_v35 = vld [vmem:[#allocation2 + $0x68] sm:$0x1] }
 0x1c5   : > { %v3322_v20 = vor.u32 %v3321_v59, %v3317_v60  ;;  %v3335_v26 = vrot.slane %v3333_v55, 5  ;;  %7459 = vmatprep.mubr.msk.bf16.mxu0 %vm1816_vm11, %v6684_v53  ;;  %v3341_v24 = vrot.slane %v3339_v58, 5  ;;  %v3349_v46 = vshll.u32 %v9094_v2, 16 }
 0x1c6   : > { %v3345_v11 = vrot.slane %v3343_v37, 4  ;;  %v6685_v52 = vcombine.low %v8147_v6, %v8807_v13  ;;  %7561 = vmatprep.mubr.msk.bf16.mxu1 %vm1816_vm11, %v6799_v19  ;;  %v3318_v34 = vsel %vm8538_vm10, %v3313_v29, %v3317_v60  ;;  %v3354_v40 = vshrl.u32 %v3158_v17, 16  ;;  %v3161_v6 = vld [vmem:[#allocation2 + $0x6c] sm:$0xf]  ;;  %v9115_v29 = vld [vmem:[#allocation2 + $0x70] sm:$0xf] }
 0x1c7   : > { %v3323_v33 = vrot.slane %v3322_v20, 4  ;;  %v3336_v27 = vor.u32 %v3335_v26, %v3332_v18  ;;  %v3351_v55 = vrot.slane %v3349_v46, 5  ;;  %v3357_v53 = vshll.u32 %v3158_v17, 16 }
 0x1c8   : > { %v3346_v59 = vor.u32 %v3345_v11, %v3341_v24  ;;  %v3363_v58 = vshll.u32 %v9101_v4, 16  ;;  %v3356_v13 = vrot.slane %v3354_v40, 4  ;;  %v3367_v19 = vshrl.u32 %v9101_v4, 16 }
 0x1c9   : > { %v3328_v37 = vsel %vm8538_vm10, %v3323_v33, %v3327_v61  ;;  %v3337_v2 = vrot.slane %v3336_v27, 4  ;;  %v3359_v20 = vrot.slane %v3357_v53, 5  ;;  %v3373_v11 = vshll.u32 %v9109_v35, 16  ;;  %v9125_v33 = vld [vmem:[#allocation2 + $0x74] sm:$0x1] }
 0x1ca   : > { %v6800_v41 = vcombine.low %v3318_v34, %v3328_v37  ;;  %v3347_v60 = vrot.slane %v3346_v59, 4  ;;  %v3365_v18 = vrot.slane %v3363_v58, 5  ;;  %v3369_v17 = vrot.slane %v3367_v19, 4  ;;  %10458 = vst [vmem:[#allocation17_spill] sm:$0xff] %v9125_v33  ;;  %v3164_v58 = vld [vmem:[#allocation2 + $0x78] sm:$0xf] }
 0x1cb   : > { %v3342_v26 = vsel %vm8538_vm10, %v3337_v2, %v3341_v24  ;;  %v6686_v61 = vcombine.low %v8818_v42, %v8820_v44  ;;  %v3360_v34 = vor.u32 %v3359_v20, %v3356_v13  ;;  %v3378_v27 = vshrl.u32 %v3161_v6, 16 }
 0x1cc   : > { %7562 = vmatmul.mubr.msk.bf16.gmra.mrb[28].mxu1 %vm1816_vm11, %v6800_v41  ;;  %v3352_v46 = vsel %vm8538_vm10, %v3347_v60, %v3351_v55  ;;  %v3381_v40 = vshll.u32 %v3161_v6, 16  ;;  %7460 = vmatmul.mubr.msk.bf16.gmra.mrb[40].mxu0 %vm1816_vm11, %v6685_v52  ;;  %v3370_v2 = vor.u32 %v3369_v17, %v3365_v18  ;;  %v3375_v24 = vrot.slane %v3373_v11, 5  ;;  %v9131_v55 = vld [vmem:[#allocation2 + $0x7c] sm:$0xf]  ;;  %v9139_v17 = vld [vmem:[#allocation2 + $0x80] sm:$0x1] }
 0x1cd   : > { %v6801_v59 = vcombine.low %v3342_v26, %v3352_v46  ;;  %v3387_v53 = vshll.u32 %v9115_v29, 16  ;;  %v3361_v37 = vrot.slane %v3360_v34, 4  ;;  %7463 = vmatprep.mubr.msk.bf16.mxu0 %vm1816_vm11, %v6686_v61  ;;  %v3380_v42 = vrot.slane %v3378_v27, 4 }
 0x1ce   : > { %v3383_v44 = vrot.slane %v3381_v40, 5  ;;  %v3391_v41 = vshrl.u32 %v9115_v29, 16  ;;  %v3371_v13 = vrot.slane %v3370_v2, 4  ;;  %v3397_v52 = vshll.u32 %v9125_v33, 16  ;;  %v3167_v40 = vld [vmem:[#allocation2 + $0x84] sm:$0xf] }
 0x1cf   : > { %7565 = vmatprep.mubr.msk.bf16.mxu1 %vm1816_vm11, %v6801_v59  ;;  %v3389_v19 = vrot.slane %v3387_v53, 5  ;;  %v6687_v6 = vcombine.low %v8843_v8, %v8855_v48  ;;  %v3366_v60 = vsel %vm8538_vm10, %v3361_v37, %v3365_v18  ;;  %v3402_v11 = vshrl.u32 %v3164_v58, 16 }
 0x1d0   : > { %v3384_v20 = vor.u32 %v3383_v44, %v3380_v42  ;;  %v3393_v26 = vrot.slane %v3391_v41, 4  ;;  %v3376_v61 = vsel %vm8538_vm10, %v3371_v13, %v3375_v24  ;;  %v3399_v46 = vrot.slane %v3397_v52, 5  ;;  %v9146_v42 = vld [vmem:[#allocation2 + $0x88] sm:$0xf] }
 0x1d1   : > { %v3405_v34 = vshll.u32 %v3164_v58, 16  ;;  %v3411_v27 = vshll.u32 %v9131_v55, 16  ;;  %v6802_v59 = vcombine.low %v3366_v60, %v3376_v61  ;;  %v3404_v8 = vrot.slane %v3402_v11, 4 }
 0x1d2   : > { %v3385_v2 = vrot.slane %v3384_v20, 4  ;;  %v3394_v53 = vor.u32 %v3393_v26, %v3389_v19  ;;  %v3415_v18 = vshrl.u32 %v9131_v55, 16  ;;  %v3421_v37 = vshll.u32 %v9139_v17, 16  ;;  %v9154_v20 = vld [vmem:[#allocation2 + $0x8c] sm:$0x1] }
 0x1d3   : > { %v3407_v48 = vrot.slane %v3405_v34, 5  ;;  %v3413_v33 = vrot.slane %v3411_v27, 5  ;;  %v6688_v44 = vcombine.low %v8867_v0, %v8869_v14  ;;  %v3426_v41 = vshrl.u32 %v3167_v40, 16  ;;  %v3170_v0 = vld [vmem:[#allocation2 + $0x90] sm:$0xf] }
 0x1d4   : > { %7566 = vmatmul.mubr.msk.bf16.gmra.mrb[0].mxu1 %vm1816_vm11, %v6802_v59  ;;  %v3390_v24 = vsel %vm8538_vm10, %v3385_v2, %v3389_v19  ;;  %v3395_v58 = vrot.slane %v3394_v53, 4  ;;  %7464 = vmatmul.mubr.msk.bf16.gmra.mrb[44].mxu0 %vm1816_vm11, %v6687_v6  ;;  %v3417_v52 = vrot.slane %v3415_v18, 4  ;;  %v3423_v60 = vrot.slane %v3421_v37, 5  ;;  %v9161_v2 = vld [vmem:[#allocation2 + $0x94] sm:$0xf] }
 0x1d5   : > { %v3408_v13 = vor.u32 %v3407_v48, %v3404_v8  ;;  %v3429_v26 = vshll.u32 %v3167_v40, 16  ;;  %7467 = vmatprep.mubr.msk.bf16.mxu0 %vm1816_vm11, %v6688_v44  ;;  %v3428_v61 = vrot.slane %v3426_v41, 4  ;;  %v3435_v19 = vshll.u32 %v9146_v42, 16  ;;  %v9169_v41 = vld [vmem:[#allocation2 + $0x98] sm:$0x1] }
 0x1d6   : > { %v3400_v11 = vsel %vm8538_vm10, %v3395_v58, %v3399_v46  ;;  %v3439_v34 = vshrl.u32 %v9146_v42, 16  ;;  %v3418_v6 = vor.u32 %v3417_v52, %v3413_v33  ;;  %v3445_v40 = vshll.u32 %v9154_v20, 16 }
 0x1d7   : > { %v6803_v14 = vcombine.low %v3390_v24, %v3400_v11  ;;  %v3409_v27 = vrot.slane %v3408_v13, 4  ;;  %v3431_v59 = vrot.slane %v3429_v26, 5  ;;  %v3437_v53 = vrot.slane %v3435_v19, 5  ;;  %v3173_v19 = vld [vmem:[#allocation2 + $0x9c] sm:$0xf] }
 0x1d8   : > { %v3441_v8 = vrot.slane %v3439_v34, 4  ;;  %v6689_v46 = vcombine.low %v8881_v25, %v8887_v32  ;;  %v3419_v18 = vrot.slane %v3418_v6, 4  ;;  %v3450_v24 = vshrl.u32 %v3170_v0, 16 }
 0x1d9   : > { %7569 = vmatprep.mubr.msk.bf16.mxu1 %vm1816_vm11, %v6803_v14  ;;  %v3414_v48 = vsel %vm8538_vm10, %v3409_v27, %v3413_v33  ;;  %v3432_v37 = vor.u32 %v3431_v59, %v3428_v61  ;;  %v3447_v44 = vrot.slane %v3445_v40, 5  ;;  %v3453_v13 = vshll.u32 %v3170_v0, 16  ;;  %v9175_v27 = vld [vmem:[#allocation2 + $0xa0] sm:$0xf] }
 0x1da   : > { %v3442_v58 = vor.u32 %v3441_v8, %v3437_v53  ;;  %v3459_v52 = vshll.u32 %v9161_v2, 16  ;;  %v3424_v26 = vsel %vm8538_vm10, %v3419_v18, %v3423_v60  ;;  %v3452_v25 = vrot.slane %v3450_v24, 4 }
 0x1db   : > { %v3433_v11 = vrot.slane %v3432_v37, 4  ;;  %v3463_v32 = vshrl.u32 %v9161_v2, 16  ;;  %v6804_v34 = vcombine.low %v3414_v48, %v3424_v26  ;;  %v3455_v14 = vrot.slane %v3453_v13, 5  ;;  %v9186_v48 = vld [vmem:[#allocation2 + $0xa4] sm:$0x1] }
 0x1dc   : > { %v3443_v33 = vrot.slane %v3442_v58, 4  ;;  %v3461_v61 = vrot.slane %v3459_v52, 5  ;;  %7468 = vmatmul.mubr.msk.bf16.gmra.mrb[48].mxu0 %vm1816_vm11, %v6689_v46  ;;  %v3469_v59 = vshll.u32 %v9169_v41, 16  ;;  %v6690_v60 = vcombine.low %v8889_v54, %v8898_v51  ;;  %v3176_v13 = vld [vmem:[#allocation2 + $0xa8] sm:$0xf] }
 0x1dd   : > { %v3438_v6 = vsel %vm8538_vm10, %v3433_v11, %v3437_v53  ;;  %v3465_v0 = vrot.slane %v3463_v32, 4  ;;  %7570 = vmatmul.mubr.msk.bf16.gmra.mrb[4].mxu1 %vm1816_vm11, %v6804_v34  ;;  %v3456_v40 = vor.u32 %v3455_v14, %v3452_v25  ;;  %v3474_v18 = vshrl.u32 %v3173_v19, 16  ;;  %v9191_v11 = vld [vmem:[#allocation2 + $0xac] sm:$0xf] }
 0x1de   : > { %v3448_v8 = vsel %vm8538_vm10, %v3443_v33, %v3447_v44  ;;  %v3477_v37 = vshll.u32 %v3173_v19, 16  ;;  %v3471_v58 = vrot.slane %v3469_v59, 5  ;;  %7471 = vmatprep.mubr.msk.bf16.mxu0 %vm1816_vm11, %v6690_v60  ;;  %v3483_v46 = vshll.u32 %v9175_v27, 16 }
 0x1df   : > { %v6805_v24 = vcombine.low %v3438_v6, %v3448_v8  ;;  %v3466_v53 = vor.u32 %v3465_v0, %v3461_v61  ;;  %v3457_v52 = vrot.slane %v3456_v40, 4  ;;  %v3476_v54 = vrot.slane %v3474_v18, 4  ;;  %v9199_v6 = vld [vmem:[#allocation2 + $0xb0] sm:$0x1]  ;;  %v3179_v18 = vld [vmem:[#allocation2 + $0xb4] sm:$0xf] }
 0x1e0   : > { %v3479_v51 = vrot.slane %v3477_v37, 5  ;;  %v3487_v26 = vshrl.u32 %v9175_v27, 16  ;;  %v3485_v25 = vrot.slane %v3483_v46, 5  ;;  %v3493_v32 = vshll.u32 %v9186_v48, 16 }
 0x1e1   : > { %7573 = vmatprep.mubr.msk.bf16.mxu1 %vm1816_vm11, %v6805_v24  ;;  %v3467_v44 = vrot.slane %v3466_v53, 4  ;;  %v6691_v19 = vcombine.low %v8907_v43, %v8912_v21  ;;  %v3462_v34 = vsel %vm8538_vm10, %v3457_v52, %v3461_v61  ;;  %v3498_v0 = vshrl.u32 %v3176_v13, 16 }
 0x1e2   : > { %v3480_v33 = vor.u32 %v3479_v51, %v3476_v54  ;;  %v3489_v14 = vrot.slane %v3487_v26, 4  ;;  %v3495_v60 = vrot.slane %v3493_v32, 5  ;;  %v3501_v8 = vshll.u32 %v3176_v13, 16  ;;  %v9207_v54 = vld [vmem:[#allocation2 + $0xb8] sm:$0xf] }
 0x1e3   : > { %v3472_v59 = vsel %vm8538_vm10, %v3467_v44, %v3471_v58  ;;  %v3507_v40 = vshll.u32 %v9191_v11, 16  ;;  %v3500_v43 = vrot.slane %v3498_v0, 4  ;;  %v3511_v46 = vshrl.u32 %v9191_v11, 16 }
 0x1e4   : > { %v6806_v37 = vcombine.low %v3462_v34, %v3472_v59  ;;  %v3481_v24 = vrot.slane %v3480_v33, 4  ;;  %v3490_v53 = vor.u32 %v3489_v14, %v3485_v25  ;;  %7472 = vmatmul.mubr.msk.bf16.gmra.mrb[52].mxu0 %vm1816_vm11, %v6691_v19  ;;  %v3503_v21 = vrot.slane %v3501_v8, 5  ;;  %v9214_v34 = vld [vmem:[#allocation2 + $0xbc] sm:$0x1]  ;;  %v3182_v8 = vld [vmem:[#allocation2 + $0xc0] sm:$0xf] }
 0x1e5   : > { %v3509_v61 = vrot.slane %v3507_v40, 5  ;;  %v3517_v52 = vshll.u32 %v9199_v6, 16  ;;  %v6692_v51 = vcombine.low %v8922_v36, %v8927_v47  ;;  %v3522_v26 = vshrl.u32 %v3179_v18, 16 }
 0x1e6   : > { %7574 = vmatmul.mubr.msk.bf16.gmra.mrb[8].mxu1 %vm1816_vm11, %v6806_v37  ;;  %v3486_v58 = vsel %vm8538_vm10, %v3481_v24, %v3485_v25  ;;  %v3491_v13 = vrot.slane %v3490_v53, 4  ;;  %v3504_v44 = vor.u32 %v3503_v21, %v3500_v43  ;;  %v3513_v32 = vrot.slane %v3511_v46, 4  ;;  %v9221_v24 = vld [vmem:[#allocation2 + $0xc4] sm:$0xf] }
 0x1e7   : > { %v3519_v19 = vrot.slane %v3517_v52, 5  ;;  %v3525_v33 = vshll.u32 %v3179_v18, 16  ;;  %7475 = vmatprep.mubr.msk.bf16.mxu0 %vm1816_vm11, %v6692_v51  ;;  %v3524_v0 = vrot.slane %v3522_v26, 4  ;;  %v3531_v59 = vshll.u32 %v9207_v54, 16  ;;  %v9229_v26 = vld [vmem:[#allocation2 + $0xc8] sm:$0x1] }
 0x1e8   : > { %v3496_v14 = vsel %vm8538_vm10, %v3491_v13, %v3495_v60  ;;  %v3535_v25 = vshrl.u32 %v9207_v54, 16  ;;  %v3505_v36 = vrot.slane %v3504_v44, 4  ;;  %v3514_v47 = vor.u32 %v3513_v32, %v3509_v61 }
 0x1e9   : > { %v6807_v40 = vcombine.low %v3486_v58, %v3496_v14  ;;  %v3527_v37 = vrot.slane %v3525_v33, 5  ;;  %v3533_v53 = vrot.slane %v3531_v59, 5  ;;  %v3541_v18 = vshll.u32 %v9214_v34, 16 }
 0x1ea   : > { %v3537_v43 = vrot.slane %v3535_v25, 4  ;;  %v6693_v60 = vcombine.low %v8936_v3, %v8940_v9  ;;  %v3510_v21 = vsel %vm8538_vm10, %v3505_v36, %v3509_v61  ;;  %v3515_v46 = vrot.slane %v3514_v47, 4 }
 0x1eb   : > { %7577 = vmatprep.mubr.msk.bf16.mxu1 %vm1816_vm11, %v6807_v40  ;;  %v3528_v52 = vor.u32 %v3527_v37, %v3524_v0  ;;  %v3546_v58 = vshrl.u32 %v3182_v8, 16  ;;  %v3543_v51 = vrot.slane %v3541_v18, 5  ;;  %v3549_v44 = vshll.u32 %v3182_v8, 16 }
 0x1ec   : > { %v3538_v13 = vor.u32 %v3537_v43, %v3533_v53  ;;  %v3555_v32 = vshll.u32 %v9221_v24, 16  ;;  %v3520_v33 = vsel %vm8538_vm10, %v3515_v46, %v3519_v19  ;;  %7476 = vmatmul.mubr.msk.bf16.gmra.mrb[56].mxu0 %vm1816_vm11, %v6693_v60  ;;  %v3559_v9 = vshrl.u32 %v9221_v24, 16  ;;  %v3863_v43 = vld [vmem:[#allocation2 + $0xc] sm:$0xe] }
 0x1ed   : > { %v3529_v14 = vrot.slane %v3528_v52, 4  ;;  %v3548_v3 = vrot.slane %v3546_v58, 4  ;;  %v6808_v61 = vcombine.low %v3510_v21, %v3520_v33  ;;  %v3551_v0 = vrot.slane %v3549_v44, 5 }
 0x1ee   : > { %v3539_v59 = vrot.slane %v3538_v13, 4  ;;  %v3557_v25 = vrot.slane %v3555_v32, 5  ;;  %v3561_v36 = vrot.slane %v3559_v9, 4  ;;  %v3565_v8 = vshll.u32 %v9229_v26, 16 }
 0x1ef   : > { %v3534_v40 = vsel %vm8538_vm10, %v3529_v14, %v3533_v53  ;;  %v6694_v47 = vcombine.low %v8942_v16, %v8952_v30  ;;  %7578 = vmatmul.mubr.msk.bf16.gmra.mrb[12].mxu1 %vm1816_vm11, %v6808_v61  ;;  %v3552_v37 = vor.u32 %v3551_v0, %v3548_v3  ;;  %v3864_v53 = vld [vmem:[#allocation2 + $0x18] sm:$0xe]  ;;  %v3929_v16 = vrot.slane %v8963_v62, 5  ;;  %v2322_v3 = vld [vmem:[#allocation2] sm:$0xe] }
 0x1f0   : > { %v3544_v19 = vsel %vm8538_vm10, %v3539_v59, %v3543_v51  ;;  %v3562_v60 = vor.u32 %v3561_v36, %v3557_v25  ;;  %v3567_v46 = vrot.slane %v3565_v8, 5  ;;  %v6827_v58 = vrot.slane %v3863_v43, 9  ;;  %v2323_v8 = vld [vmem:[#allocation2 + $0xc] sm:$0xe] }
 0x1f1   : > { %v6809_v18 = vcombine.low %v3534_v40, %v3544_v19  ;;  %7479 = vmatprep.mubr.msk.bf16.mxu0 %vm1816_vm11, %v6694_v47  ;;  %v3553_v21 = vrot.slane %v3552_v37, 4  ;;  %v6695_v13 = vcombine.low %v8972_v45, %v8974_v28  ;;  %v3936_v51 = vrot.slane %v8984_v63, 5  ;;  %v3865_v28 = vld [vmem:[#allocation2 + $0x24] sm:$0xe] }
 0x1f2   : > { %v3563_v30 = vrot.slane %v3562_v60, 4  ;;  %v3931_v44 = vrot.slane %v3929_v16, 4  ;;  %v3932_v32 = vrot.slane %v8965_v7, 5  ;;  %v6828_v33 = vrot.slane %v3864_v53, 9  ;;  %v3866_v53 = vld [vmem:[#allocation2 + $0x30] sm:$0xe] }
 0x1f3   : > { %7581 = vmatprep.mubr.msk.bf16.mxu1 %vm1816_vm11, %v6809_v18  ;;  %v3939_v14 = vrot.slane %v8989_v5, 5  ;;  %v3558_v9 = vsel %vm8538_vm10, %v3553_v21, %v3557_v25  ;;  %v3930_v61 = vsel %vm9245_vm1, %v6827_v58, %v3929_v16  ;;  %v3938_v45 = vrot.slane %v3936_v51, 4  ;;  %v8148_v18 = vld [vmem:[#allocation2 + $0x8] sm:$0x1]  ;;  %v8149_v21 = vld [vmem:[%s10405_s3 + $0xc] sm:$0xf] }
 0x1f4   : > { %v3568_v62 = vsel %vm8538_vm10, %v3563_v30, %v3567_v46  ;;  %7480 = vmatmul.mubr.msk.bf16.gmra.mrb[60].mxu0 %vm1816_vm11, %v6695_v13  ;;  %v3933_v7 = vsel %vm9245_vm1, %v3931_v44, %v3932_v32  ;;  %v4497_v5 = vsel %vm1865_vm7, %v9047_v12, 0  ;;  %v3943_v59 = vrot.slane %v8995_v57, 5  ;;  %v2324_v44 = vld [vmem:[#allocation2 + $0x18] sm:$0xe] }
 0x1f5   : > { %v6810_v63 = vcombine.low %v3558_v9, %v3568_v62  ;;  %v6844_v0 = vcombine.low %v3930_v61, %v3933_v7  ;;  %v3940_v25 = vsel %vm9245_vm1, %v3938_v45, %v3939_v14  ;;  %v2584_v40 = vsel %vm1865_vm7, %v9026_v38, 0  ;;  %v8151_v7 = vld [vmem:[#allocation2 + $0x20] sm:$0x1] }
 0x1f6   : > { %v6712_v36 = vrot.slane %v2322_v3, 9  ;;  %v3937_v47 = vsel %vm9245_vm1, %v6828_v33, %v3936_v51  ;;  %v6829_v19 = vrot.slane %v3865_v28, 9  ;;  %v3945_v37 = vrot.slane %v3943_v59, 4  ;;  %7484 = vmatpush3.bf16.msra.mxu0 %v2584_v40 }
 0x1f7   : > { %7582 = vmatmul.mubr.msk.bf16.gmra.mrb[16].mxu1 %vm1816_vm11, %v6810_v63  ;;  %v2375_v12 = vrot.slane %v9033_v50, 5  ;;  %v6845_v57 = vcombine.low %v3937_v47, %v3940_v25  ;;  %v3946_v43 = vrot.slane %v9003_v49, 5  ;;  %v2378_v60 = vrot.slane %v8148_v18, 5  ;;  %8016 = vmatprep.subr.msk.bf16.mxu0 %vm1865_vm7, %v8149_v21  ;;  %v8152_v21 = vld [vmem:[#allocation2 + $0x2c] sm:$0x1] }
 0x1f8   : > { %7587 = vmatprep.mubr.msk.bf16.mxu1 %vm1816_vm11, %v6844_v0  ;;  %v2382_v38 = vrot.slane %v9038_v1, 5  ;;  %v3944_v46 = vsel %vm9245_vm1, %v6829_v19, %v3943_v59  ;;  %v6713_v30 = vrot.slane %v2323_v8, 9  ;;  %v8150_v1 = vld [vmem:[#allocation2 + $0x14] sm:$0x1]  ;;  %v3950_v51 = vrot.slane %v9017_v39, 5 }
 0x1f9   : > { %v2376_v50 = vsel %vm9245_vm1, %v6712_v36, %v2375_v12  ;;  %v2377_v16 = vrot.slane %v2375_v12, 4  ;;  %v3947_v49 = vsel %vm9245_vm1, %v3945_v37, %v3946_v43  ;;  %v2385_v13 = vrot.slane %v8150_v1, 5  ;;  %v3867_v0 = vld [vmem:[#allocation2 + $0x3c] sm:$0xe]  ;;  %v2325_v36 = vld [vmem:[#allocation2 + $0x24] sm:$0xe] }
 0x1fa   : > { %v2384_v58 = vrot.slane %v2382_v38, 4  ;;  %v2383_v33 = vsel %vm9245_vm1, %v6713_v30, %v2382_v38  ;;  %v6830_v14 = vrot.slane %v3866_v53, 9  ;;  %v2389_v3 = vrot.slane %v9053_v10, 5  ;;  %v9305_v8 = vld [vmem:[%s10405_s3 + $0x1c] sm:$0xf] }
 0x1fb   : > { %v2379_v32 = vsel %vm9245_vm1, %v2377_v16, %v2378_v60  ;;  %v3952_v61 = vrot.slane %v3950_v51, 4  ;;  %v3953_v45 = vrot.slane %v9036_v56, 5  ;;  %v6714_v63 = vrot.slane %v2324_v44, 9  ;;  %v3868_v60 = vld [vmem:[#allocation2 + $0x48] sm:$0xe] }
 0x1fc   : > { %v6729_v9 = vcombine.low %v2376_v50, %v2379_v32  ;;  %v2386_v62 = vsel %vm9245_vm1, %v2384_v58, %v2385_v13  ;;  %v2391_v39 = vrot.slane %v2389_v3, 4  ;;  %v2392_v59 = vrot.slane %v8151_v7, 5  ;;  %v2326_v16 = vld [vmem:[#allocation2 + $0x30] sm:$0xe]  ;;  %v10463_v58 = vld [vmem:[#allocation15_spill] sm:$0xff]  ;;  %v10464_v32 = vld [vmem:[#allocation13_spill] sm:$0xff] }
 0x1fd   : > { %v6730_v28 = vcombine.low %v2383_v33, %v2386_v62  ;;  %v6846_v25 = vcombine.low %v3944_v46, %v3947_v49  ;;  %v3951_v40 = vsel %vm9245_vm1, %v6830_v14, %v3950_v51  ;;  %v3957_v10 = vrot.slane %v9056_v31, 5 }
 0x1fe   : > { %7485 = vmatprep.mubr.msk.bf16.mxu0 %vm1816_vm11, %v6729_v9  ;;  %v3954_v56 = vsel %vm9245_vm1, %v3952_v61, %v3953_v45  ;;  %v2390_v47 = vsel %vm9245_vm1, %v6714_v63, %v2389_v3  ;;  %v2393_v19 = vsel %vm9245_vm1, %v2391_v39, %v2392_v59  ;;  %v2396_v31 = vrot.slane %v9073_v22, 5  ;;  %v10462_v22 = vld [vmem:[#allocation11_spill] sm:$0xff]  ;;  %v8153_v9 = vld [vmem:[#allocation2 + $0x38] sm:$0x1]  ;;  %v3869_v61 = vld [vmem:[#allocation2 + $0x54] sm:$0xe] }
 0x1ff   : > { %7588 = vmatmul.mubr.msk.bf16.vlgmr.msra.gmra.mrb[20].mxu1 %vm1816_vm11, %v6845_v57  ;;  %7486 = vmatmul.mubr.msk.bf16.vlgmr.msra.gmra.mrb[32].mxu0 %vm1816_vm11, %v6730_v28  ;;  %v6731_v37 = vcombine.low %v2390_v47, %v2393_v19  ;;  %v6831_v12 = vrot.slane %v3867_v0, 9  ;;  %v3959_v43 = vrot.slane %v3957_v10, 4  ;;  %v10461_v57 = vld [vmem:[#allocation12_spill] sm:$0xff]  ;;  %v6715_v38 = vrot.slane %v2325_v36, 9  ;;  %v10465_v39 = vld [vmem:[#allocation14_spill] sm:$0xff] }
 0x200   : > { %7620 = vmatpush3.bf16.msra.mxu1 %v4497_v5  ;;  %7591 = vmatprep.mubr.msk.bf16.mxu1 %vm1816_vm11, %v6846_v25  ;;  %v3960_v18 = vrot.slane %v10461_v57, 5  ;;  %v2398_v53 = vrot.slane %v2396_v31, 4  ;;  %v2399_v46 = vrot.slane %v8152_v21, 5  ;;  %v3964_v50 = vrot.slane %v9069_v23, 5  ;;  %v2327_v59 = vld [vmem:[#allocation2 + $0x3c] sm:$0xe] }
 0x201   : > { %8021 = vmatprep.subr.msk.bf16.mxu1 %vm1865_vm7, %v9305_v8  ;;  %7518 = vmatpush3.bf16.msra.mxu0 %v10462_v22  ;;  %v6847_v5 = vcombine.low %v3951_v40, %v3954_v56  ;;  %v3958_v30 = vsel %vm9245_vm1, %v6831_v12, %v3957_v10  ;;  %v2403_v1 = vrot.slane %v10463_v58, 5  ;;  %v2397_v23 = vsel %vm9245_vm1, %v6715_v38, %v2396_v31  ;;  %v8154_v10 = vld [vmem:[#allocation2 + $0x40] sm:$0xf]  ;;  %v10466_v31 = vld [vmem:[#allocation16_spill] sm:$0xff] }
 0x202   : > { %7489 = vmatprep.mubr.msk.bf16.mxu0 %vm1816_vm11, %v6731_v37  ;;  %v3961_v49 = vsel %vm9245_vm1, %v3959_v43, %v3960_v18  ;;  %v2400_v13 = vsel %vm9245_vm1, %v2398_v53, %v2399_v46  ;;  %v6832_v51 = vrot.slane %v3868_v60, 9  ;;  %v3966_v44 = vrot.slane %v3964_v50, 4  ;;  %v3870_v12 = vld [vmem:[#allocation2 + $0x60] sm:$0xe]  ;;  %v8155_v18 = vld [vmem:[#allocation2 + $0x44] sm:$0x1] }
 0x203   : > { %v3967_v33 = vrot.slane %v10464_v32, 5  ;;  %v6716_v14 = vrot.slane %v2326_v16, 9  ;;  %v2405_v3 = vrot.slane %v2403_v1, 4  ;;  %v2406_v62 = vrot.slane %v8153_v9, 5  ;;  %v2328_v53 = vld [vmem:[#allocation2 + $0x48] sm:$0xe] }
 0x204   : > { %v6848_v45 = vcombine.low %v3958_v30, %v3961_v49  ;;  %v6732_v28 = vcombine.low %v2397_v23, %v2400_v13  ;;  %v3965_v63 = vsel %vm9245_vm1, %v6832_v51, %v3964_v50  ;;  %v3971_v7 = vrot.slane %v10465_v39, 5  ;;  %v8156_v16 = vld [vmem:[#allocation2 + $0x4c] sm:$0xf]  ;;  %v8157_v13 = vld [vmem:[#allocation2 + $0x50] sm:$0x1] }
 0x205   : > { %v3968_v0 = vsel %vm9245_vm1, %v3966_v44, %v3967_v33  ;;  %v2404_v25 = vsel %vm9245_vm1, %v6716_v14, %v2403_v1  ;;  %v2407_v40 = vsel %vm9245_vm1, %v2405_v3, %v2406_v62  ;;  %v2410_v36 = vrot.slane %v8154_v10, 5  ;;  %v3871_v44 = vld [vmem:[#allocation2 + $0x6c] sm:$0xe]  ;;  %v2329_v9 = vld [vmem:[#allocation2 + $0x54] sm:$0xe] }
 0x206   : > { %v6733_v56 = vcombine.low %v2404_v25, %v2407_v40  ;;  %v6833_v47 = vrot.slane %v3869_v61, 9  ;;  %v3973_v19 = vrot.slane %v3971_v7, 4  ;;  %v3974_v37 = vrot.slane %v10466_v31, 5  ;;  %v8159_v10 = vld [vmem:[#allocation2 + $0x5c] sm:$0x1] }
 0x207   : > { %7592 = vmatmul.mubr.msk.bf16.gmra.mrb[24].mxu1 %vm1816_vm11, %v6847_v5  ;;  %7490 = vmatmul.mubr.msk.bf16.gmra.mrb[36].mxu0 %vm1816_vm11, %v6732_v28  ;;  %v6717_v43 = vrot.slane %v2327_v59, 9  ;;  %v2412_v57 = vrot.slane %v2410_v36, 4  ;;  %v2413_v60 = vrot.slane %v8155_v18, 5  ;;  %v3978_v38 = vrot.slane %v9101_v4, 5 }
 0x208   : > { %7595 = vmatprep.mubr.msk.bf16.mxu1 %vm1816_vm11, %v6848_v45  ;;  %v6849_v21 = vcombine.low %v3965_v63, %v3968_v0  ;;  %7493 = vmatprep.mubr.msk.bf16.mxu0 %vm1816_vm11, %v6733_v56  ;;  %v3972_v46 = vsel %vm9245_vm1, %v6833_v47, %v3971_v7  ;;  %v3975_v50 = vsel %vm9245_vm1, %v3973_v19, %v3974_v37  ;;  %v2417_v22 = vrot.slane %v8156_v16, 5  ;;  %v8158_v45 = vld [vmem:[#allocation2 + $0x58] sm:$0xf]  ;;  %v2330_v37 = vld [vmem:[#allocation2 + $0x60] sm:$0xe] }
 0x209   : > { %v2411_v5 = vsel %vm9245_vm1, %v6717_v43, %v2410_v36  ;;  %v2414_v30 = vsel %vm9245_vm1, %v2412_v57, %v2413_v60  ;;  %v6834_v49 = vrot.slane %v3870_v12, 9  ;;  %v3980_v4 = vrot.slane %v3978_v38, 4  ;;  %v3872_v63 = vld [vmem:[#allocation2 + $0x78] sm:$0xe]  ;;  %v8160_v12 = vld [vmem:[#allocation2 + $0x64] sm:$0xf] }
 0x20a   : > { %v3981_v58 = vrot.slane %v9109_v35, 5  ;;  %v6718_v1 = vrot.slane %v2328_v53, 9  ;;  %v2419_v23 = vrot.slane %v2417_v22, 4  ;;  %v2420_v51 = vrot.slane %v8157_v13, 5  ;;  %v10467_v0 = vld [vmem:[#allocation17_spill] sm:$0xff] }
 0x20b   : > { %v6850_v32 = vcombine.low %v3972_v46, %v3975_v50  ;;  %v6734_v33 = vcombine.low %v2411_v5, %v2414_v30  ;;  %v3979_v14 = vsel %vm9245_vm1, %v6834_v49, %v3978_v38  ;;  %v3985_v3 = vrot.slane %v9115_v29, 5  ;;  %v8161_v46 = vld [vmem:[#allocation2 + $0x68] sm:$0x1]  ;;  %v3873_v16 = vld [vmem:[#allocation2 + $0x84] sm:$0xe] }
 0x20c   : > { %v3982_v62 = vsel %vm9245_vm1, %v3980_v4, %v3981_v58  ;;  %v2418_v61 = vsel %vm9245_vm1, %v6718_v1, %v2417_v22  ;;  %v2421_v35 = vsel %vm9245_vm1, %v2419_v23, %v2420_v51  ;;  %v2424_v28 = vrot.slane %v8158_v45, 5  ;;  %v8162_v1 = vld [vmem:[#allocation2 + $0x70] sm:$0xf]  ;;  %v8163_v45 = vld [vmem:[#allocation2 + $0x74] sm:$0x1] }
 0x20d   : > { %v6735_v39 = vcombine.low %v2418_v61, %v2421_v35  ;;  %v6835_v7 = vrot.slane %v3871_v44, 9  ;;  %v3987_v59 = vrot.slane %v3985_v3, 4  ;;  %v3988_v25 = vrot.slane %v10467_v0, 5 }
 0x20e   : > { %v6719_v29 = vrot.slane %v2329_v9, 9  ;;  %v2426_v40 = vrot.slane %v2424_v28, 4  ;;  %v2427_v36 = vrot.slane %v8159_v10, 5  ;;  %v3992_v56 = vrot.slane %v9131_v55, 5 }
 0x20f   : > { %7596 = vmatmul.mubr.msk.bf16.gmra.mrb[28].mxu1 %vm1816_vm11, %v6849_v21  ;;  %7494 = vmatmul.mubr.msk.bf16.gmra.mrb[40].mxu0 %vm1816_vm11, %v6734_v33  ;;  %v3986_v47 = vsel %vm9245_vm1, %v6835_v7, %v3985_v3  ;;  %v3989_v19 = vsel %vm9245_vm1, %v3987_v59, %v3988_v25  ;;  %v6836_v31 = vrot.slane %v3872_v63, 9  ;;  %v2431_v43 = vrot.slane %v8160_v12, 5  ;;  %v3874_v33 = vld [vmem:[#allocation2 + $0x90] sm:$0xe]  ;;  %v2331_v3 = vld [vmem:[#allocation2 + $0x6c] sm:$0xe] }
 0x210   : > { %7599 = vmatprep.mubr.msk.bf16.mxu1 %vm1816_vm11, %v6850_v32  ;;  %7497 = vmatprep.mubr.msk.bf16.mxu0 %vm1816_vm11, %v6735_v39  ;;  %v6852_v57 = vcombine.low %v3986_v47, %v3989_v19  ;;  %v2428_v18 = vsel %vm9245_vm1, %v2426_v40, %v2427_v36  ;;  %v3994_v60 = vrot.slane %v3992_v56, 4  ;;  %v3995_v55 = vrot.slane %v9139_v17, 5  ;;  %v8165_v40 = vld [vmem:[#allocation2 + $0x80] sm:$0x1]  ;;  %v3875_v36 = vld [vmem:[#allocation2 + $0x9c] sm:$0xe] }
 0x211   : > { %v6851_v38 = vcombine.low %v3979_v14, %v3982_v62  ;;  %v2425_v53 = vsel %vm9245_vm1, %v6719_v29, %v2424_v28  ;;  %v2433_v21 = vrot.slane %v2431_v43, 4  ;;  %v2434_v50 = vrot.slane %v8161_v46, 5  ;;  %v2332_v62 = vld [vmem:[#allocation2 + $0x78] sm:$0xe]  ;;  %v2333_v46 = vld [vmem:[#allocation2 + $0x84] sm:$0xe] }
 0x212   : > { %v9383_v22 = vsel %vm9245_vm1, %v6836_v31, %v3992_v56  ;;  %v9387_v5 = vsel %vm9245_vm1, %v3994_v60, %v3995_v55  ;;  %v6720_v30 = vrot.slane %v2330_v37, 9  ;;  %v3999_v49 = vrot.slane %v9146_v42, 5 }
 0x213   : > { %v6736_v17 = vcombine.low %v2425_v53, %v2428_v18  ;;  %v6853_v4 = vcombine.low %v9383_v22, %v9387_v5  ;;  %v2435_v58 = vsel %vm9245_vm1, %v2433_v21, %v2434_v50  ;;  %v2438_v23 = vrot.slane %v8162_v1, 5  ;;  %v3876_v53 = vld [vmem:[#allocation2 + $0xa8] sm:$0xe]  ;;  %v2334_v22 = vld [vmem:[#allocation2 + $0x90] sm:$0xe] }
 0x214   : > { %v2432_v13 = vsel %vm9245_vm1, %v6720_v30, %v2431_v43  ;;  %v6837_v51 = vrot.slane %v3873_v16, 9  ;;  %v4001_v44 = vrot.slane %v3999_v49, 4  ;;  %v4002_v32 = vrot.slane %v9154_v20, 5  ;;  %v8164_v20 = vld [vmem:[#allocation2 + $0x7c] sm:$0xf] }
 0x215   : > { %v6737_v14 = vcombine.low %v2432_v13, %v2435_v58  ;;  %v2440_v42 = vrot.slane %v2438_v23, 4  ;;  %v4006_v9 = vrot.slane %v9161_v2, 5  ;;  %v2441_v28 = vrot.slane %v8163_v45, 5  ;;  %v8166_v43 = vld [vmem:[#allocation2 + $0x88] sm:$0xf] }
 0x216   : > { %v4000_v61 = vsel %vm9245_vm1, %v6837_v51, %v3999_v49  ;;  %v4003_v35 = vsel %vm9245_vm1, %v4001_v44, %v4002_v32  ;;  %v2445_v63 = vrot.slane %v8164_v20, 5  ;;  %v6838_v39 = vrot.slane %v3874_v33, 9  ;;  %v8167_v49 = vld [vmem:[#allocation2 + $0x8c] sm:$0x1]  ;;  %v8168_v58 = vld [vmem:[#allocation2 + $0x94] sm:$0xf] }
 0x217   : > { %7600 = vmatmul.mubr.msk.bf16.gmra.mrb[0].mxu1 %vm1816_vm11, %v6851_v38  ;;  %7498 = vmatmul.mubr.msk.bf16.gmra.mrb[44].mxu0 %vm1816_vm11, %v6736_v17  ;;  %v6854_v2 = vcombine.low %v4000_v61, %v4003_v35  ;;  %v4008_v7 = vrot.slane %v4006_v9, 4  ;;  %v4009_v59 = vrot.slane %v9169_v41, 5  ;;  %v6721_v0 = vrot.slane %v2331_v3, 9  ;;  %v8169_v33 = vld [vmem:[#allocation2 + $0x98] sm:$0x1] }
 0x218   : > { %7603 = vmatprep.mubr.msk.bf16.mxu1 %vm1816_vm11, %v6852_v57  ;;  %7501 = vmatprep.mubr.msk.bf16.mxu0 %vm1816_vm11, %v6737_v14  ;;  %v6722_v25 = vrot.slane %v2332_v62, 9  ;;  %v2447_v29 = vrot.slane %v2445_v63, 4  ;;  %v2448_v10 = vrot.slane %v8165_v40, 5  ;;  %v2442_v56 = vsel %vm9245_vm1, %v2440_v42, %v2441_v28  ;;  %v3877_v3 = vld [vmem:[#allocation2 + $0xb4] sm:$0xe] }
 0x219   : > { %v9411_v47 = vsel %vm9245_vm1, %v6838_v39, %v4006_v9  ;;  %v9415_v19 = vsel %vm9245_vm1, %v4008_v7, %v4009_v59  ;;  %v4013_v31 = vrot.slane %v9175_v27, 5  ;;  %v2439_v41 = vsel %vm9245_vm1, %v6721_v0, %v2438_v23  ;;  %v8170_v45 = vld [vmem:[#allocation2 + $0xa0] sm:$0xf] }
 0x21a   : > { %v6855_v37 = vcombine.low %v9411_v47, %v9415_v19  ;;  %v2449_v12 = vsel %vm9245_vm1, %v2447_v29, %v2448_v10  ;;  %v2452_v57 = vrot.slane %v8166_v43, 5  ;;  %v2446_v18 = vsel %vm9245_vm1, %v6722_v25, %v2445_v63  ;;  %v3878_v7 = vld [vmem:[#allocation2 + $0xc0] sm:$0xe]  ;;  %v8171_v10 = vld [vmem:[#allocation2 + $0xac] sm:$0xf] }
 0x21b   : > { %v6839_v60 = vrot.slane %v3875_v36, 9  ;;  %v4015_v55 = vrot.slane %v4013_v31, 4  ;;  %v4016_v38 = vrot.slane %v9186_v48, 5  ;;  %v6738_v27 = vcombine.low %v2439_v41, %v2442_v56 }
 0x21c   : > { %v6739_v21 = vcombine.low %v2446_v18, %v2449_v12  ;;  %v2454_v50 = vrot.slane %v2452_v57, 4  ;;  %v4020_v16 = vrot.slane %v9191_v11, 5  ;;  %v2455_v17 = vrot.slane %v8167_v49, 5  ;;  %v8172_v12 = vld [vmem:[#allocation2 + $0xa4] sm:$0x1] }
 0x21d   : > { %v4014_v5 = vsel %vm9245_vm1, %v6839_v60, %v4013_v31  ;;  %v4017_v30 = vsel %vm9245_vm1, %v4015_v55, %v4016_v38  ;;  %v2459_v1 = vrot.slane %v8168_v58, 5  ;;  %v6840_v23 = vrot.slane %v3876_v53, 9  ;;  %v8173_v55 = vld [vmem:[#allocation2 + $0xb0] sm:$0x1] }
 0x21e   : > { %v6856_v48 = vcombine.low %v4014_v5, %v4017_v30  ;;  %v4022_v13 = vrot.slane %v4020_v16, 4  ;;  %v4023_v11 = vrot.slane %v9199_v6, 5  ;;  %v6723_v51 = vrot.slane %v2333_v46, 9  ;;  %v8174_v46 = vld [vmem:[#allocation2 + $0xb8] sm:$0xf] }
 0x21f   : > { %7604 = vmatmul.mubr.msk.bf16.gmra.mrb[4].mxu1 %vm1816_vm11, %v6853_v4  ;;  %7502 = vmatmul.mubr.msk.bf16.gmra.mrb[48].mxu0 %vm1816_vm11, %v6738_v27  ;;  %v6724_v44 = vrot.slane %v2334_v22, 9  ;;  %v2461_v32 = vrot.slane %v2459_v1, 4  ;;  %v2462_v14 = vrot.slane %v8169_v33, 5  ;;  %v2456_v4 = vsel %vm9245_vm1, %v2454_v50, %v2455_v17  ;;  %v8114_v33 = vld [vmem:[#allocation2 + $0xc] sm:$0xff]  }
 0x220   : > { %7607 = vmatprep.mubr.msk.bf16.mxu1 %vm1816_vm11, %v6854_v2  ;;  %7505 = vmatprep.mubr.msk.bf16.mxu0 %vm1816_vm11, %v6739_v21  ;;  %v4021_v42 = vsel %vm9245_vm1, %v6840_v23, %v4020_v16  ;;  %v4024_v9 = vsel %vm9245_vm1, %v4022_v13, %v4023_v11  ;;  %v4027_v6 = vrot.slane %v9207_v54, 5  ;;  %v2453_v62 = vsel %vm9245_vm1, %v6723_v51, %v2452_v57 }
 0x221   : > { %v6857_v61 = vcombine.low %v4021_v42, %v4024_v9  ;;  %v2463_v35 = vsel %vm9245_vm1, %v2461_v32, %v2462_v14  ;;  %v2466_v28 = vrot.slane %v8170_v45, 5  ;;  %v2460_v20 = vsel %vm9245_vm1, %v6724_v44, %v2459_v1  ;;  %v2337_v1 = vld [vmem:[#allocation2 + $0xb4] sm:$0xe]  ;;  %v8112_v32 = vld [vmem:[#allocation2 + $0x18] sm:$0xff]   ;;  %v8113_v14 = vld [vmem:[#allocation2 + $0x24] sm:$0xff]  }
 0x222   : > { %v6841_v63 = vrot.slane %v3877_v3, 9  ;;  %v4029_v2 = vrot.slane %v4027_v6, 4  ;;  %v4030_v39 = vrot.slane %v9214_v34, 5  ;;  %v6740_v59 = vcombine.low %v2453_v62, %v2456_v4  ;;  %v738_v34 = vld [vmem:[#allocation2 + $0xcc] sm:$0x1]  ;;  %v8116_v4 = vld [vmem:[#allocation2 + $0x18] sm:$0xff]  }
 0x223   : > { %v6741_v0 = vcombine.low %v2460_v20, %v2463_v35  ;;  %v4034_v54 = vrot.slane %v9221_v24, 5  ;;  %v2468_v40 = vrot.slane %v2466_v28, 4  ;;  %v2473_v36 = vrot.slane %v8171_v10, 5  ;;  %v2335_v24 = vld [vmem:[#allocation2 + $0x9c] sm:$0xe]  ;;  %v8115_v42 = vld [vmem:[#allocation2 + $0x30] sm:$0xff]  }
 0x224   : > { %v4028_v25 = vsel %vm9245_vm1, %v6841_v63, %v4027_v6  ;;  %v4031_v29 = vsel %vm9245_vm1, %v4029_v2, %v4030_v39  ;;  %v6842_v47 = vrot.slane %v3878_v7, 9  ;;  %v4037_v31 = vrot.slane %v9229_v26, 5  ;;  %v2336_v26 = vld [vmem:[#allocation2 + $0xa8] sm:$0xe]  ;;  %v9492_v9 = vld [vmem:[%s10405_s3 + $0x20] sm:$0xf] }
 0x225   : > { %v6858_v56 = vcombine.low %v4028_v25, %v4031_v29  ;;  %v4036_v19 = vrot.slane %v4034_v54, 4  ;;  %v2475_v41 = vrot.slane %v2473_v36, 4  ;;  %v2469_v43 = vrot.slane %v8172_v12, 5  ;;  %v8118_v6 = vld [vmem:[#allocation2 + $0x24] sm:$0xff]   ;;  %v9498_v62 = vld [vmem:[#allocation2 + $0x1c] sm:$0xf] }
 0x226   : > { %v4035_v57 = vsel %vm9245_vm1, %v6842_v47, %v4034_v54  ;;  %v739_v53 = vsel %vm8477_vm3, 0, %v738_v34  ;;  %v6725_v27 = vrot.slane %v2335_v24, 9  ;;  %v2480_v50 = vrot.slane %v8174_v46, 5  ;;  %v4695_v45 = vld [vmem:[#allocation2 + $0x24] sm:$0xf]  ;;  %v8120_v20 = vld [vmem:[#allocation2 + $0x30] sm:$0xff]  }
 0x227   : > { %7608 = vmatmul.mubr.msk.bf16.gmra.mrb[8].mxu1 %vm1816_vm11, %v6855_v37  ;;  %7506 = vmatmul.mubr.msk.bf16.gmra.mrb[52].mxu0 %vm1816_vm11, %v6740_v59  ;;  %v4038_v18 = vsel %vm9245_vm1, %v4036_v19, %v4037_v31  ;;  %v2476_v37 = vrot.slane %v8173_v55, 5  ;;  %v2470_v21 = vsel %vm9245_vm1, %v2468_v40, %v2469_v43  ;;  %740 = vst [vmem:[#allocation2 + $0xcc] sm:$0x1] %v739_v53  ;;  %v6726_v16 = vrot.slane %v2336_v26, 9  ;;  %v8119_v63 = vld [vmem:[#allocation2 + $0x48] sm:$0xff]   ;;  %v8122_v2 = vld [vmem:[#allocation2 + $0x3c] sm:$0xff]  }
 0x228   : > { %7611 = vmatprep.mubr.msk.bf16.mxu1 %vm1816_vm11, %v6856_v48  ;;  %7509 = vmatprep.mubr.msk.bf16.mxu0 %vm1816_vm11, %v6741_v0  ;;  %v6859_v60 = vcombine.low %v4035_v57, %v4038_v18  ;;  %v2467_v5 = vsel %vm9245_vm1, %v6725_v27, %v2466_v28  ;;  %v2482_v58 = vrot.slane %v2480_v50, 4  ;;  %v8175_v48 = vld [vmem:[#allocation2 + $0xbc] sm:$0x1]  ;;  %v6727_v13 = vrot.slane %v2337_v1, 9  ;;  %v9508_v29 = vld [vmem:[#allocation2 + $0x28] sm:$0xf] }
 0x229   : > { %v2477_v22 = vsel %vm9245_vm1, %v2475_v41, %v2476_v37  ;;  %v6742_v30 = vcombine.low %v2467_v5, %v2470_v21  ;;  %v2474_v49 = vsel %vm9245_vm1, %v6726_v16, %v2473_v36  ;;  %v2483_v23 = vrot.slane %v8175_v48, 5  ;;  %v8117_v28 = vld [vmem:[#allocation2 + $0x3c] sm:$0xff]   ;;  %v8121_v24 = vld [vmem:[#allocation2 + $0x54] sm:$0xff]   ;;  %v8124_v41 = vld [vmem:[#allocation2 + $0x48] sm:$0xff]  }
 0x22a   : > { %v6743_v17 = vcombine.low %v2474_v49, %v2477_v22  ;;  %v2481_v51 = vsel %vm9245_vm1, %v6727_v13, %v2480_v50  ;;  %v5223_v3 = vsel %vm1865_vm7, %v9305_v8, 0  ;;  %v4692_v8 = vld [vmem:[#allocation2 + $0x18] sm:$0xf]  ;;  %v4754_v35 = vshrl.u32 %v9498_v62, 16  ;;  %v9510_v36 = vld [vmem:[#allocation2 + $0x20] sm:$0x1] }
 0x22b   : > { %v2484_v11 = vsel %vm9245_vm1, %v2482_v58, %v2483_v23  ;;  %v4741_v39 = vshrl.u32 %v4692_v8, 16  ;;  %v4744_v7 = vshll.u32 %v4692_v8, 16  ;;  %v4765_v59 = vshrl.u32 %v4695_v45, 16  ;;  %v4698_v12 = vld [vmem:[#allocation2 + $0x30] sm:$0xf]  ;;  %v8123_v43 = vld [vmem:[#allocation2 + $0x60] sm:$0xff]  }
 0x22c   : > { %v6744_v44 = vcombine.low %v2481_v51, %v2484_v11  ;;  %v4768_v0 = vshll.u32 %v4695_v45, 16  ;;  %v4756_v25 = vrot.slane %v4754_v35, 4  ;;  %v4774_v19 = vshll.u32 %v9508_v29, 16  ;;  %v9517_v26 = vld [vmem:[#allocation2 + $0x2c] sm:$0x1]  ;;  %v8126_v13 = vld [vmem:[#allocation2 + $0x78] sm:$0xff]  }
 0x22d   : > { %v4743_v40 = vrot.slane %v4741_v39, 4  ;;  %v4746_v10 = vrot.slane %v4744_v7, 5  ;;  %v4778_v31 = vshrl.u32 %v9508_v29, 16  ;;  %v4760_v18 = vshll.u32 %v9510_v36, 16  ;;  %v9522_v53 = vld [vmem:[#allocation2 + $0x34] sm:$0xf] }
 0x22e   : > { %v4770_v47 = vrot.slane %v4768_v0, 5  ;;  %v9519_v55 = vrot.slane %v4774_v19, 5  ;;  %v4789_v27 = vshrl.u32 %v4698_v12, 16  ;;  %v4792_v21 = vshll.u32 %v4698_v12, 16  ;;  %v4701_v22 = vld [vmem:[#allocation2 + $0x3c] sm:$0xf] }
 0x22f   : > { %7612 = vmatmul.mubr.msk.bf16.gmra.mrb[12].mxu1 %vm1816_vm11, %v6857_v61  ;;  %7510 = vmatmul.mubr.msk.bf16.gmra.mrb[56].mxu0 %vm1816_vm11, %v6742_v30  ;;  %v4750_v61 = vshll.u32 %v9498_v62, 16  ;;  %v4747_v57 = vor.u32 %v4746_v10, %v4743_v40  ;;  %v4780_v37 = vrot.slane %v4778_v31, 4  ;;  %v4762_v50 = vrot.slane %v4760_v18, 5  ;;  %v8125_v23 = vld [vmem:[#allocation2 + $0x6c] sm:$0xff]   ;;  %v9532_v11 = vld [vmem:[#allocation2 + $0x40] sm:$0xf] }
 0x230   : > { %7615 = vmatprep.mubr.msk.bf16.mxu1 %vm1816_vm11, %v6858_v56  ;;  %7513 = vmatprep.mubr.msk.bf16.mxu0 %vm1816_vm11, %v6743_v17  ;;  %v4767_v56 = vrot.slane %v4765_v59, 4  ;;  %v4784_v16 = vshll.u32 %v9517_v26, 16  ;;  %v4798_v49 = vshll.u32 %v9522_v53, 16  ;;  %v4791_v58 = vrot.slane %v4789_v27, 4  ;;  %v9551_v35 = vld [vmem:[#allocation2 + $0x4c] sm:$0xf] }
 0x231   : > { %v4752_v54 = vrot.slane %v4750_v61, 5  ;;  %v4748_v46 = vrot.slane %v4747_v57, 4  ;;  %v4781_v30 = vor.u32 %v4780_v37, %v9519_v55  ;;  %v4794_v1 = vrot.slane %v4792_v21, 5  ;;  %v4707_v45 = vld [vmem:[#allocation2 + $0x54] sm:$0xf]  ;;  %v8127_v18 = vld [vmem:[#allocation2 + $0x84] sm:$0xff]  }
 0x232   : > { %v4802_v48 = vshrl.u32 %v9522_v53, 16  ;;  %v4813_v51 = vshrl.u32 %v4701_v22, 16  ;;  %v9549_v61 = vrot.slane %v4798_v49, 5  ;;  %v4850_v40 = vshrl.u32 %v9551_v35, 16  ;;  %v4710_v57 = vld [vmem:[#allocation2 + $0x60] sm:$0xf] }
 0x233   : > { %v4757_v34 = vor.u32 %v4756_v25, %v4752_v54  ;;  %v4782_v8 = vrot.slane %v4781_v30, 4  ;;  %v4846_v25 = vshll.u32 %v9551_v35, 16  ;;  %v4861_v10 = vshrl.u32 %v4707_v45, 16  ;;  %v9573_v27 = vld [vmem:[#allocation2 + $0x64] sm:$0xf]  ;;  %v8128_v21 = vld [vmem:[#allocation2 + $0x90] sm:$0xff]  }
 0x234   : > { %v4815_v39 = vrot.slane %v4813_v51, 4  ;;  %v5494_v15 = vrot.slane %v9517_v26, 5 }
 0x235   : > { %v4758_v38 = vrot.slane %v4757_v34, 4 }
 0x237   : > { %7616 = vmatmul.mubr.msk.bf16.gmra.mrb[16].mxu1 %vm1816_vm11, %v6859_v60  ;;  %7514 = vmatmul.mubr.msk.bf16.gmra.mrb[60].mxu0 %vm1816_vm11, %v6744_v44  ;;  %v4771_v60 = vor.u32 %v4770_v47, %v4767_v56  ;;  %v4763_v17 = vsel %vm8538_vm10, %v4758_v38, %v4762_v50  ;;  %v4816_v44 = vshll.u32 %v4701_v22, 16  ;;  %v4864_v56 = vshll.u32 %v4707_v45, 16 }
 0x238   : > { %7621 = vmatprep.mubr.msk.bf16.mxu1 %vm1816_vm11, %v8112_v32  ;;  %7519 = vmatprep.mubr.msk.bf16.mxu0 %vm1816_vm11, %v8114_v33  ;;  %v4753_v32 = vsel %vm8538_vm10, %v4748_v46, %v4752_v54  ;;  %v4786_v33 = vrot.slane %v4784_v16, 5  ;;  %v9558_v54 = vld [vmem:[#allocation2 + $0x44] sm:$0x1]  ;;  %v9575_v46 = vrot.slane %v4846_v25, 5  ;;  %v4852_v50 = vrot.slane %v4850_v40, 4 }
 0x239   : > { %v9525_v5 = vrot.slane %v4771_v60, 4  ;;  %v4818_v7 = vrot.slane %v4816_v44, 5  ;;  %v4863_v16 = vrot.slane %v4861_v10, 4  ;;  %v4866_v22 = vrot.slane %v4864_v56, 5  ;;  %v8129_v56 = vld [vmem:[#allocation2 + $0x9c] sm:$0xff]  }
 0x23a   : > { %v4787_v47 = vsel %vm8538_vm10, %v4782_v8, %v4786_v33  ;;  %v4853_v45 = vor.u32 %v4852_v50, %v9575_v46 }
 0x23b   : > { %v4819_v60 = vor.u32 %v4818_v7, %v4815_v39 }
 0x23f   : > { %7622 = vmatmul.mubr.msk.bf16.vlgmr.msra.gmra.mrb[20].mxu1 %vm1816_vm11, %v8113_v14  ;;  %7520 = vmatmul.mubr.msk.bf16.vlgmr.msra.gmra.mrb[32].mxu0 %vm1816_vm11, %v8116_v4  ;;  %v9538_v14 = vsel %vm1865_vm7, %v9492_v9, 0  ;;  %v4704_v4 = vld [vmem:[#allocation2 + $0x48] sm:$0xf] }
 0x240   : > { %7654 = vmatpush3.bf16.msra.mxu1 %v5223_v3  ;;  %7625 = vmatprep.mubr.msk.bf16.mxu1 %vm1816_vm11, %v8115_v42  ;;  %v9540_v3 = vld [vmem:[#allocation2 + $0x38] sm:$0x1]  ;;  %v9543_v42 = vcombine.low %v4753_v32, %v4763_v17  ;;  %v4837_v59 = vshrl.u32 %v4704_v4, 16  ;;  %v4840_v0 = vshll.u32 %v4704_v4, 16  ;;  %v4885_v17 = vshrl.u32 %v4710_v57, 16 }
 0x241   : > { %7523 = vmatprep.mubr.msk.bf16.mxu0 %vm1816_vm11, %v8118_v6  ;;  %8022 = vmatprep.subr.msk.bf16.mxu1 %vm1865_vm7, %v9492_v9  ;;  %v4777_v6 = vsel %vm8538_vm10, %v9525_v5, %v9519_v55  ;;  %v4795_v9 = vor.u32 %v4794_v1, %v4791_v58  ;;  %v4808_v19 = vshll.u32 %v9540_v3, 16  ;;  %v4832_v55 = vshll.u32 %v9558_v54, 16  ;;  %v9578_v5 = vld [vmem:[#allocation2 + $0x50] sm:$0x1]  ;;  %v4713_v4 = vld [vmem:[#allocation2 + $0x6c] sm:$0xf] }
 0x242   : > { %v4839_v37 = vrot.slane %v4837_v59, 4  ;;  %v4842_v38 = vrot.slane %v4840_v0, 5  ;;  %v4888_v58 = vshll.u32 %v4710_v57, 16  ;;  %v9583_v1 = vcombine.low %v4777_v6, %v4787_v47  ;;  %v8130_v57 = vld [vmem:[#allocation2 + $0xa8] sm:$0xff]  }
 0x243   : > { %v9596_v33 = vrot.slane %v4832_v55, 5  ;;  %v9598_v6 = vrot.slane %v4819_v60, 4  ;;  %v4887_v7 = vrot.slane %v4885_v17, 4  ;;  %v4909_v40 = vshrl.u32 %v4713_v4, 16 }
 0x244   : > { %v4843_v8 = vor.u32 %v4842_v38, %v4839_v37  ;;  %v4890_v59 = vrot.slane %v4888_v58, 5  ;;  %v4912_v10 = vshll.u32 %v4713_v4, 16  ;;  %v4716_v38 = vld [vmem:[#allocation2 + $0x78] sm:$0xf] }
 0x245   : > { %v4911_v58 = vrot.slane %v4909_v40, 4  ;;  %v4933_v4 = vshrl.u32 %v4716_v38, 16  ;;  %v9646_v40 = vld [vmem:[#allocation2 + $0x84] sm:$0xf] }
 0x246   : > { %v4844_v60 = vrot.slane %v4843_v8, 4 }
 0x247   : > { %7626 = vmatmul.mubr.msk.bf16.gmra.mrb[24].mxu1 %vm1816_vm11, %v8117_v28  ;;  %7524 = vmatmul.mubr.msk.bf16.gmra.mrb[36].mxu0 %vm1816_vm11, %v8120_v20  ;;  %v4804_v28 = vrot.slane %v4802_v48, 4  ;;  %v4822_v20 = vshll.u32 %v9532_v11, 16  ;;  %v9585_v48 = vrot.slane %v4808_v19, 5 }
 0x248   : > { %7629 = vmatprep.mubr.msk.bf16.mxu1 %vm1816_vm11, %v8119_v63  ;;  %7527 = vmatprep.mubr.msk.bf16.mxu0 %vm1816_vm11, %v8122_v2  ;;  %v4826_v63 = vshrl.u32 %v9532_v11, 16  ;;  %v9556_v2 = vld [vmem:[#allocation2 + $0x58] sm:$0xf] }
 0x249   : > { %v4870_v31 = vshll.u32 %v9556_v2, 16  ;;  %v4874_v34 = vshrl.u32 %v9556_v2, 16  ;;  %v9570_v12 = vrot.slane %v4822_v20, 5  ;;  %v9604_v20 = vld [vmem:[#allocation2 + $0x5c] sm:$0x1] }
 0x24a   : > { %v4880_v37 = vshll.u32 %v9604_v20, 16 }
 0x24b   : > { %v9580_v30 = vrot.slane %v4870_v31, 5  ;;  %v4876_v49 = vrot.slane %v4874_v34, 4  ;;  %v9613_v31 = vld [vmem:[#allocation2 + $0x68] sm:$0x1] }
 0x24c   : > { %v4882_v8 = vrot.slane %v4880_v37, 5  ;;  %v9663_v37 = vld [vmem:[#allocation2 + $0x80] sm:$0x1] }
 0x24d   : > { %v4877_v39 = vor.u32 %v4876_v49, %v9580_v30  ;;  %v9623_v49 = vld [vmem:[#allocation2 + $0x7c] sm:$0xf] }
 0x24f   : > { %7630 = vmatmul.mubr.msk.bf16.gmra.mrb[28].mxu1 %vm1816_vm11, %v8121_v24  ;;  %7528 = vmatmul.mubr.msk.bf16.gmra.mrb[40].mxu0 %vm1816_vm11, %v8124_v41  ;;  %v9567_v24 = vrot.slane %v4795_v9, 4  ;;  %v4805_v41 = vor.u32 %v4804_v28, %v9549_v61  ;;  %v4856_v9 = vshll.u32 %v9578_v5, 16  ;;  %v9602_v28 = vld [vmem:[#allocation2 + $0x70] sm:$0xf] }
 0x250   : > { %7633 = vmatprep.mubr.msk.bf16.mxu1 %vm1816_vm11, %v8123_v43  ;;  %v4828_v43 = vrot.slane %v4826_v63, 4  ;;  %v4867_v63 = vor.u32 %v4866_v22, %v4863_v16  ;;  %v4918_v34 = vshll.u32 %v9602_v28, 16  ;;  %v4878_v16 = vrot.slane %v4877_v39, 4 }
 0x251   : > { %v4801_v51 = vsel %vm8538_vm10, %v9567_v24, %v9549_v61  ;;  %v9593_v44 = vrot.slane %v4805_v41, 4  ;;  %v4922_v41 = vshrl.u32 %v9602_v28, 16  ;;  %v4858_v55 = vrot.slane %v4856_v9, 5 }
 0x252   : > { %v4829_v32 = vor.u32 %v4828_v43, %v9570_v12  ;;  %v794_v43 = vld [vmem:[#allocation2 + $0xd4] sm:$0x1]  ;;  %v4868_v50 = vrot.slane %v4867_v63, 4  ;;  %v4891_v22 = vor.u32 %v4890_v59, %v4887_v7  ;;  %v4942_v9 = vshll.u32 %v9623_v49, 16 }
 0x253   : > { %v4811_v47 = vsel %vm8538_vm10, %v9593_v44, %v9585_v48  ;;  %v4914_v48 = vrot.slane %v4912_v10, 5  ;;  %v9631_v44 = vrot.slane %v4918_v34, 5  ;;  %v4946_v63 = vshrl.u32 %v9623_v49, 16 }
 0x254   : > { %v4830_v19 = vrot.slane %v4829_v32, 4  ;;  %v4924_v32 = vrot.slane %v4922_v41, 4  ;;  %v4849_v7 = vsel %vm8538_vm10, %v4844_v60, %v9575_v46  ;;  %v4883_v10 = vsel %vm8538_vm10, %v4878_v16, %v4882_v8  ;;  %v5422_v8 = vld [vmem:[#allocation2 + $0x48] sm:$0xe] }
 0x255   : > { %v4915_v34 = vor.u32 %v4914_v48, %v4911_v58  ;;  %v4873_v46 = vsel %vm8538_vm10, %v4868_v50, %v9580_v30  ;;  %v4957_v16 = vshrl.u32 %v9646_v40, 16  ;;  %v9676_v30 = vcombine.low %v4801_v51, %v4811_v47  ;;  %v9684_v58 = vld [vmem:[#allocation2 + $0x88] sm:$0xf]  ;;  %v9686_v48 = vld [vmem:[#allocation2 + $0x90] sm:$0xf] }
 0x256   : > { %v4835_v39 = vsel %vm8538_vm10, %v4830_v19, %v9596_v33  ;;  %v8131_v33 = vld [vmem:[#allocation2 + $0xb4] sm:$0xff]   ;;  %v8132_v19 = vld [vmem:[#allocation2 + $0xc0] sm:$0xff]  }
 0x257   : > { %7634 = vmatmul.mubr.msk.bf16.gmra.mrb[0].mxu1 %vm1816_vm11, %v8125_v23  ;;  %v4894_v23 = vshll.u32 %v9573_v27, 16  ;;  %v9697_v24 = vrot.slane %v4915_v34, 4  ;;  %v9701_v47 = vld [vmem:[#allocation2 + $0x94] sm:$0xf]  ;;  %v9825_v34 = vld [vmem:[#allocation2 + $0xb0] sm:$0x1] }
 0x258   : > { %7637 = vmatprep.mubr.msk.bf16.mxu1 %vm1816_vm11, %v8126_v13  ;;  %v4898_v13 = vshrl.u32 %v9573_v27, 16 }
 0x259   : > { %v9607_v0 = vrot.slane %v4894_v23, 5  ;;  %v795_v23 = vsel %vm8487_vm5, 0, %v794_v43  ;;  %v4925_v43 = vor.u32 %v4924_v32, %v9631_v44  ;;  %v5512_v32 = vrot.slane %v9551_v35, 5 }
 0x25a   : > { %v4900_v25 = vrot.slane %v4898_v13, 4  ;;  %v9629_v13 = vld [vmem:[#allocation2 + $0x74] sm:$0x1]  ;;  %796 = vst [vmem:[#allocation2 + $0xd4] sm:$0x1] %v795_v23  ;;  %v5515_v35 = vrot.slane %v9578_v5, 5 }
 0x25b   : > { %v4928_v41 = vshll.u32 %v9629_v13, 16  ;;  %v9703_v23 = vrot.slane %v4925_v43, 4  ;;  %v5501_v43 = vrot.slane %v9540_v3, 5  ;;  %v6946_v3 = vrot.slane %v5422_v8, 9 }
 0x25c   : > { %v4901_v17 = vor.u32 %v4900_v25, %v9607_v0  ;;  %v9644_v25 = vrot.slane %v4891_v22, 4 }
 0x25d   : > { %v9699_v51 = vrot.slane %v4928_v41, 5  ;;  %v9748_v8 = vsel %vm9245_vm1, %v6946_v3, %v5512_v32  ;;  %v5430_v41 = vld [vmem:[#allocation2 + $0xa8] sm:$0xe] }
 0x25f   : > { %7638 = vmatmul.mubr.msk.bf16.gmra.mrb[4].mxu1 %vm1816_vm11, %v8127_v18  ;;  %v4825_v18 = vsel %vm8538_vm10, %v9598_v6, %v9570_v12  ;;  %v4936_v6 = vshll.u32 %v4716_v38, 16  ;;  %v9665_v38 = vrot.slane %v4942_v9, 5  ;;  %v9711_v9 = vrot.slane %v4957_v16, 4  ;;  %v5423_v12 = vld [vmem:[#allocation2 + $0x54] sm:$0xe] }
 0x260   : > { %7641 = vmatprep.mubr.msk.bf16.mxu1 %vm1816_vm11, %v8128_v21  ;;  %v4854_v21 = vrot.slane %v4853_v45, 4  ;;  %v4904_v45 = vshll.u32 %v9613_v31, 16  ;;  %v9678_v50 = vcombine.low %v4825_v18, %v4835_v39  ;;  %v5420_v18 = vld [vmem:[#allocation2 + $0x30] sm:$0xe]  ;;  %v5498_v39 = vrot.slane %v9522_v53, 5 }
 0x261   : > { %v9659_v60 = vrot.slane %v4936_v6, 5  ;;  %v5505_v16 = vrot.slane %v9532_v11, 5 }
 0x262   : > { %v4859_v59 = vsel %vm8538_vm10, %v4854_v21, %v4858_v55  ;;  %v9661_v55 = vrot.slane %v4904_v45, 5  ;;  %v9667_v21 = vrot.slane %v4946_v63, 4  ;;  %v9832_v63 = vld [vmem:[#allocation2 + $0xb8] sm:$0xf] }
 0x263   : > { %v9680_v22 = vcombine.low %v4849_v7, %v4859_v59  ;;  %v5421_v7 = vld [vmem:[#allocation2 + $0x3c] sm:$0xe]  ;;  %v8133_v59 = vld [vmem:[#allocation2 + $0xcc] sm:$0xff]   ;;  %v5507_v61 = vrot.slane %v5505_v16, 4 }
 0x264   : > { %v6945_v45 = vrot.slane %v5421_v7, 9  ;;  %v5514_v7 = vrot.slane %v5512_v32, 4 }
 0x266   : > { %v9755_v5 = vsel %vm9245_vm1, %v5514_v7, %v5515_v35  ;;  %v5533_v7 = vrot.slane %v9602_v28, 5  ;;  %v5536_v35 = vrot.slane %v9629_v13, 5 }
 0x267   : > { %7642 = vmatmul.mubr.msk.bf16.gmra.mrb[8].mxu1 %vm1816_vm11, %v8129_v56  ;;  %v9650_v56 = vrot.slane %v4901_v17, 4  ;;  %v9682_v17 = vcombine.low %v4873_v46, %v4883_v10  ;;  %v5500_v46 = vrot.slane %v5498_v39, 4  ;;  %v10499_v26 = vcombine.low %v9748_v8, %v9755_v5 }
 0x268   : > { %7645 = vmatprep.mubr.msk.bf16.mxu1 %vm1816_vm11, %v8130_v57  ;;  %v9657_v57 = vrot.slane %v4933_v4, 4 }
 0x26f   : > { %7646 = vmatmul.mubr.msk.bf16.gmra.mrb[12].mxu1 %vm1816_vm11, %v8131_v33  ;;  %v6944_v33 = vrot.slane %v5420_v18, 9  ;;  %v9729_v18 = vsel %vm9245_vm1, %v5500_v46, %v5501_v43  ;;  %v5519_v46 = vrot.slane %v9556_v2, 5  ;;  %v5426_v2 = vld [vmem:[#allocation2 + $0x78] sm:$0xe] }
 0x270   : > { %7649 = vmatprep.mubr.msk.bf16.mxu1 %vm1816_vm11, %v8132_v19  ;;  %v5508_v19 = vrot.slane %v9558_v54, 5 }
 0x271   : > { %v9724_v53 = vsel %vm9245_vm1, %v6944_v33, %v5498_v39  ;;  %v9737_v39 = vsel %vm9245_vm1, %v6945_v45, %v5505_v16  ;;  %v5424_v33 = vld [vmem:[#allocation2 + $0x60] sm:$0xe]  ;;  %v5425_v45 = vld [vmem:[#allocation2 + $0x6c] sm:$0xe]  ;;  %v5521_v32 = vrot.slane %v5519_v46, 4 }
 0x272   : > { %v9744_v54 = vsel %vm9245_vm1, %v5507_v61, %v5508_v19  ;;  %v5526_v61 = vrot.slane %v9573_v27, 5  ;;  %v6948_v16 = vrot.slane %v5424_v33, 9  ;;  %v6949_v11 = vrot.slane %v5425_v45, 9  ;;  %v5427_v33 = vld [vmem:[#allocation2 + $0x84] sm:$0xe] }
 0x273   : > { %v9777_v19 = vld [vmem:[#allocation2 + $0x8c] sm:$0x1]  ;;  %v6950_v45 = vrot.slane %v5426_v2, 9 }
 0x274   : > { %v5528_v43 = vrot.slane %v5526_v61, 4  ;;  %v9773_v27 = vsel %vm9245_vm1, %v6948_v16, %v5526_v61  ;;  %v5428_v16 = vld [vmem:[#allocation2 + $0x90] sm:$0xe]  ;;  %v6951_v61 = vrot.slane %v5427_v33, 9  ;;  %v5550_v33 = vrot.slane %v9777_v19, 5 }
 0x275   : > { %10472 = vst [vmem:[#allocation15_spill] sm:$0xff] %v9773_v27  ;;  %v5432_v27 = vld [vmem:[#allocation2 + $0xc0] sm:$0xe] }
 0x277   : > { %7650 = vmatmul.mubr.msk.bf16.gmra.mrb[16].mxu1 %vm1816_vm11, %v8133_v59  ;;  %v6947_v59 = vrot.slane %v5423_v12, 9  ;;  %v5529_v12 = vrot.slane %v9613_v31, 5  ;;  %v5540_v31 = vrot.slane %v9623_v49, 5  ;;  %v9791_v49 = vsel %vm9245_vm1, %v6949_v11, %v5533_v7 }
 0x278   : > { %7655 = vmatprep.mubr.msk.bf16.mxu1 %vm1816_vm11, %v9543_v42  ;;  %v5522_v42 = vrot.slane %v9604_v20, 5  ;;  %10474 = vst [vmem:[#allocation14_spill] sm:$0xff] %v9791_v49  ;;  %v5547_v11 = vrot.slane %v9684_v58, 5 }
 0x279   : > { %v9764_v3 = vsel %vm9245_vm1, %v6947_v59, %v5519_v46  ;;  %v9783_v28 = vsel %vm9245_vm1, %v5528_v43, %v5529_v12  ;;  %v5535_v46 = vrot.slane %v5533_v7, 4  ;;  %v5542_v13 = vrot.slane %v5540_v31, 4  ;;  %v9796_v43 = vld [vmem:[#allocation2 + $0xa0] sm:$0xf]  ;;  %v5429_v7 = vld [vmem:[#allocation2 + $0x9c] sm:$0xe] }
 0x27a   : > { %10470 = vst [vmem:[#allocation12_spill] sm:$0xff] %v9764_v3  ;;  %v9769_v20 = vsel %vm9245_vm1, %v5521_v32, %v5522_v42  ;;  %10473 = vst [vmem:[#allocation13_spill] sm:$0xff] %v9783_v28  ;;  %v9785_v42 = vld [vmem:[#allocation2 + $0x98] sm:$0x1]  ;;  %v5543_v32 = vrot.slane %v9663_v37, 5  ;;  %v9804_v2 = vsel %vm9245_vm1, %v6950_v45, %v5540_v31  ;;  %v5549_v45 = vrot.slane %v5547_v11, 4 }
 0x27b   : > { %10471 = vst [vmem:[#allocation11_spill] sm:$0xff] %v9769_v20  ;;  %v9800_v12 = vsel %vm9245_vm1, %v5535_v46, %v5536_v35  ;;  %10476 = vst [vmem:[#allocation17_spill] sm:$0xff] %v9804_v2  ;;  %v9812_v59 = vld [vmem:[#allocation2 + $0xac] sm:$0xf]  ;;  %v5554_v46 = vrot.slane %v9701_v47, 5  ;;  %v5557_v4 = vrot.slane %v9785_v42, 5  ;;  %v9829_v35 = vsel %vm9245_vm1, %v6951_v61, %v5547_v11 }
 0x27c   : > { %10475 = vst [vmem:[#allocation16_spill] sm:$0xff] %v9800_v12  ;;  %v9818_v31 = vsel %vm9245_vm1, %v5542_v13, %v5543_v32  ;;  %v6953_v32 = vrot.slane %v5429_v7, 9  ;;  %v5561_v10 = vrot.slane %v9796_v43, 5  ;;  %v5431_v61 = vld [vmem:[#allocation2 + $0xb4] sm:$0xe]  ;;  %v6954_v12 = vrot.slane %v5430_v41, 9 }
 0x27d   : > { %10477 = vst [vmem:[#allocation9_spill] sm:$0xff] %v9818_v31  ;;  %v5556_v13 = vrot.slane %v5554_v46, 4  ;;  %v5568_v31 = vrot.slane %v9812_v59, 5  ;;  %v9844_v11 = vld [vmem:[#allocation2 + $0xbc] sm:$0x1]  ;;  %v5571_v28 = vrot.slane %v9825_v34, 5 }
 0x27e   : > { %v9846_v7 = vld [vmem:[#allocation2 + $0xc4] sm:$0xf]  ;;  %v5433_v20 = vld [vmem:[#allocation2 + $0xcc] sm:$0xe]  ;;  %v9861_v3 = vld [vmem:[#allocation2 + $0xc8] sm:$0x1] }
 0x27f   : > { %7656 = vmatmul.mubr.msk.bf16.vlgmr.msra.gmra.mrb[20].mxu1 %vm1816_vm11, %v9583_v1  ;;  %v9810_v1 = vld [vmem:[#allocation2 + $0xa4] sm:$0x1]  ;;  %v5570_v49 = vrot.slane %v5568_v31, 4  ;;  %v9869_v41 = vsel %vm9245_vm1, %v6954_v12, %v5568_v31  ;;  %v5582_v12 = vrot.slane %v9846_v7, 5  ;;  %v9886_v31 = vld [vmem:[#allocation2 + $0xd4] sm:$0x1] }
 0x280   : > { %7688 = vmatpush3.bf16.msra.mxu1 %v9538_v14  ;;  %7659 = vmatprep.mubr.msk.bf16.mxu1 %vm1816_vm11, %v9676_v30  ;;  %v6952_v30 = vrot.slane %v5428_v16, 9  ;;  %v9836_v14 = vsel %vm9245_vm1, %v5549_v45, %v5550_v33  ;;  %v5564_v6 = vrot.slane %v9810_v1, 5  ;;  %v9852_v33 = vsel %vm9245_vm1, %v5556_v13, %v5557_v4 }
 0x281   : > { %10479 = vst [vmem:[#allocation18_spill] sm:$0xff] %v9852_v33  ;;  %v5563_v45 = vrot.slane %v5561_v10, 4  ;;  %v6955_v13 = vrot.slane %v5431_v61, 9  ;;  %v9880_v2 = vsel %vm9245_vm1, %v5570_v49, %v5571_v28  ;;  %v6957_v33 = vrot.slane %v5433_v20, 9  ;;  %v10500_v52 = vld [vmem:[#allocation12_spill] sm:$0xff] }
 0x282   : > { %v9840_v16 = vsel %vm9245_vm1, %v6952_v30, %v5554_v46  ;;  %v9858_v30 = vsel %vm9245_vm1, %v6953_v32, %v5561_v10  ;;  %v5575_v46 = vrot.slane %v9832_v63, 5  ;;  %v9874_v10 = vld [vmem:[#allocation2 + $0xd0] sm:$0xf]  ;;  %10482 = vst [vmem:[#allocation21_spill] sm:$0xff] %v9880_v2  ;;  %v5584_v32 = vrot.slane %v5582_v12, 4 }
 0x283   : > { %10478 = vst [vmem:[#allocation10_spill] sm:$0xff] %v9840_v16  ;;  %10480 = vst [vmem:[#allocation19_spill] sm:$0xff] %v9858_v30  ;;  %v9865_v4 = vsel %vm9245_vm1, %v5563_v45, %v5564_v6  ;;  %v5578_v6 = vrot.slane %v9844_v11, 5  ;;  %v6956_v45 = vrot.slane %v5432_v27, 9  ;;  %v5589_v28 = vrot.slane %v9874_v10, 5 }
 0x284   : > { %10481 = vst [vmem:[#allocation20_spill] sm:$0xff] %v9865_v4  ;;  %v5577_v61 = vrot.slane %v5575_v46, 4  ;;  %v5585_v4 = vrot.slane %v9861_v3, 5  ;;  %v5592_v49 = vrot.slane %v9886_v31, 5  ;;  %v10483_v30 = vshll.u32 %v9646_v40, 16 }
 0x285   : > { %v9905_v20 = vsel %vm9245_vm1, %v6956_v45, %v5582_v12  ;;  %v9915_v40 = vsel %vm9245_vm1, %v6957_v33, %v5589_v28  ;;  %v10490_v33 = vshll.u32 %v9701_v47, 16  ;;  %v10512_v5 = vcombine.low %v9829_v35, %v9836_v14 }
 0x286   : > { %v4962_v16 = vrot.slane %v10483_v30, 5  ;;  %v9911_v2 = vsel %vm9245_vm1, %v5584_v32, %v5585_v4  ;;  %v10486_v30 = vshll.u32 %v9684_v58, 16  ;;  %v10489_v4 = vshll.u32 %v9686_v48, 16 }
 0x287   : > { %7660 = vmatmul.mubr.msk.bf16.gmra.mrb[24].mxu1 %vm1816_vm11, %v9678_v50  ;;  %v9901_v50 = vsel %vm9245_vm1, %v5577_v61, %v5578_v6  ;;  %v10487_v6 = vshrl.u32 %v9684_v58, 16  ;;  %v10488_v61 = vshrl.u32 %v9686_v48, 16  ;;  %v6973_v27 = vcombine.low %v9905_v20, %v9911_v2 }
 0x288   : > { %7663 = vmatprep.mubr.msk.bf16.mxu1 %vm1816_vm11, %v9680_v22  ;;  %v9897_v22 = vsel %vm9245_vm1, %v6955_v13, %v5575_v46  ;;  %10485 = vst [vmem:[#allocation23_spill] sm:$0xff] %v9901_v50  ;;  %v5591_v46 = vrot.slane %v5589_v28, 4  ;;  %v9919_v13 = vrot.slane %v10486_v30, 5  ;;  %v4986_v32 = vrot.slane %v10489_v4, 5 }
 0x289   : > { %10484 = vst [vmem:[#allocation22_spill] sm:$0xff] %v9897_v22  ;;  %v4972_v12 = vrot.slane %v10487_v6, 4  ;;  %v4983_v45 = vrot.slane %v10488_v61, 4  ;;  %v9931_v50 = vrot.slane %v10490_v33, 5  ;;  %v10491_v28 = vshrl.u32 %v9701_v47, 16 }
 0x28a   : > { %v4725_v22 = vld [vmem:[#allocation2 + $0x9c] sm:$0xf]  ;;  %v9937_v58 = vsel %vm9245_vm1, %v5591_v46, %v5592_v49  ;;  %v10492_v6 = vsel %vm8538_vm10, %v9650_v56, %v9661_v55  ;;  %v10493_v48 = vsel %vm8538_vm10, %v9644_v25, %v9607_v0  ;;  %v4931_v47 = vsel %vm8538_vm10, %v9703_v23, %v9699_v51 }
 0x28b   : > { %v4996_v30 = vrot.slane %v10491_v28, 4  ;;  %v6916_v61 = vcombine.low %v10493_v48, %v10492_v6  ;;  %v10494_v49 = vor.u32 %v9659_v60, %v9657_v57  ;;  %v6974_v4 = vcombine.low %v9915_v40, %v9937_v58 }
 0x28c   : > { %v4921_v0 = vsel %vm8538_vm10, %v9697_v24, %v9631_v44  ;;  %v10495_v25 = vor.u32 %v9667_v21, %v9665_v38  ;;  %v4963_v57 = vor.u32 %v4962_v16, %v9711_v9  ;;  %v4973_v60 = vor.u32 %v4972_v12, %v9919_v13  ;;  %v4728_v16 = vld [vmem:[#allocation2 + $0xa8] sm:$0xf] }
 0x28d   : > { %v4940_v46 = vrot.slane %v10494_v49, 4  ;;  %v5005_v55 = vshrl.u32 %v4725_v22, 16  ;;  %v5008_v51 = vshll.u32 %v4725_v22, 16  ;;  %v6917_v23 = vcombine.low %v4921_v0, %v4931_v47 }
 0x28e   : > { %v4950_v56 = vrot.slane %v10495_v25, 4  ;;  %v4987_v28 = vor.u32 %v4986_v32, %v4983_v45  ;;  %v4997_v6 = vor.u32 %v4996_v30, %v9931_v50  ;;  %v4976_v21 = vshll.u32 %v9777_v19, 16 }
 0x28f   : > { %7664 = vmatmul.mubr.msk.bf16.gmra.mrb[28].mxu1 %vm1816_vm11, %v9682_v17  ;;  %v10496_v17 = vshll.u32 %v9663_v37, 16  ;;  %v4945_v44 = vsel %vm8538_vm10, %v4940_v46, %v9665_v38  ;;  %v5014_v24 = vshll.u32 %v9796_v43, 16  ;;  %v5018_v9 = vshrl.u32 %v9796_v43, 16 }
 0x290   : > { %7667 = vmatprep.mubr.msk.bf16.mxu1 %vm1816_vm11, %v6916_v61  ;;  %v5000_v37 = vshll.u32 %v9785_v42, 16  ;;  %v5038_v12 = vshll.u32 %v9812_v59, 16  ;;  %v5042_v45 = vshrl.u32 %v9812_v59, 16  ;;  %v4964_v32 = vrot.slane %v4963_v57, 4  ;;  %v4731_v59 = vld [vmem:[#allocation2 + $0xb4] sm:$0xf] }
 0x291   : > { %v4954_v33 = vrot.slane %v10496_v17, 5  ;;  %v4974_v30 = vrot.slane %v4973_v60, 4  ;;  %v5007_v48 = vrot.slane %v5005_v55, 4  ;;  %v5010_v38 = vrot.slane %v5008_v51, 5 }
 0x292   : > { %v4988_v61 = vrot.slane %v4987_v28, 4  ;;  %v4998_v19 = vrot.slane %v4997_v6, 4  ;;  %v5029_v47 = vshrl.u32 %v4728_v16, 16  ;;  %v5032_v49 = vshll.u32 %v4728_v16, 16 }
 0x293   : > { %v4955_v22 = vsel %vm8538_vm10, %v4950_v56, %v4954_v33  ;;  %v4978_v43 = vrot.slane %v4976_v21, 5  ;;  %v9984_v0 = vrot.slane %v5014_v24, 5  ;;  %v5020_v25 = vrot.slane %v5018_v9, 4  ;;  %v4734_v9 = vld [vmem:[#allocation2 + $0xc0] sm:$0xf] }
 0x294   : > { %v6918_v46 = vcombine.low %v4945_v44, %v4955_v22  ;;  %v5002_v42 = vrot.slane %v5000_v37, 5  ;;  %v9987_v56 = vrot.slane %v5038_v12, 5  ;;  %v5044_v17 = vrot.slane %v5042_v45, 4 }
 0x295   : > { %v4969_v57 = vsel %vm8538_vm10, %v4964_v32, %v9919_v13  ;;  %v4979_v60 = vsel %vm8538_vm10, %v4974_v30, %v4978_v43  ;;  %v5011_v55 = vor.u32 %v5010_v38, %v5007_v48  ;;  %v5024_v51 = vshll.u32 %v9810_v1, 16 }
 0x296   : > { %v5003_v33 = vsel %vm8538_vm10, %v4998_v19, %v5002_v42  ;;  %v5031_v28 = vrot.slane %v5029_v47, 4  ;;  %v5034_v6 = vrot.slane %v5032_v49, 5  ;;  %v5021_v44 = vor.u32 %v5020_v25, %v9984_v0  ;;  %v4737_v19 = vld [vmem:[#allocation2 + $0xcc] sm:$0xf] }
 0x297   : > { %7668 = vmatmul.mubr.msk.bf16.gmra.mrb[0].mxu1 %vm1816_vm11, %v6917_v23  ;;  %v4993_v23 = vsel %vm8538_vm10, %v4988_v61, %v9931_v50  ;;  %v5053_v21 = vshrl.u32 %v4731_v59, 16  ;;  %v5062_v13 = vshll.u32 %v9832_v63, 16  ;;  %v5066_v24 = vshrl.u32 %v9832_v63, 16 }
 0x298   : > { %7671 = vmatprep.mubr.msk.bf16.mxu1 %vm1816_vm11, %v6918_v46  ;;  %v5045_v16 = vor.u32 %v5044_v17, %v9987_v56  ;;  %v5056_v1 = vshll.u32 %v4731_v59, 16  ;;  %v5086_v22 = vshll.u32 %v9846_v7, 16  ;;  %v5090_v50 = vshrl.u32 %v9846_v7, 16 }
 0x299   : > { %v6919_v37 = vcombine.low %v4969_v57, %v4979_v60  ;;  %v6920_v12 = vcombine.low %v4993_v23, %v5003_v33  ;;  %v5012_v45 = vrot.slane %v5011_v55, 4  ;;  %v5026_v32 = vrot.slane %v5024_v51, 5 }
 0x29a   : > { %v5035_v30 = vor.u32 %v5034_v6, %v5031_v28  ;;  %v5048_v48 = vshll.u32 %v9825_v34, 16  ;;  %v5077_v38 = vshrl.u32 %v4734_v9, 16  ;;  %v5080_v61 = vshll.u32 %v4734_v9, 16 }
 0x29b   : > { %v5022_v47 = vrot.slane %v5021_v44, 4  ;;  %v5055_v63 = vrot.slane %v5053_v21, 4  ;;  %v5064_v49 = vrot.slane %v5062_v13, 5  ;;  %v5068_v46 = vrot.slane %v5066_v24, 4 }
 0x29c   : > { %v5046_v43 = vrot.slane %v5045_v16, 4  ;;  %v5058_v25 = vrot.slane %v5056_v1, 5  ;;  %v5088_v42 = vrot.slane %v5086_v22, 5  ;;  %v5092_v7 = vrot.slane %v5090_v50, 4 }
 0x29d   : > { %v5101_v17 = vshrl.u32 %v4737_v19, 16  ;;  %v5104_v59 = vshll.u32 %v4737_v19, 16  ;;  %v5110_v57 = vshll.u32 %v9874_v10, 16  ;;  %v5114_v34 = vshrl.u32 %v9874_v10, 16 }
 0x29e   : > { %v5036_v60 = vrot.slane %v5035_v30, 4  ;;  %v5050_v55 = vrot.slane %v5048_v48, 5  ;;  %v5079_v51 = vrot.slane %v5077_v38, 4  ;;  %v5082_v23 = vrot.slane %v5080_v61, 5 }
 0x29f   : > { %7672 = vmatmul.mubr.msk.bf16.gmra.mrb[4].mxu1 %vm1816_vm11, %v6919_v37  ;;  %v5017_v33 = vsel %vm8538_vm10, %v5012_v45, %v9984_v0  ;;  %v5027_v28 = vsel %vm8538_vm10, %v5022_v47, %v5026_v32  ;;  %v5069_v6 = vor.u32 %v5068_v46, %v5064_v49  ;;  %v5059_v21 = vor.u32 %v5058_v25, %v5055_v63 }
 0x2a0   : > { %7675 = vmatprep.mubr.msk.bf16.mxu1 %vm1816_vm11, %v6920_v12  ;;  %v5051_v44 = vsel %vm8538_vm10, %v5046_v43, %v5050_v55  ;;  %v5072_v13 = vshll.u32 %v9844_v11, 16  ;;  %v5093_v24 = vor.u32 %v5092_v7, %v5088_v42  ;;  %v5103_v10 = vrot.slane %v5101_v17, 4  ;;  %v5975_v12 = vld [vmem:[%s10407_s5] sm:$0xf] }
 0x2a1   : > { %v5106_v9 = vrot.slane %v5104_v59, 5  ;;  %v5112_v16 = vrot.slane %v5110_v57, 5  ;;  %v5116_v1 = vrot.slane %v5114_v34, 4  ;;  %v6921_v22 = vcombine.low %v5017_v33, %v5027_v28  ;;  %8023 = vmatprep.subr.msk.bf16.mxu0 %vm1865_vm7, %v5975_v12 }
 0x2a2   : > { %v5041_v0 = vsel %vm8538_vm10, %v5036_v60, %v9987_v56  ;;  %v5083_v50 = vor.u32 %v5082_v23, %v5079_v51  ;;  %v5096_v37 = vshll.u32 %v9861_v3, 16  ;;  %v5070_v32 = vrot.slane %v5069_v6, 4 }
 0x2a3   : > { %v6922_v45 = vcombine.low %v5041_v0, %v5051_v44  ;;  %v6032_v11 = vsel %vm1865_vm7, %v5975_v12, 0  ;;  %v5074_v30 = vrot.slane %v5072_v13, 5  ;;  %v5094_v48 = vrot.slane %v5093_v24, 4  ;;  %v5419_v13 = vld [vmem:[#allocation2 + $0x24] sm:$0xe]  ;;  %v10503_v0 = vld [vmem:[#allocation15_spill] sm:$0xff] }
 0x2a4   : > { %7722 = vmatpush3.bf16.msra.mxu0 %v6032_v11  ;;  %v5060_v56 = vrot.slane %v5059_v21, 4  ;;  %v5107_v38 = vor.u32 %v5106_v9, %v5103_v10  ;;  %v5117_v3 = vor.u32 %v5116_v1, %v5112_v16  ;;  %v5120_v61 = vshll.u32 %v9886_v31, 16  ;;  %v10501_v1 = vld [vmem:[#allocation11_spill] sm:$0xff]  ;;  %v10510_v12 = vld [vmem:[#allocation9_spill] sm:$0xff] }
 0x2a5   : > { %v5084_v19 = vrot.slane %v5083_v50, 4  ;;  %v5098_v47 = vrot.slane %v5096_v37, 5  ;;  %v5075_v63 = vsel %vm8538_vm10, %v5070_v32, %v5074_v30  ;;  %v5484_v43 = vrot.slane %v9498_v62, 5  ;;  %v10504_v50 = vld [vmem:[#allocation13_spill] sm:$0xff]  ;;  %v10507_v37 = vld [vmem:[#allocation16_spill] sm:$0xff]  ;;  %v10514_v32 = vld [vmem:[#allocation18_spill] sm:$0xff] }
 0x2a6   : > { %v5065_v25 = vsel %vm8538_vm10, %v5060_v56, %v5064_v49  ;;  %v5108_v7 = vrot.slane %v5107_v38, 4  ;;  %v5118_v17 = vrot.slane %v5117_v3, 4  ;;  %v5122_v59 = vrot.slane %v5120_v61, 5  ;;  %v5418_v49 = vld [vmem:[#allocation2 + $0x18] sm:$0xe]  ;;  %v10516_v30 = vld [vmem:[#allocation19_spill] sm:$0xff] }
 0x2a7   : > { %7676 = vmatmul.mubr.msk.bf16.gmra.mrb[8].mxu1 %vm1816_vm11, %v6921_v22  ;;  %v5099_v46 = vsel %vm8538_vm10, %v5094_v48, %v5098_v47  ;;  %v6923_v57 = vcombine.low %v5065_v25, %v5075_v63  ;;  %v5089_v31 = vsel %vm8538_vm10, %v5084_v19, %v5088_v42  ;;  %v5486_v60 = vrot.slane %v5484_v43, 4  ;;  %v10517_v48 = vld [vmem:[#allocation20_spill] sm:$0xff]  ;;  %v10519_v38 = vld [vmem:[#allocation21_spill] sm:$0xff]  ;;  %v10521_v47 = vld [vmem:[#allocation22_spill] sm:$0xff] }
 0x2a8   : > { %7679 = vmatprep.mubr.msk.bf16.mxu1 %vm1816_vm11, %v6922_v45  ;;  %v6924_v34 = vcombine.low %v5089_v31, %v5099_v46  ;;  %v5113_v55 = vsel %vm8538_vm10, %v5108_v7, %v5112_v16  ;;  %v5123_v62 = vsel %vm8538_vm10, %v5118_v17, %v5122_v59  ;;  %v5487_v51 = vrot.slane %v9510_v36, 5  ;;  %v10513_v45 = vld [vmem:[#allocation10_spill] sm:$0xff]  ;;  %v10522_v63 = vld [vmem:[#allocation23_spill] sm:$0xff] }
 0x2a9   : > { %v5491_v23 = vrot.slane %v9508_v29, 5  ;;  %v6925_v33 = vcombine.low %v5113_v55, %v5123_v62  ;;  %v6942_v28 = vrot.slane %v5418_v49, 9  ;;  %v6943_v36 = vrot.slane %v5419_v13, 9 }
 0x2aa   : > { %v5488_v42 = vsel %vm9245_vm1, %v5486_v60, %v5487_v51  ;;  %v10497_v9 = vcombine.low %v9724_v53, %v9729_v18  ;;  %v10498_v16 = vcombine.low %v9737_v39, %v9744_v54  ;;  %v10502_v22 = vcombine.low %v10500_v52, %v10501_v1  ;;  %v10506_v18 = vld [vmem:[#allocation14_spill] sm:$0xff]  ;;  %v10509_v54 = vld [vmem:[#allocation17_spill] sm:$0xff] }
 0x2ab   : > { %v5485_v6 = vsel %vm9245_vm1, %v6942_v28, %v5484_v43  ;;  %v5493_v21 = vrot.slane %v5491_v23, 4  ;;  %v5492_v24 = vsel %vm9245_vm1, %v6943_v36, %v5491_v23  ;;  %v10505_v53 = vcombine.low %v10503_v0, %v10504_v50  ;;  %v10160_v36 = vld [vmem:[%s10406_s4] ss:$0 sm:$0xff] }
 0x2ac   : > { %v6959_v44 = vcombine.low %v5485_v6, %v5488_v42  ;;  %v10508_v39 = vcombine.low %v10506_v18, %v10507_v37  ;;  %v10511_v8 = vcombine.low %v10509_v54, %v10510_v12  ;;  %v10515_v11 = vcombine.low %v10513_v45, %v10514_v32 }
 0x2ad   : > { %v5495_v29 = vsel %vm9245_vm1, %v5493_v21, %v5494_v15  ;;  %v10518_v56 = vcombine.low %v10516_v30, %v10517_v48  ;;  %v10520_v3 = vcombine.low %v9869_v41, %v10519_v38  ;;  %v10523_v46 = vcombine.low %v10521_v47, %v10522_v63 }
 0x2ae   : > { %v6960_v10 = vcombine.low %v5492_v24, %v5495_v29 }
 0x2af   : > { %7680 = vmatmul.mubr.msk.bf16.gmra.mrb[12].mxu1 %vm1816_vm11, %v6923_v57 }
 0x2b0   : > { %7683 = vmatprep.mubr.msk.bf16.mxu1 %vm1816_vm11, %v6924_v34 }
 0x2b7   : > { %7684 = vmatmul.mubr.msk.bf16.gmra.mrb[16].mxu1 %vm1816_vm11, %v6925_v33 }
 0x2b8   : > { %7689 = vmatprep.mubr.msk.bf16.mxu1 %vm1816_vm11, %v6959_v44 }
 0x2bf   : > { %7690 = vmatmul.mubr.msk.bf16.vlgmr.msra.gmra.mrb[20].mxu1 %vm1816_vm11, %v6960_v10 }
 0x2c0   : > { %7693 = vmatprep.mubr.msk.bf16.mxu1 %vm1816_vm11, %v10497_v9 }
 0x2c7   : > { %7694 = vmatmul.mubr.msk.bf16.gmra.mrb[24].mxu1 %vm1816_vm11, %v10498_v16 }
 0x2c8   : > { %7697 = vmatprep.mubr.msk.bf16.mxu1 %vm1816_vm11, %v10499_v26 }
 0x2cf   : > { %7698 = vmatmul.mubr.msk.bf16.gmra.mrb[28].mxu1 %vm1816_vm11, %v10502_v22 }
 0x2d0   : > { %7701 = vmatprep.mubr.msk.bf16.mxu1 %vm1816_vm11, %v10505_v53 }
 0x2d7   : > { %7702 = vmatmul.mubr.msk.bf16.gmra.mrb[0].mxu1 %vm1816_vm11, %v10508_v39 }
 0x2d8   : > { %7705 = vmatprep.mubr.msk.bf16.mxu1 %vm1816_vm11, %v10511_v8 }
 0x2df   : > { %7706 = vmatmul.mubr.msk.bf16.gmra.mrb[4].mxu1 %vm1816_vm11, %v10512_v5 }
 0x2e0   : > { %7709 = vmatprep.mubr.msk.bf16.mxu1 %vm1816_vm11, %v10515_v11 }
 0x2e7   : > { %7710 = vmatmul.mubr.msk.bf16.gmra.mrb[8].mxu1 %vm1816_vm11, %v10518_v56 }
 0x2e8   : > { %7713 = vmatprep.mubr.msk.bf16.mxu1 %vm1816_vm11, %v10520_v3 }
 0x2ea   : > { %v10105_v61 = vpop.f32.mrb[44].mxu0 }
 0x2eb   : > { %v10107_v35 = vpop.f32.mrb[45].mxu0 }
 0x2ec   : > { %v10109_v14 = vpop.f32.mrb[46].mxu0 }
 0x2ed   : > { %v10111_v19 = vpop.f32.mrb[47].mxu0 }
 0x2ef   : > { %7714 = vmatmul.mubr.msk.bf16.gmra.mrb[12].mxu1 %vm1816_vm11, %v10523_v46 }
 0x2f0   : > { %7717 = vmatprep.mubr.msk.bf16.mxu1 %vm1816_vm11, %v6973_v27 }
 0x2f2   : > { %v10121_v41 = vpop.f32.mrb[48].mxu0 }
 0x2f3   : > { %v10123_v43 = vpop.f32.mrb[49].mxu0 }
 0x2f4   : > { %v10125_v25 = vpop.f32.mrb[50].mxu0 }
 0x2f5   : > { %v10127_v7 = vpop.f32.mrb[51].mxu0 }
 0x2f7   : > { %7718 = vmatmul.mubr.msk.bf16.gmra.mrb[16].mxu1 %vm1816_vm11, %v6974_v4 }
 0x2fa   : > { %v10133_v17 = vpop.f32.mrb[52].mxu0 }
 0x2fb   : > { %v10135_v59 = vpop.f32.mrb[53].mxu0 }
 0x2fc   : > { %v10137_v2 = vpop.f32.mrb[54].mxu0 }
 0x2fd   : > { %v10139_v20 = vpop.f32.mrb[55].mxu0 }
 0x302   : > { %v10141_v27 = vpop.f32.mrb[56].mxu0 }
 0x303   : > { %v10143_v57 = vpop.f32.mrb[57].mxu0 }
 0x304   : > { %v10145_v31 = vpop.f32.mrb[58].mxu0 }
 0x305   : > { %v10147_v34 = vpop.f32.mrb[59].mxu0 }
 0x30a   : > { %v10149_v60 = vpop.f32.mrb[60].mxu0 }
 0x30b   : > { %v10151_v40 = vpop.f32.mrb[61].mxu0 }
 0x30c   : > { %v10153_v58 = vpop.f32.mrb[62].mxu0 }
 0x30d   : > { %v10155_v4 = vpop.f32.mrb[63].mxu0 }
 0x312   : > { %v7521_v55 = vpop.f32.mrb[32].mxu0 }
 0x313   : > { %v2978_v62 = vpop.f32.mrb[33].mxu0 }
 0x314   : > { %v7522_v49 = vpop.f32.mrb[34].mxu0 }
 0x315   : > { %v2981_v51 = vpop.f32.mrb[35].mxu0 }
 0x31a   : > { %v7525_v23 = vpop.f32.mrb[36].mxu0 }
 0x31b   : > { %v2994_v33 = vpop.f32.mrb[37].mxu0 }
 0x31c   : > { %v7526_v28 = vpop.f32.mrb[38].mxu0 }
 0x31d   : > { %v2997_v42 = vpop.f32.mrb[39].mxu0 }
 0x322   : > { %v7529_v6 = vpop.f32.mrb[40].mxu0 }
 0x323   : > { %v3010_v44 = vpop.f32.mrb[41].mxu0 }
 0x324   : > { %v7530_v21 = vpop.f32.mrb[42].mxu0 }
 0x325   : > { %v3013_v13 = vpop.f32.mrb[43].mxu0 }
 0x392   : > { %v7691_v15 = vpop.f32.mrb[20].mxu1 }
 0x393   : > { %v7757_v29 = vadd.f32 %v7691_v15, %v7521_v55  ;;  %v5729_v24 = vpop.f32.mrb[21].mxu1 }
 0x394   : > { %v7758_v10 = vadd.f32 %v5729_v24, %v2978_v62  ;;  %v7692_v9 = vpop.f32.mrb[22].mxu1 }
 0x395   : > { %v5897_v16 = vadd.f32 %v7757_v29, %v10160_v36  ;;  %v7759_v26 = vadd.f32 %v7692_v9, %v7522_v49  ;;  %v5732_v52 = vpop.f32.mrb[23].mxu1 }
 0x396   : > { %v5895_v1 = vadd.f32 %v7758_v10, %v10160_v36  ;;  %v7760_v22 = vadd.f32 %v5732_v52, %v2981_v51 }
 0x397   : > { %v5898_v0 = vadd.f32 %v7759_v26, %v10160_v36  ;;  %v5929_v53 = vmax.f32 %v5897_v16, 0.0 }
 0x398   : > { %v5896_v50 = vadd.f32 %v7760_v22, %v10160_v36  ;;  %v5927_v37 = vmax.f32 %v5895_v1, 0.0 }
 0x399   : > { %v5930_v18 = vmax.f32 %v5898_v0, 0.0 }
 0x39a   : > { %v5928_v39 = vmax.f32 %v5896_v50, 0.0  ;;  %v7695_v54 = vpop.f32.mrb[24].mxu1 }
 0x39b   : > { %v5960_v12 = vpack.c.bf16 %v5930_v18, %v5929_v53  ;;  %v7761_v8 = vadd.f32 %v7695_v54, %v7525_v23  ;;  %v5745_v5 = vpop.f32.mrb[25].mxu1 }
 0x39c   : > { %v5959_v45 = vpack.c.bf16 %v5928_v39, %v5927_v37  ;;  %v7762_v32 = vadd.f32 %v5745_v5, %v2994_v33  ;;  %v7696_v11 = vpop.f32.mrb[26].mxu1 }
 0x39d   : > { %v5901_v30 = vadd.f32 %v7761_v8, %v10160_v36  ;;  %v7763_v48 = vadd.f32 %v7696_v11, %v7526_v28  ;;  %v5748_v56 = vpop.f32.mrb[27].mxu1 }
 0x39e   : > { %v5899_v38 = vadd.f32 %v7762_v32, %v10160_v36  ;;  %v7764_v3 = vadd.f32 %v5748_v56, %v2997_v42  ;;  %7723 = vmatprep.mubr.msk.bf16.mxu0 %vm1816_vm11, %v5959_v45 }
 0x39f   : > { %v5902_v47 = vadd.f32 %v7763_v48, %v10160_v36  ;;  %7724 = vmatmul.mubr.msk.bf16.vlgmr.msra.gmra.mrb[64].mxu0 %vm1816_vm11, %v5960_v12  ;;  %v5933_v46 = vmax.f32 %v5901_v30, 0.0 }
 0x3a0   : > { %v5900_v63 = vadd.f32 %v7764_v3, %v10160_v36  ;;  %v5931_v62 = vmax.f32 %v5899_v38, 0.0 }
 0x3a1   : > { %v5934_v55 = vmax.f32 %v5902_v47, 0.0 }
 0x3a2   : > { %v5932_v49 = vmax.f32 %v5900_v63, 0.0  ;;  %v7699_v51 = vpop.f32.mrb[28].mxu1 }
 0x3a3   : > { %v5962_v23 = vpack.c.bf16 %v5934_v55, %v5933_v46  ;;  %v7765_v33 = vadd.f32 %v7699_v51, %v7529_v6  ;;  %v5761_v28 = vpop.f32.mrb[29].mxu1 }
 0x3a4   : > { %v5961_v15 = vpack.c.bf16 %v5932_v49, %v5931_v62  ;;  %v7766_v29 = vadd.f32 %v5761_v28, %v3010_v44  ;;  %v7700_v24 = vpop.f32.mrb[30].mxu1 }
 0x3a5   : > { %v5905_v42 = vadd.f32 %v7765_v33, %v10160_v36  ;;  %v7767_v10 = vadd.f32 %v7700_v24, %v7530_v21  ;;  %v5764_v9 = vpop.f32.mrb[31].mxu1 }
 0x3a6   : > { %v5903_v16 = vadd.f32 %v7766_v29, %v10160_v36  ;;  %v7768_v26 = vadd.f32 %v5764_v9, %v3013_v13  ;;  %7727 = vmatprep.mubr.msk.bf16.mxu0 %vm1816_vm11, %v5961_v15 }
 0x3a7   : > { %v5906_v52 = vadd.f32 %v7767_v10, %v10160_v36  ;;  %7728 = vmatmul.mubr.msk.bf16.gmra.mrb[68].mxu0 %vm1816_vm11, %v5962_v23  ;;  %v5937_v6 = vmax.f32 %v5905_v42, 0.0 }
 0x3a8   : > { %v5904_v1 = vadd.f32 %v7768_v26, %v10160_v36  ;;  %v5935_v0 = vmax.f32 %v5903_v16, 0.0 }
 0x3a9   : > { %v5938_v22 = vmax.f32 %v5906_v52, 0.0 }
 0x3aa   : > { %v5936_v44 = vmax.f32 %v5904_v1, 0.0  ;;  %v7703_v50 = vpop.f32.mrb[0].mxu1 }
 0x3ab   : > { %v5964_v53 = vpack.c.bf16 %v5938_v22, %v5937_v6  ;;  %v7769_v21 = vadd.f32 %v7703_v50, %v10105_v61  ;;  %v5777_v18 = vpop.f32.mrb[1].mxu1 }
 0x3ac   : > { %v5963_v37 = vpack.c.bf16 %v5936_v44, %v5935_v0  ;;  %v7770_v13 = vadd.f32 %v5777_v18, %v10107_v35  ;;  %v7704_v39 = vpop.f32.mrb[2].mxu1 }
 0x3ad   : > { %v5909_v54 = vadd.f32 %v7769_v21, %v10160_v36  ;;  %v7771_v12 = vadd.f32 %v7704_v39, %v10109_v14  ;;  %v5780_v8 = vpop.f32.mrb[3].mxu1 }
 0x3ae   : > { %v5907_v5 = vadd.f32 %v7770_v13, %v10160_v36  ;;  %v7772_v45 = vadd.f32 %v5780_v8, %v10111_v19  ;;  %7731 = vmatprep.mubr.msk.bf16.mxu0 %vm1816_vm11, %v5963_v37 }
 0x3af   : > { %v5910_v32 = vadd.f32 %v7771_v12, %v10160_v36  ;;  %7732 = vmatmul.mubr.msk.bf16.gmra.mrb[72].mxu0 %vm1816_vm11, %v5964_v53  ;;  %v5941_v11 = vmax.f32 %v5909_v54, 0.0 }
 0x3b0   : > { %v5908_v61 = vadd.f32 %v7772_v45, %v10160_v36  ;;  %v5939_v30 = vmax.f32 %v5907_v5, 0.0 }
 0x3b1   : > { %v5942_v35 = vmax.f32 %v5910_v32, 0.0 }
 0x3b2   : > { %v5940_v48 = vmax.f32 %v5908_v61, 0.0  ;;  %v7707_v56 = vpop.f32.mrb[4].mxu1 }
 0x3b3   : > { %v5966_v38 = vpack.c.bf16 %v5942_v35, %v5941_v11  ;;  %v7773_v14 = vadd.f32 %v7707_v56, %v10121_v41  ;;  %v5793_v3 = vpop.f32.mrb[5].mxu1 }
 0x3b4   : > { %v5965_v47 = vpack.c.bf16 %v5940_v48, %v5939_v30  ;;  %v7774_v19 = vadd.f32 %v5793_v3, %v10123_v43  ;;  %v7708_v63 = vpop.f32.mrb[6].mxu1 }
 0x3b5   : > { %v5913_v46 = vadd.f32 %v7773_v14, %v10160_v36  ;;  %v7775_v55 = vadd.f32 %v7708_v63, %v10125_v25  ;;  %v5796_v62 = vpop.f32.mrb[7].mxu1 }
 0x3b6   : > { %v5911_v49 = vadd.f32 %v7774_v19, %v10160_v36  ;;  %v7776_v51 = vadd.f32 %v5796_v62, %v10127_v7  ;;  %7735 = vmatprep.mubr.msk.bf16.mxu0 %vm1816_vm11, %v5965_v47 }
 0x3b7   : > { %v5914_v23 = vadd.f32 %v7775_v55, %v10160_v36  ;;  %7736 = vmatmul.mubr.msk.bf16.gmra.mrb[76].mxu0 %vm1816_vm11, %v5966_v38  ;;  %v5945_v33 = vmax.f32 %v5913_v46, 0.0 }
 0x3b8   : > { %v5912_v41 = vadd.f32 %v7776_v51, %v10160_v36  ;;  %v5943_v28 = vmax.f32 %v5911_v49, 0.0 }
 0x3b9   : > { %v5946_v43 = vmax.f32 %v5914_v23, 0.0  ;;  %v7176_v23 = vld [vmem:[%s8431_s15 + $0x8] sm:$0xff]  }
 0x3ba   : > { %v5944_v15 = vmax.f32 %v5912_v41, 0.0  ;;  %v7711_v29 = vpop.f32.mrb[8].mxu1  ;;  %v10235_v41 = vld [vmem:[%s10408_s6] ss:$0 sm:$0xff] }
 0x3bb   : > { %v5968_v24 = vpack.c.bf16 %v5946_v43, %v5945_v33  ;;  %v7777_v25 = vadd.f32 %v7711_v29, %v10133_v17  ;;  %v5809_v42 = vpop.f32.mrb[9].mxu1  ;;  %v7118_v33 = vunpack.c.l.bf16 %v7176_v23  ;;  %v7119_v29 = vunpack.c.h.bf16 %v7176_v23 }
 0x3bc   : > { %v5967_v10 = vpack.c.bf16 %v5944_v15, %v5943_v28  ;;  %v7778_v7 = vadd.f32 %v5809_v42, %v10135_v59  ;;  %v7712_v9 = vpop.f32.mrb[10].mxu1 }
 0x3bd   : > { %v5917_v16 = vadd.f32 %v7777_v25, %v10160_v36  ;;  %v7779_v26 = vadd.f32 %v7712_v9, %v10137_v2  ;;  %v5812_v52 = vpop.f32.mrb[11].mxu1 }
 0x3be   : > { %v5915_v1 = vadd.f32 %v7778_v7, %v10160_v36  ;;  %v7780_v6 = vadd.f32 %v5812_v52, %v10139_v20  ;;  %7739 = vmatprep.mubr.msk.bf16.mxu0 %vm1816_vm11, %v5967_v10  ;;  %v7178_v52 = vld [vmem:[%s8431_s15 + $0x18] sm:$0xff]  }
 0x3bf   : > { %v5918_v22 = vadd.f32 %v7779_v26, %v10160_v36  ;;  %7740 = vmatmul.mubr.msk.bf16.gmra.mrb[80].mxu0 %vm1816_vm11, %v5968_v24  ;;  %v5949_v0 = vmax.f32 %v5917_v16, 0.0 }
 0x3c0   : > { %v5916_v17 = vadd.f32 %v7780_v6, %v10160_v36  ;;  %v5947_v44 = vmax.f32 %v5915_v1, 0.0 }
 0x3c1   : > { %v5950_v59 = vmax.f32 %v5918_v22, 0.0  ;;  %v7177_v22 = vld [vmem:[%s8431_s15 + $0x10] sm:$0xff]  }
 0x3c2   : > { %v5948_v50 = vmax.f32 %v5916_v17, 0.0  ;;  %v7715_v53 = vpop.f32.mrb[12].mxu1 }
 0x3c3   : > { %v5970_v21 = vpack.c.bf16 %v5950_v59, %v5949_v0  ;;  %v7781_v2 = vadd.f32 %v7715_v53, %v10141_v27  ;;  %v5825_v18 = vpop.f32.mrb[13].mxu1 }
 0x3c4   : > { %v5969_v37 = vpack.c.bf16 %v5948_v50, %v5947_v44  ;;  %v7782_v20 = vadd.f32 %v5825_v18, %v10143_v57  ;;  %v7716_v13 = vpop.f32.mrb[14].mxu1  ;;  %v7126_v50 = vunpack.c.l.bf16 %v7178_v52  ;;  %v7122_v18 = vunpack.c.l.bf16 %v7177_v22 }
 0x3c5   : > { %v5921_v39 = vadd.f32 %v7781_v2, %v10160_v36  ;;  %v7783_v54 = vadd.f32 %v7716_v13, %v10145_v31  ;;  %v5828_v12 = vpop.f32.mrb[15].mxu1 }
 0x3c6   : > { %v5919_v8 = vadd.f32 %v7782_v20, %v10160_v36  ;;  %v7784_v5 = vadd.f32 %v5828_v12, %v10147_v34  ;;  %7743 = vmatprep.mubr.msk.bf16.mxu0 %vm1816_vm11, %v5969_v37 }
 0x3c7   : > { %v5922_v45 = vadd.f32 %v7783_v54, %v10160_v36  ;;  %7744 = vmatmul.mubr.msk.bf16.gmra.mrb[84].mxu0 %vm1816_vm11, %v5970_v21  ;;  %v5953_v32 = vmax.f32 %v5921_v39, 0.0  ;;  %v7127_v39 = vunpack.c.h.bf16 %v7178_v52 }
 0x3c8   : > { %v5920_v27 = vadd.f32 %v7784_v5, %v10160_v36  ;;  %v5951_v61 = vmax.f32 %v5919_v8, 0.0  ;;  %v7123_v5 = vunpack.c.h.bf16 %v7177_v22 }
 0x3c9   : > { %v5954_v57 = vmax.f32 %v5922_v45, 0.0 }
 0x3ca   : > { %v5952_v11 = vmax.f32 %v5920_v27, 0.0  ;;  %v7719_v35 = vpop.f32.mrb[16].mxu1 }
 0x3cb   : > { %v5972_v30 = vpack.c.bf16 %v5954_v57, %v5953_v32  ;;  %v7785_v31 = vadd.f32 %v7719_v35, %v10149_v60  ;;  %v5841_v48 = vpop.f32.mrb[17].mxu1 }
 0x3cc   : > { %v5971_v56 = vpack.c.bf16 %v5952_v11, %v5951_v61  ;;  %v7786_v34 = vadd.f32 %v5841_v48, %v10151_v40  ;;  %v7720_v38 = vpop.f32.mrb[18].mxu1  ;;  %v7180_v11 = vld [vmem:[%s8431_s15 + $0x28] sm:$0xff]  }
 0x3cd   : > { %v5925_v14 = vadd.f32 %v7785_v31, %v10160_v36  ;;  %v7787_v3 = vadd.f32 %v7720_v38, %v10153_v58  ;;  %v5844_v47 = vpop.f32.mrb[19].mxu1  ;;  %v7179_v31 = vld [vmem:[%s8431_s15 + $0x20] sm:$0xff]  }
 0x3ce   : > { %v5923_v19 = vadd.f32 %v7786_v34, %v10160_v36  ;;  %v7788_v63 = vadd.f32 %v5844_v47, %v10155_v4  ;;  %7747 = vmatprep.mubr.msk.bf16.mxu0 %vm1816_vm11, %v5971_v56  ;;  %v7113_v4 = vld [vmem:[%s8431_s15] sm:$0xff]  }
 0x3cf   : > { %v5926_v60 = vadd.f32 %v7787_v3, %v10160_v36  ;;  %7748 = vmatmul.mubr.msk.bf16.gmra.mrb[88].mxu0 %vm1816_vm11, %v5972_v30  ;;  %v5957_v46 = vmax.f32 %v5925_v14, 0.0  ;;  %v7114_v43 = vunpack.c.l.bf16 %v7113_v4  ;;  %v7115_v42 = vunpack.c.h.bf16 %v7113_v4 }
 0x3d0   : > { %v5924_v40 = vadd.f32 %v7788_v63, %v10160_v36  ;;  %v5955_v62 = vmax.f32 %v5923_v19, 0.0  ;;  %v7134_v14 = vunpack.c.l.bf16 %v7180_v11  ;;  %v7130_v63 = vunpack.c.l.bf16 %v7179_v31 }
 0x3d1   : > { %v5958_v55 = vmax.f32 %v5926_v60, 0.0 }
 0x3d2   : > { %v5956_v49 = vmax.f32 %v5924_v40, 0.0 }
 0x3d3   : > { %v5974_v58 = vpack.c.bf16 %v5958_v55, %v5957_v46  ;;  %v7135_v55 = vunpack.c.h.bf16 %v7180_v11 }
 0x3d4   : > { %v5973_v51 = vpack.c.bf16 %v5956_v49, %v5955_v62 }
 0x3d6   : > { %7751 = vmatprep.mubr.msk.bf16.mxu0 %vm1816_vm11, %v5973_v51  ;;  %v7131_v51 = vunpack.c.h.bf16 %v7179_v31 }
 0x3d7   : > { %7752 = vmatmul.mubr.msk.bf16.gmra.mrb[92].mxu0 %vm1816_vm11, %v5974_v58 }
 0x472   : > { %v7725_v36 = vpop.f32.mrb[64].mxu0 }
 0x473   : > { %v6077_v28 = vadd.f32 %v7725_v36, %v10235_v41  ;;  %v6068_v15 = vpop.f32.mrb[65].mxu0 }
 0x474   : > { %v6069_v24 = vadd.f32 %v10235_v41, %v6068_v15  ;;  %v7726_v25 = vpop.f32.mrb[66].mxu0 }
 0x475   : > { %v6261_v10 = vadd.f32 %v7118_v33, %v6077_v28  ;;  %v6080_v7 = vadd.f32 %v7726_v25, %v10235_v41  ;;  %v6071_v9 = vpop.f32.mrb[67].mxu0  ;;  %v7182_v28 = vld [vmem:[%s8431_s15 + $0x38] sm:$0xff]  }
 0x476   : > { %v6259_v16 = vadd.f32 %v7114_v43, %v6069_v24  ;;  %v6072_v26 = vadd.f32 %v10235_v41, %v6071_v9  ;;  %v7181_v24 = vld [vmem:[%s8431_s15 + $0x30] sm:$0xff]   ;;  %v7142_v9 = vunpack.c.l.bf16 %v7182_v28 }
 0x477   : > { %v6293_v1 = vmax.f32 %v6261_v10, 0.0  ;;  %v6262_v6 = vadd.f32 %v7119_v29, %v6080_v7 }
 0x478   : > { %v6291_v17 = vmax.f32 %v6259_v16, 0.0  ;;  %v6260_v0 = vadd.f32 %v7115_v42, %v6072_v26 }
 0x479   : > { %v7081_v59 = vpack.c.bf16 %v6293_v1, %v6293_v1  ;;  %v6294_v44 = vmax.f32 %v6262_v6, 0.0  ;;  %v7138_v1 = vunpack.c.l.bf16 %v7181_v24 }
 0x47a   : > { %v7079_v53 = vpack.c.bf16 %v6291_v17, %v6291_v17  ;;  %v6292_v21 = vmax.f32 %v6260_v0, 0.0  ;;  %v7729_v2 = vpop.f32.mrb[68].mxu0  ;;  %v7143_v0 = vunpack.c.h.bf16 %v7182_v28 }
 0x47b   : > { %6454 = vst.msk [vmem:[%s10245_s19 + $0x8] sm:$0xf] %vm6451_vm2, %v7081_v59  ;;  %v7082_v37 = vpack.c.bf16 %v6294_v44, %v6294_v44  ;;  %v6093_v20 = vadd.f32 %v7729_v2, %v10235_v41  ;;  %v6084_v13 = vpop.f32.mrb[69].mxu0 }
 0x47c   : > { %6452 = vst.msk [vmem:[%s10245_s19] sm:$0xf] %vm6451_vm2, %v7079_v53  ;;  %v7080_v54 = vpack.c.bf16 %v6292_v21, %v6292_v21  ;;  %v6085_v12 = vadd.f32 %v10235_v41, %v6084_v13  ;;  %v7730_v8 = vpop.f32.mrb[70].mxu0  ;;  %v7139_v53 = vunpack.c.h.bf16 %v7181_v24  ;;  %v7184_v13 = vld [vmem:[%s8431_s15 + $0x48] sm:$0xff]  }
 0x47d   : > { %6455 = vst.msk [vmem:[%s10245_s19 + $0xc] sm:$0xf] %vm6451_vm2, %v7082_v37  ;;  %v6265_v45 = vadd.f32 %v7126_v50, %v6093_v20  ;;  %v6096_v27 = vadd.f32 %v7730_v8, %v10235_v41  ;;  %v6087_v32 = vpop.f32.mrb[71].mxu0 }
 0x47e   : > { %6453 = vst.msk [vmem:[%s10245_s19 + $0x4] sm:$0xf] %vm6451_vm2, %v7080_v54  ;;  %v6263_v57 = vadd.f32 %v7122_v18, %v6085_v12  ;;  %v6088_v61 = vadd.f32 %v10235_v41, %v6087_v32  ;;  %v7183_v12 = vld [vmem:[%s8431_s15 + $0x40] sm:$0xff]   ;;  %v7150_v32 = vunpack.c.l.bf16 %v7184_v13 }
 0x47f   : > { %v6297_v35 = vmax.f32 %v6265_v45, 0.0  ;;  %v6266_v30 = vadd.f32 %v7127_v39, %v6096_v27 }
 0x480   : > { %v6295_v48 = vmax.f32 %v6263_v57, 0.0  ;;  %v6264_v56 = vadd.f32 %v7123_v5, %v6088_v61 }
 0x481   : > { %v7085_v34 = vpack.c.bf16 %v6297_v35, %v6297_v35  ;;  %v6298_v38 = vmax.f32 %v6266_v30, 0.0  ;;  %v7146_v35 = vunpack.c.l.bf16 %v7183_v12 }
 0x482   : > { %v7083_v3 = vpack.c.bf16 %v6295_v48, %v6295_v48  ;;  %v6296_v47 = vmax.f32 %v6264_v56, 0.0  ;;  %v7733_v19 = vpop.f32.mrb[72].mxu0  ;;  %v7151_v56 = vunpack.c.h.bf16 %v7184_v13 }
 0x483   : > { %6458 = vst.msk [vmem:[%s10245_s19 + $0x18] sm:$0xf] %vm6451_vm2, %v7085_v34  ;;  %v7086_v60 = vpack.c.bf16 %v6298_v38, %v6298_v38  ;;  %v6109_v40 = vadd.f32 %v7733_v19, %v10235_v41  ;;  %v6100_v46 = vpop.f32.mrb[73].mxu0 }
 0x484   : > { %6456 = vst.msk [vmem:[%s10245_s19 + $0x10] sm:$0xf] %vm6451_vm2, %v7083_v3  ;;  %v7084_v62 = vpack.c.bf16 %v6296_v47, %v6296_v47  ;;  %v6101_v49 = vadd.f32 %v10235_v41, %v6100_v46  ;;  %v7734_v58 = vpop.f32.mrb[74].mxu0  ;;  %v7147_v3 = vunpack.c.h.bf16 %v7183_v12  ;;  %v7186_v46 = vld [vmem:[%s8431_s15 + $0x58] sm:$0xff]  }
 0x485   : > { %6459 = vst.msk [vmem:[%s10245_s19 + $0x1c] sm:$0xf] %vm6451_vm2, %v7086_v60  ;;  %v6269_v23 = vadd.f32 %v7134_v14, %v6109_v40  ;;  %v6112_v4 = vadd.f32 %v7734_v58, %v10235_v41  ;;  %v6103_v33 = vpop.f32.mrb[75].mxu0 }
 0x486   : > { %6457 = vst.msk [vmem:[%s10245_s19 + $0x14] sm:$0xf] %vm6451_vm2, %v7084_v62  ;;  %v6267_v36 = vadd.f32 %v7130_v63, %v6101_v49  ;;  %v6104_v43 = vadd.f32 %v10235_v41, %v6103_v33  ;;  %v7185_v49 = vld [vmem:[%s8431_s15 + $0x50] sm:$0xff]   ;;  %v7158_v33 = vunpack.c.l.bf16 %v7186_v46 }
 0x487   : > { %v6301_v15 = vmax.f32 %v6269_v23, 0.0  ;;  %v6270_v29 = vadd.f32 %v7135_v55, %v6112_v4 }
 0x488   : > { %v6299_v25 = vmax.f32 %v6267_v36, 0.0  ;;  %v6268_v42 = vadd.f32 %v7131_v51, %v6104_v43 }
 0x489   : > { %v7089_v10 = vpack.c.bf16 %v6301_v15, %v6301_v15  ;;  %v6302_v7 = vmax.f32 %v6270_v29, 0.0  ;;  %v7154_v15 = vunpack.c.l.bf16 %v7185_v49 }
 0x48a   : > { %v7087_v16 = vpack.c.bf16 %v6299_v25, %v6299_v25  ;;  %v6300_v26 = vmax.f32 %v6268_v42, 0.0  ;;  %v7737_v52 = vpop.f32.mrb[76].mxu0  ;;  %v7159_v42 = vunpack.c.h.bf16 %v7186_v46 }
 0x48b   : > { %6462 = vst.msk [vmem:[%s10245_s19 + $0x28] sm:$0xf] %vm6451_vm2, %v7089_v10  ;;  %v7090_v6 = vpack.c.bf16 %v6302_v7, %v6302_v7  ;;  %v6125_v22 = vadd.f32 %v7737_v52, %v10235_v41  ;;  %v6116_v17 = vpop.f32.mrb[77].mxu0 }
 0x48c   : > { %6460 = vst.msk [vmem:[%s10245_s19 + $0x20] sm:$0xf] %vm6451_vm2, %v7087_v16  ;;  %v7088_v59 = vpack.c.bf16 %v6300_v26, %v6300_v26  ;;  %v6117_v44 = vadd.f32 %v10235_v41, %v6116_v17  ;;  %v7738_v50 = vpop.f32.mrb[78].mxu0  ;;  %v7155_v16 = vunpack.c.h.bf16 %v7185_v49  ;;  %v7188_v17 = vld [vmem:[%s8431_s15 + $0x68] sm:$0xff]  }
 0x48d   : > { %6463 = vst.msk [vmem:[%s10245_s19 + $0x2c] sm:$0xf] %vm6451_vm2, %v7090_v6  ;;  %v6273_v21 = vadd.f32 %v7142_v9, %v6125_v22  ;;  %v6128_v2 = vadd.f32 %v7738_v50, %v10235_v41  ;;  %v6119_v18 = vpop.f32.mrb[79].mxu0 }
 0x48e   : > { %6461 = vst.msk [vmem:[%s10245_s19 + $0x24] sm:$0xf] %vm6451_vm2, %v7088_v59  ;;  %v6271_v37 = vadd.f32 %v7138_v1, %v6117_v44  ;;  %v6120_v20 = vadd.f32 %v10235_v41, %v6119_v18  ;;  %v7187_v44 = vld [vmem:[%s8431_s15 + $0x60] sm:$0xff]   ;;  %v7166_v18 = vunpack.c.l.bf16 %v7188_v17 }
 0x48f   : > { %v6305_v39 = vmax.f32 %v6273_v21, 0.0  ;;  %v6274_v54 = vadd.f32 %v7143_v0, %v6128_v2 }
 0x490   : > { %v6303_v8 = vmax.f32 %v6271_v37, 0.0  ;;  %v6272_v5 = vadd.f32 %v7139_v53, %v6120_v20 }
 0x491   : > { %v7093_v45 = vpack.c.bf16 %v6305_v39, %v6305_v39  ;;  %v6306_v27 = vmax.f32 %v6274_v54, 0.0  ;;  %v7162_v39 = vunpack.c.l.bf16 %v7187_v44 }
 0x492   : > { %v7091_v57 = vpack.c.bf16 %v6303_v8, %v6303_v8  ;;  %v6304_v61 = vmax.f32 %v6272_v5, 0.0  ;;  %v7741_v11 = vpop.f32.mrb[80].mxu0  ;;  %v7167_v5 = vunpack.c.h.bf16 %v7188_v17 }
 0x493   : > { %6466 = vst.msk [vmem:[%s10245_s19 + $0x38] sm:$0xf] %vm6451_vm2, %v7093_v45  ;;  %v7094_v30 = vpack.c.bf16 %v6306_v27, %v6306_v27  ;;  %v6141_v31 = vadd.f32 %v7741_v11, %v10235_v41  ;;  %v6132_v48 = vpop.f32.mrb[81].mxu0 }
 0x494   : > { %6464 = vst.msk [vmem:[%s10245_s19 + $0x30] sm:$0xf] %vm6451_vm2, %v7091_v57  ;;  %v7092_v34 = vpack.c.bf16 %v6304_v61, %v6304_v61  ;;  %v6133_v38 = vadd.f32 %v10235_v41, %v6132_v48  ;;  %v7742_v14 = vpop.f32.mrb[82].mxu0  ;;  %v7163_v57 = vunpack.c.h.bf16 %v7187_v44  ;;  %v7190_v48 = vld [vmem:[%s8431_s15 + $0x78] sm:$0xff]  }
 0x495   : > { %6467 = vst.msk [vmem:[%s10245_s19 + $0x3c] sm:$0xf] %vm6451_vm2, %v7094_v30  ;;  %v6277_v47 = vadd.f32 %v7150_v32, %v6141_v31  ;;  %v6144_v19 = vadd.f32 %v7742_v14, %v10235_v41  ;;  %v6135_v63 = vpop.f32.mrb[83].mxu0 }
 0x496   : > { %6465 = vst.msk [vmem:[%s10245_s19 + $0x34] sm:$0xf] %vm6451_vm2, %v7092_v34  ;;  %v6275_v60 = vadd.f32 %v7146_v35, %v6133_v38  ;;  %v6136_v40 = vadd.f32 %v10235_v41, %v6135_v63  ;;  %v7189_v38 = vld [vmem:[%s8431_s15 + $0x70] sm:$0xff]   ;;  %v7174_v63 = vunpack.c.l.bf16 %v7190_v48  ;;  %s6498_s15 = sshll.u32 %s10245_s19, 4  ;;  %s10352_s15 = int_to_ptr.vmem [resolvable:$true] %s6498_s15 }
 0x497   : > { %v6309_v55 = vmax.f32 %v6277_v47, 0.0  ;;  %v6278_v62 = vadd.f32 %v7151_v56, %v6144_v19  ;;  %s8206_s11 = scalar_lea.vmem %s10352_s15, 2048  ;;  %p8213_p8 = scmp.lt.s32.totalorder %s10352_s15, %s8211_s20 }
 0x498   : > { %v6307_v58 = vmax.f32 %v6275_v60, 0.0  ;;  %v6276_v51 = vadd.f32 %v7147_v3, %v6136_v40  ;;  %p8207_p6 = scmp.ne.s32.totalorder %s10352_s15, %s8206_s11  ;;  %p8214_p10 = scmp.lt.s32.totalorder %s8212_s22, %s8206_s11 }
 0x499   : > { %v7097_v23 = vpack.c.bf16 %v6309_v55, %v6309_v55  ;;  %v6310_v4 = vmax.f32 %v6278_v62, 0.0  ;;  %v7170_v55 = vunpack.c.l.bf16 %v7189_v38 }
 0x49a   : > { %v7095_v36 = vpack.c.bf16 %v6307_v58, %v6307_v58  ;;  %v6308_v43 = vmax.f32 %v6276_v51, 0.0  ;;  %v7745_v28 = vpop.f32.mrb[84].mxu0  ;;  %v7175_v51 = vunpack.c.h.bf16 %v7190_v48  ;;  %p8208_p12 = pnand %p8207_p6, %p10524_p11  ;;  %p8215_p0 = por %p8214_p10, %p8213_p8 }
 0x49b   : > { %6470 = vst.msk [vmem:[%s10245_s19 + $0x48] sm:$0xf] %vm6451_vm2, %v7097_v23  ;;  %v7098_v29 = vpack.c.bf16 %v6310_v4, %v6310_v4  ;;  %v6157_v24 = vadd.f32 %v7745_v28, %v10235_v41  ;;  %v6148_v25 = vpop.f32.mrb[85].mxu0 }
 0x49c   : > { %6468 = vst.msk [vmem:[%s10245_s19 + $0x40] sm:$0xf] %vm6451_vm2, %v7095_v36  ;;  %v7096_v10 = vpack.c.bf16 %v6308_v43, %v6308_v43  ;;  %v6149_v7 = vadd.f32 %v10235_v41, %v6148_v25  ;;  %v7746_v9 = vpop.f32.mrb[86].mxu0  ;;  %v7171_v36 = vunpack.c.h.bf16 %v7189_v38  ;;  %p8209_p13 = pneg %p8208_p12 }
 0x49d   : > { %6471 = vst.msk [vmem:[%s10245_s19 + $0x4c] sm:$0xf] %vm6451_vm2, %v7098_v29  ;;  %v6281_v26 = vadd.f32 %v7158_v33, %v6157_v24  ;;  %v6160_v52 = vadd.f32 %v7746_v9, %v10235_v41  ;;  %v6151_v1 = vpop.f32.mrb[87].mxu0 }
 0x49e   : > { %6469 = vst.msk [vmem:[%s10245_s19 + $0x44] sm:$0xf] %vm6451_vm2, %v7096_v10  ;;  %v6279_v6 = vadd.f32 %v7154_v15, %v6149_v7  ;;  %v6152_v22 = vadd.f32 %v10235_v41, %v6151_v1  ;;  %p8216_p2 = pnand %p8215_p0, %p8209_p13 }
 0x49f   : > { %v6313_v0 = vmax.f32 %v6281_v26, 0.0  ;;  %v6282_v59 = vadd.f32 %v7159_v42, %v6160_v52 }
 0x4a0   : > { %v6311_v50 = vmax.f32 %v6279_v6, 0.0  ;;  %v6280_v53 = vadd.f32 %v7155_v16, %v6152_v22 }
 0x4a1   : > { %v7101_v21 = vpack.c.bf16 %v6313_v0, %v6313_v0  ;;  %v6314_v2 = vmax.f32 %v6282_v59, 0.0 }
 0x4a2   : > { %v7099_v37 = vpack.c.bf16 %v6311_v50, %v6311_v50  ;;  %v6312_v20 = vmax.f32 %v6280_v53, 0.0  ;;  %v7749_v13 = vpop.f32.mrb[88].mxu0 }
 0x4a3   : > { %6474 = vst.msk [vmem:[%s10245_s19 + $0x58] sm:$0xf] %vm6451_vm2, %v7101_v21  ;;  %v7102_v54 = vpack.c.bf16 %v6314_v2, %v6314_v2  ;;  %v6173_v12 = vadd.f32 %v7749_v13, %v10235_v41  ;;  %v6164_v8 = vpop.f32.mrb[89].mxu0 }
 0x4a4   : > { %6472 = vst.msk [vmem:[%s10245_s19 + $0x50] sm:$0xf] %vm6451_vm2, %v7099_v37  ;;  %v7100_v45 = vpack.c.bf16 %v6312_v20, %v6312_v20  ;;  %v6165_v27 = vadd.f32 %v10235_v41, %v6164_v8  ;;  %v7750_v32 = vpop.f32.mrb[90].mxu0 }
 0x4a5   : > { %6475 = vst.msk [vmem:[%s10245_s19 + $0x5c] sm:$0xf] %vm6451_vm2, %v7102_v54  ;;  %v6285_v61 = vadd.f32 %v7166_v18, %v6173_v12  ;;  %v6176_v11 = vadd.f32 %v7750_v32, %v10235_v41  ;;  %v6167_v35 = vpop.f32.mrb[91].mxu0 }
 0x4a6   : > { %6473 = vst.msk [vmem:[%s10245_s19 + $0x54] sm:$0xf] %vm6451_vm2, %v7100_v45  ;;  %v6283_v30 = vadd.f32 %v7162_v39, %v6165_v27  ;;  %v6168_v31 = vadd.f32 %v10235_v41, %v6167_v35 }
 0x4a7   : > { %v6317_v56 = vmax.f32 %v6285_v61, 0.0  ;;  %v6286_v34 = vadd.f32 %v7167_v5, %v6176_v11 }
 0x4a8   : > { %v6315_v14 = vmax.f32 %v6283_v30, 0.0  ;;  %v6284_v3 = vadd.f32 %v7163_v57, %v6168_v31 }
 0x4a9   : > { %v7105_v47 = vpack.c.bf16 %v6317_v56, %v6317_v56  ;;  %v6318_v19 = vmax.f32 %v6286_v34, 0.0 }
 0x4aa   : > { %v7103_v60 = vpack.c.bf16 %v6315_v14, %v6315_v14  ;;  %v6316_v40 = vmax.f32 %v6284_v3, 0.0  ;;  %v7753_v46 = vpop.f32.mrb[92].mxu0 }
 0x4ab   : > { %6478 = vst.msk [vmem:[%s10245_s19 + $0x68] sm:$0xf] %vm6451_vm2, %v7105_v47  ;;  %v7106_v62 = vpack.c.bf16 %v6318_v19, %v6318_v19  ;;  %v6189_v49 = vadd.f32 %v7753_v46, %v10235_v41  ;;  %v6180_v58 = vpop.f32.mrb[93].mxu0 }
 0x4ac   : > { %6476 = vst.msk [vmem:[%s10245_s19 + $0x60] sm:$0xf] %vm6451_vm2, %v7103_v60  ;;  %v7104_v23 = vpack.c.bf16 %v6316_v40, %v6316_v40  ;;  %v6181_v4 = vadd.f32 %v10235_v41, %v6180_v58  ;;  %v7754_v33 = vpop.f32.mrb[94].mxu0 }
 0x4ad   : > { %6479 = vst.msk [vmem:[%s10245_s19 + $0x6c] sm:$0xf] %vm6451_vm2, %v7106_v62  ;;  %v6289_v43 = vadd.f32 %v7174_v63, %v6189_v49  ;;  %v6192_v28 = vadd.f32 %v7754_v33, %v10235_v41  ;;  %v6183_v15 = vpop.f32.mrb[95].mxu0 }
 0x4ae   : > { %6477 = vst.msk [vmem:[%s10245_s19 + $0x64] sm:$0xf] %vm6451_vm2, %v7104_v23  ;;  %v6287_v29 = vadd.f32 %v7170_v55, %v6181_v4  ;;  %v6184_v24 = vadd.f32 %v10235_v41, %v6183_v15 }
 0x4af   : > { %v6321_v25 = vmax.f32 %v6289_v43, 0.0  ;;  %v6290_v42 = vadd.f32 %v7175_v51, %v6192_v28 }
 0x4b0   : > { %v6319_v10 = vmax.f32 %v6287_v29, 0.0  ;;  %v6288_v7 = vadd.f32 %v7171_v36, %v6184_v24 }
 0x4b1   : > { %v7109_v9 = vpack.c.bf16 %v6321_v25, %v6321_v25  ;;  %v6322_v16 = vmax.f32 %v6290_v42, 0.0 }
 0x4b2   : > { %v7107_v26 = vpack.c.bf16 %v6319_v10, %v6319_v10  ;;  %v6320_v52 = vmax.f32 %v6288_v7, 0.0 }
 0x4b3   : > { %6482 = vst.msk [vmem:[%s10245_s19 + $0x78] sm:$0xf] %vm6451_vm2, %v7109_v9  ;;  %v7110_v1 = vpack.c.bf16 %v6322_v16, %v6322_v16 }
 0x4b4   : > { %6480 = vst.msk [vmem:[%s10245_s19 + $0x70] sm:$0xf] %vm6451_vm2, %v7107_v26  ;;  %v7108_v41 = vpack.c.bf16 %v6320_v52, %v6320_v52 }
 0x4b5   : > { %6483 = vst.msk [vmem:[%s10245_s19 + $0x7c] sm:$0xf] %vm6451_vm2, %v7110_v1 }
 0x4b6   : > { %6481 = vst.msk [vmem:[%s10245_s19 + $0x74] sm:$0xf] %vm6451_vm2, %v7108_v41 }
 0x4b7   : > { %8219 = shalt.err (!%p8216_p2)
}
 0x4b8   : > { %s8220_s23 = scalar_lea.hbm %s10350_s8, 2048  ;;  %s8224_s19 = scalar_lea.hbm %s10409_s7, 4096 }
 0x4b9   : > { %p8221_p4 = scmp.ne.s32.totalorder %s10350_s8, %s8220_s23  ;;  %p8225_p9 = scmp.lt.u32.totalorder %s10350_s8, %s10409_s7 }
 0x4ba   : > { %p8226_p1 = scmp.lt.u32.totalorder %s8224_s19, %s8220_s23  ;;  %p8228_p6 = scmp.lt.u32.totalorder %s8220_s23, %s10350_s8 }
 0x4bb   : > { %p8222_p5 = pnand %p8221_p4, %p10524_p11 }
 0x4bc   : > { %p8227_p3 = por %p8226_p1, %p8225_p9 }
 0x4bd   : > { %p8223_p7 = pneg %p8222_p5 }
 0x4be   : > { %p8229_p12 = por %p8228_p6, %p8227_p3 }
 0x4c0   : > { %p8230_p13 = pnand %p8229_p12, %p8223_p7 }
 0x4c2   : > { %8233 = shalt.err (!%p8230_p13)
}
 0x4c3   : > { %s8279_s9 = smov 64   ;;  %s8280_s11 = smov 4  }
 0x4c4   : > { %8026 = dma.vmem_to_hbm [thread:$0]  (%p10524_p11), %s10352_s15, 2048, %s10350_s8, %s6485_s28, %s8279_s9, %s8279_s9, %s8280_s11  }
 0x4c5 PF: > { %s6513_s18 = sand.u32 1, %s8260_s24   ;;  %p10525_p8 = scmp.ne.s32.totalorder %s10438_s14, 0 }
 0x4c6   : > { %p10526_p10 = scmp.ge.s32.totalorder %s8272_s27, 2  ;;  %s6514_s20 = scalar_lea.sflag [#allocation5], %s6513_s18 }
 0x4c8   : > { %p8033_p0 = pnand %p10526_p10, %p10525_p8 }
 0x4ca   : > { %8255 = dma.done.wait (!%p8033_p0), %s6514_s20, 2048  }
 0x4cb   : > { %8257 = vsyncadd (!%p8033_p0), %s6514_s20, 4294965248  ;;  %p20_p2 = scmp.ge.s32.totalorder %s8346_s30, 4   ;;  %s10527_s24 = smov %s8264_s25 }
 0x4cc   : > { %s10528_s25 = smov %s8268_s26  ;;  %s10529_s26 = smov %s8358_s10 }
 0x4cd   : > { %s10530_s27 = smov %s8346_s30  ;;  %22 = sbr.rel (!%p20_p2) target bundleno = 5 (0x5), region = 104 }
 0x4d4   :  { %6519 = vsyncpa [#allocation4], 1 }
 0x4d5   :  { %6521 = vsyncpa [#allocation4 + $0x1], 1 }
 0x4d6   :  { %6522 = vsyncpa [#allocation5], 1 }
 0x4d7   :  { %6524 = vsyncpa [#allocation5 + $0x1], 1 }

</bundles_post_ra>
